<compile_context>
chip_gen: v6e
topology: v6e:2x2x1
jax: 0.10.0
libtpu: 0.0.40
codegen_flags: <defaults>
</compile_context>

<pallas_src>
import math

import jax
import jax.numpy as jnp
from jax.experimental import pallas as pl
from jax.experimental.pallas import tpu as pltpu

# ---- model hyper-parameters (small, consistent with the module) ----
PROJ = 128          # conf.MODEL.proj
EMBED = 128         # embed_dim == n (conv in_channels) so the stages chain
PATCH = 2           # patch_size
NUM_HEADS = 4
HEAD_DIM = PROJ // NUM_HEADS
D_VIS = 4096        # nn.Linear(4096, proj) input dim (fixed by the module)
D_TEXT = 128        # text feature dim fed to the Pyramid

_VMEM_LIMIT = 32 * 1024 * 1024   # scoped-VMEM limit (portable v5e/v6e/v7x)


# ---------------------------------------------------------------------------
# Kernel 1: tiled linear  (x @ w + b).  x arrives f32 and is cast to bf16
# in-kernel (saves an XLA cast + HBM round trip); f32 accumulator scratch.
# ---------------------------------------------------------------------------

def _linear_kernel(x_ref, w_ref, b_ref, o_ref, acc_ref):
    @pl.when(pl.program_id(1) == 0)
    def _():
        acc_ref[...] = jnp.zeros_like(acc_ref)

    acc_ref[...] += jnp.dot(x_ref[...].astype(jnp.bfloat16), w_ref[...],
                            preferred_element_type=jnp.float32)

    @pl.when(pl.program_id(1) == pl.num_programs(1) - 1)
    def _():
        o_ref[...] = (acc_ref[...] + b_ref[...]).astype(o_ref.dtype)


def linear(x, w, b, *, out_dtype=jnp.bfloat16):
    """x:[M,K] (f32) @ w:[K,N] (bf16) + b:[N] -> [M,N]."""
    M, K = x.shape
    N = w.shape[1]
    # two M-tiles keep both v7x TensorCores busy; large K-tiles cut grid steps
    tm = 64 if (M % 64 == 0 and M >= 128) else M
    if K <= 2048:
        tk = K
    else:
        tk = next((c for c in (2048, 1024, 512) if K % c == 0), K)

    w = w.astype(jnp.bfloat16)
    b2 = b.reshape(1, N).astype(jnp.float32)

    return pl.pallas_call(
        _linear_kernel,
        out_shape=jax.ShapeDtypeStruct((M, N), out_dtype),
        grid=(M // tm, K // tk),
        in_specs=[pl.BlockSpec((tm, tk), lambda i, k: (i, k)),
                  pl.BlockSpec((tk, N), lambda i, k: (k, 0)),
                  pl.BlockSpec((1, N), lambda i, k: (0, 0))],
        out_specs=pl.BlockSpec((tm, N), lambda i, k: (i, 0)),
        scratch_shapes=[pltpu.VMEM((tm, N), jnp.float32)],
        compiler_params=pltpu.CompilerParams(
            dimension_semantics=("parallel", "arbitrary"),
            vmem_limit_bytes=_VMEM_LIMIT),
    )(x, w, b2)


# ---------------------------------------------------------------------------
# Kernel 2: fused 3-stage MHCA + 2x2 stride-2 patch conv (one launch, grid=B).
#
# Query tokens are pre-permuted in the wrapper into nested patch order
# (s1, s2, p2), so every stage's 2x2 conv is a sum of 4 contiguous row-block
# matmuls and the stage-k output rows are already in the query order stage k+1
# needs — the intermediate videos never leave VMEM.
#
# Attention math per stage (all heads at once, no lane slicing):
#   scores = q @ Keff + boff                 Keff = (wq*scale) @ blockdiag(K^T)
#   probs  = segmented softmax(scores)       denominators via scores-exp @ seg
#   out    = probs @ Vbd                     Vbd  = blockdiag(V)  (head concat)
#   video  = sum_s out[sP:(s+1)P] @ Wop_s    Wop  = wo @ conv_w (wo folded in)
# ---------------------------------------------------------------------------

def _fused_vsg_kernel(q_ref,
                      ke1_ref, bo1_ref, vb1_ref, sg1_ref, wp1_ref, bc1_ref,
                      ke2_ref, bo2_ref, vb2_ref, sg2_ref,
                      ke3_ref, bo3_ref, vb3_ref, sg3_ref, wp2_ref, bc2_ref,
                      v1_ref, v2_ref, v3_ref):
    C = PROJ

    def attend_conv(q, keff, boff, vbd, seg, wop_ref, boc, n_patch):
        # q: (4*n_patch, C) bf16, rows ordered in-patch-position-major.
        s = jnp.dot(q, keff, preferred_element_type=jnp.float32) + boff
        # a single row-max is a valid shift for every head segment
        m = jnp.max(s, axis=-1, keepdims=True)
        p = jnp.exp(s - m)
        # per-head denominators, broadcast back to every lane of the segment
        d = jnp.dot(p, seg, preferred_element_type=jnp.float32)
        probs = (p * pl.reciprocal(d, approx=True)).astype(jnp.bfloat16)
        oa = jnp.dot(probs, vbd,
                     preferred_element_type=jnp.float32).astype(jnp.bfloat16)
        # 2x2 stride-2 conv (+ folded out-proj): 4 contiguous row-block matmuls
        acc = boc + jnp.dot(oa[0:n_patch, :], wop_ref[0:C, :],
                            preferred_element_type=jnp.float32)
        for sp in range(1, 4):
            acc = acc + jnp.dot(oa[sp * n_patch:(sp + 1) * n_patch, :],
                                wop_ref[sp * C:(sp + 1) * C, :],
                                preferred_element_type=jnp.float32)
        return acc                                           # (n_patch, E) f32

    # stage 1: 64 query tokens -> 16 patches
    v1 = attend_conv(q_ref[0], ke1_ref[0], bo1_ref[0], vb1_ref[0],
                     sg1_ref[...], wp1_ref, bc1_ref[...], 16)
    v1_ref[0] = v1
    # stage 2: 16 tokens -> 4 patches (query = stage-1 video, still in VMEM)
    v2 = attend_conv(v1.astype(jnp.bfloat16), ke2_ref[0], bo2_ref[0],
                     vb2_ref[0], sg2_ref[...], wp2_ref, bc2_ref[...], 4)
    v2_ref[0] = v2
    # stage 3: 4 tokens -> 1 patch (reference reuses the finer_video conv)
    v3 = attend_conv(v2.astype(jnp.bfloat16), ke3_ref[0], bo3_ref[0],
                     vb3_ref[0], sg3_ref[...], wp2_ref, bc2_ref[...], 1)
    v3_ref[0] = v3


def _attn_operands(kv, mh, scale):
    """Tiny text-side precompute (plain XLA): kv projection + block-diagonal
    projected keys / values + segment-sum matrix for one pyramid level."""
    B, Tk, C = kv.shape
    H, Dh = NUM_HEADS, HEAD_DIM
    kvp = jnp.einsum('btd,de->bte', kv.astype(jnp.float32), mh["wkv"]) + mh["bkv"]
    k = kvp[..., :C].reshape(B, Tk, H, Dh)
    v = kvp[..., C:].reshape(B, Tk, H, Dh)
    eye = jnp.eye(H, dtype=jnp.float32)
    # Kbd[b, h*Dh+d, g*Tk+t] = k[b,t,h,d] * (h==g)   -> (B, C, H*Tk)
    kbd = jnp.einsum('bthd,hg->bhdgt', k, eye).reshape(B, C, H * Tk)
    # Vbd[b, h*Tk+t, g*Dh+d] = v[b,t,h,d] * (h==g)   -> (B, H*Tk, C)
    vbd = jnp.einsum('bthd,hg->bhtgd', v, eye).reshape(B, H * Tk, C)
    keff = jnp.einsum('ij,bjk->bik', mh["wq"] * scale, kbd)          # (B, C, H*Tk)
    boff = jnp.einsum('j,bjk->bk', mh["bq"] * scale, kbd).reshape(B, 1, H * Tk)
    seg = jnp.kron(eye, jnp.ones((Tk, Tk), jnp.float32))             # (H*Tk, H*Tk)
    return (keff.astype(jnp.bfloat16), boff.astype(jnp.float32),
            vbd.astype(jnp.bfloat16), seg)


def _fold_out_conv(wo, bo, w_conv):
    """Fold the MHCA output projection into the 2x2 conv weights (weights-only
    preprocessing, mathematically identical)."""
    E, C = w_conv.shape[0], w_conv.shape[1]
    # conv weight [E, C, kh, kw] -> (s, c, e) with s = kh*2 + kw
    wp = jnp.transpose(w_conv.astype(jnp.float32), (2, 3, 1, 0)).reshape(4, C, E)
    wop = jnp.einsum('ij,sje->sie', wo, wp).reshape(4 * C, E)
    boc = jnp.einsum('j,sje->e', bo, wp).reshape(1, E)
    return wop.astype(jnp.bfloat16), boc.astype(jnp.float32)


def fused_stages(clip_p, fine_t, coarser_t, coarse_t, params):
    """Single pallas_call covering all three MHCA + patch-conv stages."""
    B, T, C = clip_p.shape
    # TODO(synk): the reference never defines how clip tokens form the conv's
    # 2D grid; assume a row-major 8x8 grid (T == 64) so 3 stride-2 stages work.
    assert T == 64 and C == PROJ, "fused kernel specialized to an 8x8 token grid"
    mh = params["mhca"]
    scale = 1.0 / math.sqrt(HEAD_DIM)

    # nested (s1, s2, p2) patch ordering: r = 4*pi2+2*kh2+kh1, c = 4*pj2+2*kw2+kw1
    # new index = (2*kh1+kw1)*16 + (2*kh2+kw2)*4 + (2*pi2+pj2)
    q4 = (clip_p.reshape(B, 2, 2, 2, 2, 2, 2, C)
                .transpose(0, 3, 6, 2, 5, 1, 4, 7)
                .reshape(B, 64, C)).astype(jnp.bfloat16)

    ke1, bo1, vb1, sg1 = _attn_operands(fine_t, mh, scale)
    ke2, bo2, vb2, sg2 = _attn_operands(coarser_t, mh, scale)
    ke3, bo3, vb3, sg3 = _attn_operands(coarse_t, mh, scale)
    wop1, boc1 = _fold_out_conv(mh["wo"], mh["bo"], params["coarse_video_w"])
    wop2, boc2 = _fold_out_conv(mh["wo"], mh["bo"], params["finer_video_w"])
    ht1, ht2, ht3 = ke1.shape[2], ke2.shape[2], ke3.shape[2]

    def bspec3(d1, d2):
        return pl.BlockSpec((1, d1, d2), lambda b: (b, 0, 0))

    def cspec(d1, d2):
        return pl.BlockSpec((d1, d2), lambda b: (0, 0))

    in_specs = [
        bspec3(64, C),
        bspec3(C, ht1), bspec3(1, ht1), bspec3(ht1, C), cspec(ht1, ht1),
        cspec(4 * C, EMBED), cspec(1, EMBED),
        bspec3(C, ht2), bspec3(1, ht2), bspec3(ht2, C), cspec(ht2, ht2),
        bspec3(C, ht3), bspec3(1, ht3), bspec3(ht3, C), cspec(ht3, ht3),
        cspec(4 * C, EMBED), cspec(1, EMBED),
    ]
    out_specs = (bspec3(16, EMBED), bspec3(4, EMBED), bspec3(1, EMBED))
    out_shape = (jax.ShapeDtypeStruct((B, 16, EMBED), jnp.float32),
                 jax.ShapeDtypeStruct((B, 4, EMBED), jnp.float32),
                 jax.ShapeDtypeStruct((B, 1, EMBED), jnp.float32))

    return pl.pallas_call(
        _fused_vsg_kernel,
        out_shape=out_shape,
        grid=(B,),
        in_specs=in_specs,
        out_specs=out_specs,
        compiler_params=pltpu.CompilerParams(
            dimension_semantics=("parallel",),
            vmem_limit_bytes=_VMEM_LIMIT),
    )(q4, ke1, bo1, vb1, sg1, wop1, boc1,
      ke2, bo2, vb2, sg2,
      ke3, bo3, vb3, sg3, wop2, boc2)


# ---------------------------------------------------------------------------
# Tiny pieces kept in plain XLA (launch overhead would dominate in Pallas)
# ---------------------------------------------------------------------------

def head(video, w, b):
    # TODO(synk): Head() is undefined in the reference; synthesized as token
    # mean-pooling + Linear(EMBED, 2) -> [start, end] per batch element.
    pooled = jnp.mean(video.astype(jnp.float32), axis=1)
    return pooled @ w + b


def pyramid(text, p):
    # TODO(synk): Pyramid() is undefined in the reference; synthesized as a
    # Linear(D_TEXT, PROJ) followed by stride-2 average pooling per level.
    B, L, _ = text.shape
    fine = jnp.einsum('bld,dk->blk', text, p["w"]) + p["b"]
    coarser = fine.reshape(B, L // 2, 2, PROJ).mean(axis=2)
    coarse = coarser.reshape(B, L // 4, 2, PROJ).mean(axis=2)
    return fine, coarser, coarse


# ---------------------------------------------------------------------------
# Forward
# ---------------------------------------------------------------------------

def vsg_forward(text, text_masks, clips, temp_bound, params):
    # TODO(synk): text_masks is unused (reference MHCattention is undefined and
    # shows no masking); temp_bound only gates a data-dependent crop (below).
    del text_masks, temp_bound
    B, T, Dv = clips.shape

    # visual_proj: Linear(4096, proj) — Pallas K-pipelined, M-parallel matmul
    clip_p = linear(clips.reshape(B * T, Dv),
                    params["visual_proj_w"], params["visual_proj_b"],
                    out_dtype=jnp.bfloat16).reshape(B, T, PROJ)

    fine_t, coarser_t, coarse_t = pyramid(text, params["pyramid"])

    # one fused launch for all three MHCA + patch-conv stages
    video1, video2, video3 = fused_stages(clip_p, fine_t, coarser_t, coarse_t,
                                          params)

    pred_1 = head(video1, params["coarse_head_w"], params["coarse_head_b"])
    # TODO(synk): data-dependent crop `video[:, :, pred_1[0]:pred_1[1]]` changes
    # the tensor shape at runtime; no static-shape JAX/Pallas equivalent, skipped.
    pred_2 = head(video2, params["finer_head_w"], params["finer_head_b"])
    # TODO(synk): same data-dependent crop skipped.
    pred_3 = head(video3, params["finer_head_w"], params["finer_head_b"])

    return [pred_1, pred_2, pred_3]


# ---------------------------------------------------------------------------
# Deterministic parameter init
# ---------------------------------------------------------------------------

def init_params(key):
    ks = iter(jax.random.split(key, 32))

    def w(shape, scale=0.02, dtype=jnp.float32):
        return (scale * jax.random.normal(next(ks), shape, jnp.float32)).astype(dtype)

    def b(shape, scale=0.02):
        return scale * jax.random.normal(next(ks), shape, jnp.float32)

    return {
        "visual_proj_w": w((D_VIS, PROJ), dtype=jnp.bfloat16),   # big weight kept bf16
        "visual_proj_b": b((PROJ,)),
        "pyramid": {"w": w((D_TEXT, PROJ)), "b": b((PROJ,))},
        # TODO(synk): MHCattention() undefined; synthesized as standard multi-head
        # cross-attention with fused k|v weights and q/out projections.
        "mhca": {
            "wq": w((PROJ, PROJ)), "bq": b((PROJ,)),
            "wkv": w((PROJ, 2 * PROJ)), "bkv": b((2 * PROJ,)),
            "wo": w((PROJ, PROJ)), "bo": b((PROJ,)),
        },
        # Conv2d weights kept in PyTorch layout [out, in, kh, kw], bias=False
        "coarse_video_w": w((EMBED, PROJ, PATCH, PATCH)),
        "finer_video_w":  w((EMBED, PROJ, PATCH, PATCH)),
        "fine_video_w":   w((EMBED, PROJ, PATCH, PATCH)),   # unused by the ref forward
        "coarse_head_w": w((EMBED, 2)), "coarse_head_b": b((2,)),
        "finer_head_w":  w((EMBED, 2)), "finer_head_b":  b((2,)),
        "final_head_w":  w((EMBED, 2)), "final_head_b":  b((2,)),  # unused
    }


if __name__ == "__main__":
    key = jax.random.PRNGKey(0)
    k_text, k_clips, k_params = jax.random.split(key, 3)

    B = 2
    T_CLIPS = 64       # 8x8 token grid -> 4x4 -> 2x2 -> 1x1 across the three stages
    L_TEXT = 16

    text = jax.random.normal(k_text, (B, L_TEXT, D_TEXT), jnp.float32)
    text_masks = jnp.ones((B, L_TEXT), jnp.float32)
    clips = jax.random.normal(k_clips, (B, T_CLIPS, D_VIS), jnp.float32)
    temp_bound = jnp.array([0.25, 0.75], jnp.float32)

    params = init_params(k_params)

    fwd = jax.jit(vsg_forward)
    out = fwd(text, text_masks, clips, temp_bound, params)
    jax.block_until_ready(out)

    assert out[0].shape == (B, 2) and out[1].shape == (B, 2) and out[2].shape == (B, 2)
    assert all(bool(jnp.all(jnp.isfinite(o))) for o in out)
    print("KERNEL_OK")
</pallas_src>

<mosaic_0001>
module attributes {stable_mosaic.version = 11 : i64} {
  func.func @_linear_kernel(%arg0: i32, %arg1: i32, %arg2: memref<64x2048xf32, #tpu.memory_space<vmem>>, %arg3: memref<2048x128xbf16, #tpu.memory_space<vmem>>, %arg4: memref<1x128xf32, #tpu.memory_space<vmem>>, %arg5: memref<64x128xbf16, #tpu.memory_space<vmem>>, %arg6: memref<64x128xf32, #tpu.memory_space<vmem>>) attributes {dimension_semantics = [#tpu.dimension_semantics<parallel>, #tpu.dimension_semantics<arbitrary>], iteration_bounds = array<i64: 2, 2>, scalar_prefetch = 0 : i64, scratch_operands = 1 : i64, tpu.core_type = #tpu.core_type<tc>, window_params = [{transform_indices = @transform_0, window_bounds = array<i64: 64, 2048>}, {transform_indices = @transform_1, window_bounds = array<i64: 2048, 128>}, {pipeline_mode = #tpu.pipeline_mode<synchronous>, transform_indices = @transform_2, window_bounds = array<i64: 1, 128>}, {transform_indices = @transform_3, window_bounds = array<i64: 64, 128>}]} {
    %c0_i32 = arith.constant 0 : i32
    %0 = arith.cmpi eq, %arg1, %c0_i32 : i32
    %1 = arith.extui %0 : i1 to i32
    %c0_i32_0 = arith.constant 0 : i32
    %2 = arith.cmpi ne, %1, %c0_i32_0 : i32
    scf.if %2 {
      %cst_9 = arith.constant 0.000000e+00 : f32
      %13 = vector.broadcast %cst_9 : f32 to vector<64x128xf32>
      %c0_10 = arith.constant 0 : index
      %c0_11 = arith.constant 0 : index
      %14 = vector.load %arg6[%c0_10, %c0_11] : memref<64x128xf32, #tpu.memory_space<vmem>>, vector<64x128xf32>
      tpu.vector_store %arg6[%c0_10, %c0_11], %13 {strides = array<i32>} : memref<64x128xf32, #tpu.memory_space<vmem>>, vector<64x128xf32>,
    } else {
    }
    %c0 = arith.constant 0 : index
    %c0_1 = arith.constant 0 : index
    %3 = vector.load %arg6[%c0, %c0_1] : memref<64x128xf32, #tpu.memory_space<vmem>>, vector<64x128xf32>
    %c0_2 = arith.constant 0 : index
    %c0_3 = arith.constant 0 : index
    %4 = vector.load %arg2[%c0_2, %c0_3] : memref<64x2048xf32, #tpu.memory_space<vmem>>, vector<64x2048xf32>
    %5 = arith.truncf %4 : vector<64x2048xf32> to vector<64x2048xbf16>
    %c0_4 = arith.constant 0 : index
    %c0_5 = arith.constant 0 : index
    %6 = vector.load %arg3[%c0_4, %c0_5] : memref<2048x128xbf16, #tpu.memory_space<vmem>>, vector<2048x128xbf16>
    %cst = arith.constant dense<0.000000e+00> : vector<64x128xf32>
    %7 = tpu.matmul %5, %6, %cst {dimension_numbers = #tpu.dot_dimension_numbers<[1], [0], [0], [1], [0, 0, 1, 1], [], []>} : vector<64x2048xbf16>, vector<2048x128xbf16>, vector<64x128xf32> -> vector<64x128xf32>
    %8 = arith.addf %3, %7 : vector<64x128xf32>
    %c0_6 = arith.constant 0 : index
    %c0_7 = arith.constant 0 : index
    %9 = vector.load %arg6[%c0_6, %c0_7] : memref<64x128xf32, #tpu.memory_space<vmem>>, vector<64x128xf32>
    tpu.vector_store %arg6[%c0_6, %c0_7], %8 {strides = array<i32>} : memref<64x128xf32, #tpu.memory_space<vmem>>, vector<64x128xf32>,
    %c1_i32 = arith.constant 1 : i32
    %10 = arith.cmpi eq, %arg1, %c1_i32 : i32
    %11 = arith.extui %10 : i1 to i32
    %c0_i32_8 = arith.constant 0 : i32
    %12 = arith.cmpi ne, %11, %c0_i32_8 : i32
    scf.if %12 {
      %c0_9 = arith.constant 0 : index
      %c0_10 = arith.constant 0 : index
      %13 = vector.load %arg6[%c0_9, %c0_10] : memref<64x128xf32, #tpu.memory_space<vmem>>, vector<64x128xf32>
      %c0_11 = arith.constant 0 : index
      %c0_12 = arith.constant 0 : index
      %14 = vector.load %arg4[%c0_11, %c0_12] : memref<1x128xf32, #tpu.memory_space<vmem>>, vector<1x128xf32>
      %15 = vector.broadcast %14 : vector<1x128xf32> to vector<64x128xf32>
      %16 = arith.addf %13, %15 : vector<64x128xf32>
      %17 = arith.truncf %16 : vector<64x128xf32> to vector<64x128xbf16>
      %c0_13 = arith.constant 0 : index
      %c0_14 = arith.constant 0 : index
      %18 = vector.load %arg5[%c0_13, %c0_14] : memref<64x128xbf16, #tpu.memory_space<vmem>>, vector<64x128xbf16>
      tpu.vector_store %arg5[%c0_13, %c0_14], %17 {strides = array<i32>} : memref<64x128xbf16, #tpu.memory_space<vmem>>, vector<64x128xbf16>,
    } else {
    }
    return
  }
  func.func @transform_0(%arg0: i32, %arg1: i32) -> (i32, i32) {
    %c0_i32 = arith.constant 0 : i32
    return %arg0, %arg1 : i32, i32
  }
  func.func @transform_1(%arg0: i32, %arg1: i32) -> (i32, i32) {
    %c0_i32 = arith.constant 0 : i32
    %c0_i32_0 = arith.constant 0 : i32
    return %arg1, %c0_i32 : i32, i32
  }
  func.func @transform_2(%arg0: i32, %arg1: i32) -> (i32, i32) {
    %c0_i32 = arith.constant 0 : i32
    %c0_i32_0 = arith.constant 0 : i32
    %c0_i32_1 = arith.constant 0 : i32
    return %c0_i32, %c0_i32_0 : i32, i32
  }
  func.func @transform_3(%arg0: i32, %arg1: i32) -> (i32, i32) {
    %c0_i32 = arith.constant 0 : i32
    %c0_i32_0 = arith.constant 0 : i32
    return %arg0, %c0_i32 : i32, i32
  }
}

module attributes {stable_mosaic.version = 11 : i64} {
  func.func @_fused_vsg_kernel(%arg0: i32, %arg1: memref<1x64x128xbf16, #tpu.memory_space<vmem>>, %arg2: memref<1x128x64xbf16, #tpu.memory_space<vmem>>, %arg3: memref<1x1x64xf32, #tpu.memory_space<vmem>>, %arg4: memref<1x64x128xbf16, #tpu.memory_space<vmem>>, %arg5: memref<64x64xf32, #tpu.memory_space<vmem>>, %arg6: memref<512x128xbf16, #tpu.memory_space<vmem>>, %arg7: memref<1x128xf32, #tpu.memory_space<vmem>>, %arg8: memref<1x128x32xbf16, #tpu.memory_space<vmem>>, %arg9: memref<1x1x32xf32, #tpu.memory_space<vmem>>, %arg10: memref<1x32x128xbf16, #tpu.memory_space<vmem>>, %arg11: memref<32x32xf32, #tpu.memory_space<vmem>>, %arg12: memref<1x128x16xbf16, #tpu.memory_space<vmem>>, %arg13: memref<1x1x16xf32, #tpu.memory_space<vmem>>, %arg14: memref<1x16x128xbf16, #tpu.memory_space<vmem>>, %arg15: memref<16x16xf32, #tpu.memory_space<vmem>>, %arg16: memref<512x128xbf16, #tpu.memory_space<vmem>>, %arg17: memref<1x128xf32, #tpu.memory_space<vmem>>, %arg18: memref<1x16x128xf32, #tpu.memory_space<vmem>>, %arg19: memref<1x4x128xf32, #tpu.memory_space<vmem>>, %arg20: memref<1x1x128xf32, #tpu.memory_space<vmem>>) attributes {dimension_semantics = [#tpu.dimension_semantics<parallel>], iteration_bounds = array<i64: 2>, scalar_prefetch = 0 : i64, scratch_operands = 0 : i64, tpu.core_type = #tpu.core_type<tc>, window_params = [{transform_indices = @transform_0, window_bounds = array<i64: 1, 64, 128>}, {transform_indices = @transform_1, window_bounds = array<i64: 1, 128, 64>}, {transform_indices = @transform_2, window_bounds = array<i64: 1, 1, 64>}, {transform_indices = @transform_3, window_bounds = array<i64: 1, 64, 128>}, {pipeline_mode = #tpu.pipeline_mode<synchronous>, transform_indices = @transform_4, window_bounds = array<i64: 64, 64>}, {pipeline_mode = #tpu.pipeline_mode<synchronous>, transform_indices = @transform_5, window_bounds = array<i64: 512, 128>}, {pipeline_mode = #tpu.pipeline_mode<synchronous>, transform_indices = @transform_6, window_bounds = array<i64: 1, 128>}, {transform_indices = @transform_7, window_bounds = array<i64: 1, 128, 32>}, {transform_indices = @transform_8, window_bounds = array<i64: 1, 1, 32>}, {transform_indices = @transform_9, window_bounds = array<i64: 1, 32, 128>}, {pipeline_mode = #tpu.pipeline_mode<synchronous>, transform_indices = @transform_10, window_bounds = array<i64: 32, 32>}, {transform_indices = @transform_11, window_bounds = array<i64: 1, 128, 16>}, {transform_indices = @transform_12, window_bounds = array<i64: 1, 1, 16>}, {transform_indices = @transform_13, window_bounds = array<i64: 1, 16, 128>}, {pipeline_mode = #tpu.pipeline_mode<synchronous>, transform_indices = @transform_14, window_bounds = array<i64: 16, 16>}, {pipeline_mode = #tpu.pipeline_mode<synchronous>, transform_indices = @transform_15, window_bounds = array<i64: 512, 128>}, {pipeline_mode = #tpu.pipeline_mode<synchronous>, transform_indices = @transform_16, window_bounds = array<i64: 1, 128>}, {transform_indices = @transform_17, window_bounds = array<i64: 1, 16, 128>}, {transform_indices = @transform_18, window_bounds = array<i64: 1, 4, 128>}, {transform_indices = @transform_19, window_bounds = array<i64: 1, 1, 128>}]} {
    %c0 = arith.constant 0 : index
    %c0_0 = arith.constant 0 : index
    %c0_1 = arith.constant 0 : index
    %0 = vector.load %arg1[%c0, %c0_0, %c0_1] : memref<1x64x128xbf16, #tpu.memory_space<vmem>>, vector<1x64x128xbf16>
    %1 = vector.shape_cast %0 : vector<1x64x128xbf16> to vector<64x128xbf16>
    %c0_2 = arith.constant 0 : index
    %c0_3 = arith.constant 0 : index
    %c0_4 = arith.constant 0 : index
    %2 = vector.load %arg2[%c0_2, %c0_3, %c0_4] : memref<1x128x64xbf16, #tpu.memory_space<vmem>>, vector<1x128x64xbf16>
    %3 = vector.shape_cast %2 : vector<1x128x64xbf16> to vector<128x64xbf16>
    %c0_5 = arith.constant 0 : index
    %c0_6 = arith.constant 0 : index
    %c0_7 = arith.constant 0 : index
    %4 = vector.load %arg3[%c0_5, %c0_6, %c0_7] : memref<1x1x64xf32, #tpu.memory_space<vmem>>, vector<1x1x64xf32>
    %5 = vector.shape_cast %4 : vector<1x1x64xf32> to vector<1x64xf32>
    %c0_8 = arith.constant 0 : index
    %c0_9 = arith.constant 0 : index
    %c0_10 = arith.constant 0 : index
    %6 = vector.load %arg4[%c0_8, %c0_9, %c0_10] : memref<1x64x128xbf16, #tpu.memory_space<vmem>>, vector<1x64x128xbf16>
    %7 = vector.shape_cast %6 : vector<1x64x128xbf16> to vector<64x128xbf16>
    %c0_11 = arith.constant 0 : index
    %c0_12 = arith.constant 0 : index
    %8 = vector.load %arg5[%c0_11, %c0_12] : memref<64x64xf32, #tpu.memory_space<vmem>>, vector<64x64xf32>
    %c0_13 = arith.constant 0 : index
    %c0_14 = arith.constant 0 : index
    %9 = vector.load %arg7[%c0_13, %c0_14] : memref<1x128xf32, #tpu.memory_space<vmem>>, vector<1x128xf32>
    %cst = arith.constant dense<0.000000e+00> : vector<64x64xf32>
    %10 = tpu.matmul %1, %3, %cst {dimension_numbers = #tpu.dot_dimension_numbers<[1], [0], [0], [1], [0, 0, 1, 1], [], []>} : vector<64x128xbf16>, vector<128x64xbf16>, vector<64x64xf32> -> vector<64x64xf32>
    %11 = vector.broadcast %5 : vector<1x64xf32> to vector<64x64xf32>
    %12 = arith.addf %10, %11 : vector<64x64xf32>
    %cst_15 = arith.constant dense<0xFF800000> : vector<64xf32>
    %13 = vector.multi_reduction <maximumf>, %12, %cst_15 [1] : vector<64x64xf32> to vector<64xf32>
    %14 = vector.shape_cast %13 : vector<64xf32> to vector<64x1xf32>
    %15 = vector.broadcast %14 : vector<64x1xf32> to vector<64x64xf32>
    %16 = arith.subf %12, %15 : vector<64x64xf32>
    %17 = math.exp %16 : vector<64x64xf32>
    %cst_16 = arith.constant dense<0.000000e+00> : vector<64x64xf32>
    %18 = tpu.matmul %17, %8, %cst_16 {dimension_numbers = #tpu.dot_dimension_numbers<[1], [0], [0], [1], [0, 0, 1, 1], [], []>} : vector<64x64xf32>, vector<64x64xf32>, vector<64x64xf32> -> vector<64x64xf32>
    %19 = tpu.reciprocal %18 {approx = true} : vector<64x64xf32> -> vector<64x64xf32>
    %20 = arith.mulf %17, %19 : vector<64x64xf32>
    %21 = arith.truncf %20 : vector<64x64xf32> to vector<64x64xbf16>
    %cst_17 = arith.constant dense<0.000000e+00> : vector<64x128xf32>
    %22 = tpu.matmul %21, %7, %cst_17 {dimension_numbers = #tpu.dot_dimension_numbers<[1], [0], [0], [1], [0, 0, 1, 1], [], []>} : vector<64x64xbf16>, vector<64x128xbf16>, vector<64x128xf32> -> vector<64x128xf32>
    %23 = arith.truncf %22 : vector<64x128xf32> to vector<64x128xbf16>
    %24 = vector.extract_strided_slice %23 {offsets = [0, 0], sizes = [16, 128], strides = [1, 1]} : vector<64x128xbf16> to vector<16x128xbf16>
    %c0_18 = arith.constant 0 : index
    %c0_19 = arith.constant 0 : index
    %25 = vector.load %arg6[%c0_18, %c0_19] : memref<512x128xbf16, #tpu.memory_space<vmem>>, vector<128x128xbf16>
    %cst_20 = arith.constant dense<0.000000e+00> : vector<16x128xf32>
    %26 = tpu.matmul %24, %25, %cst_20 {dimension_numbers = #tpu.dot_dimension_numbers<[1], [0], [0], [1], [0, 0, 1, 1], [], []>} : vector<16x128xbf16>, vector<128x128xbf16>, vector<16x128xf32> -> vector<16x128xf32>
    %27 = vector.broadcast %9 : vector<1x128xf32> to vector<16x128xf32>
    %28 = arith.addf %27, %26 : vector<16x128xf32>
    %29 = vector.extract_strided_slice %23 {offsets = [16, 0], sizes = [16, 128], strides = [1, 1]} : vector<64x128xbf16> to vector<16x128xbf16>
    %c128 = arith.constant 128 : index
    %c0_21 = arith.constant 0 : index
    %30 = vector.load %arg6[%c128, %c0_21] : memref<512x128xbf16, #tpu.memory_space<vmem>>, vector<128x128xbf16>
    %cst_22 = arith.constant dense<0.000000e+00> : vector<16x128xf32>
    %31 = tpu.matmul %29, %30, %cst_22 {dimension_numbers = #tpu.dot_dimension_numbers<[1], [0], [0], [1], [0, 0, 1, 1], [], []>} : vector<16x128xbf16>, vector<128x128xbf16>, vector<16x128xf32> -> vector<16x128xf32>
    %32 = arith.addf %28, %31 : vector<16x128xf32>
    %33 = vector.extract_strided_slice %23 {offsets = [32, 0], sizes = [16, 128], strides = [1, 1]} : vector<64x128xbf16> to vector<16x128xbf16>
    %c256 = arith.constant 256 : index
    %c0_23 = arith.constant 0 : index
    %34 = vector.load %arg6[%c256, %c0_23] : memref<512x128xbf16, #tpu.memory_space<vmem>>, vector<128x128xbf16>
    %cst_24 = arith.constant dense<0.000000e+00> : vector<16x128xf32>
    %35 = tpu.matmul %33, %34, %cst_24 {dimension_numbers = #tpu.dot_dimension_numbers<[1], [0], [0], [1], [0, 0, 1, 1], [], []>} : vector<16x128xbf16>, vector<128x128xbf16>, vector<16x128xf32> -> vector<16x128xf32>
    %36 = arith.addf %32, %35 : vector<16x128xf32>
    %37 = vector.extract_strided_slice %23 {offsets = [48, 0], sizes = [16, 128], strides = [1, 1]} : vector<64x128xbf16> to vector<16x128xbf16>
    %c384 = arith.constant 384 : index
    %c0_25 = arith.constant 0 : index
    %38 = vector.load %arg6[%c384, %c0_25] : memref<512x128xbf16, #tpu.memory_space<vmem>>, vector<128x128xbf16>
    %cst_26 = arith.constant dense<0.000000e+00> : vector<16x128xf32>
    %39 = tpu.matmul %37, %38, %cst_26 {dimension_numbers = #tpu.dot_dimension_numbers<[1], [0], [0], [1], [0, 0, 1, 1], [], []>} : vector<16x128xbf16>, vector<128x128xbf16>, vector<16x128xf32> -> vector<16x128xf32>
    %40 = arith.addf %36, %39 : vector<16x128xf32>
    %c0_27 = arith.constant 0 : index
    %c0_28 = arith.constant 0 : index
    %c0_29 = arith.constant 0 : index
    %41 = vector.load %arg18[%c0_27, %c0_28, %c0_29] : memref<1x16x128xf32, #tpu.memory_space<vmem>>, vector<1x16x128xf32>
    %42 = vector.shape_cast %41 : vector<1x16x128xf32> to vector<16x128xf32>
    %43 = vector.shape_cast %40 : vector<16x128xf32> to vector<1x16x128xf32>
    tpu.vector_store %arg18[%c0_27, %c0_28, %c0_29], %43 {strides = array<i32>} : memref<1x16x128xf32, #tpu.memory_space<vmem>>, vector<1x16x128xf32>,
    %44 = arith.truncf %40 : vector<16x128xf32> to vector<16x128xbf16>
    %c0_30 = arith.constant 0 : index
    %c0_31 = arith.constant 0 : index
    %c0_32 = arith.constant 0 : index
    %45 = vector.load %arg8[%c0_30, %c0_31, %c0_32] : memref<1x128x32xbf16, #tpu.memory_space<vmem>>, vector<1x128x32xbf16>
    %46 = vector.shape_cast %45 : vector<1x128x32xbf16> to vector<128x32xbf16>
    %c0_33 = arith.constant 0 : index
    %c0_34 = arith.constant 0 : index
    %c0_35 = arith.constant 0 : index
    %47 = vector.load %arg9[%c0_33, %c0_34, %c0_35] : memref<1x1x32xf32, #tpu.memory_space<vmem>>, vector<1x1x32xf32>
    %48 = vector.shape_cast %47 : vector<1x1x32xf32> to vector<1x32xf32>
    %c0_36 = arith.constant 0 : index
    %c0_37 = arith.constant 0 : index
    %c0_38 = arith.constant 0 : index
    %49 = vector.load %arg10[%c0_36, %c0_37, %c0_38] : memref<1x32x128xbf16, #tpu.memory_space<vmem>>, vector<1x32x128xbf16>
    %50 = vector.shape_cast %49 : vector<1x32x128xbf16> to vector<32x128xbf16>
    %c0_39 = arith.constant 0 : index
    %c0_40 = arith.constant 0 : index
    %51 = vector.load %arg11[%c0_39, %c0_40] : memref<32x32xf32, #tpu.memory_space<vmem>>, vector<32x32xf32>
    %c0_41 = arith.constant 0 : index
    %c0_42 = arith.constant 0 : index
    %52 = vector.load %arg17[%c0_41, %c0_42] : memref<1x128xf32, #tpu.memory_space<vmem>>, vector<1x128xf32>
    %cst_43 = arith.constant dense<0.000000e+00> : vector<16x32xf32>
    %53 = tpu.matmul %44, %46, %cst_43 {dimension_numbers = #tpu.dot_dimension_numbers<[1], [0], [0], [1], [0, 0, 1, 1], [], []>} : vector<16x128xbf16>, vector<128x32xbf16>, vector<16x32xf32> -> vector<16x32xf32>
    %54 = vector.broadcast %48 : vector<1x32xf32> to vector<16x32xf32>
    %55 = arith.addf %53, %54 : vector<16x32xf32>
    %cst_44 = arith.constant dense<0xFF800000> : vector<16xf32>
    %56 = vector.multi_reduction <maximumf>, %55, %cst_44 [1] : vector<16x32xf32> to vector<16xf32>
    %57 = vector.shape_cast %56 : vector<16xf32> to vector<16x1xf32>
    %58 = vector.broadcast %57 : vector<16x1xf32> to vector<16x32xf32>
    %59 = arith.subf %55, %58 : vector<16x32xf32>
    %60 = math.exp %59 : vector<16x32xf32>
    %cst_45 = arith.constant dense<0.000000e+00> : vector<16x32xf32>
    %61 = tpu.matmul %60, %51, %cst_45 {dimension_numbers = #tpu.dot_dimension_numbers<[1], [0], [0], [1], [0, 0, 1, 1], [], []>} : vector<16x32xf32>, vector<32x32xf32>, vector<16x32xf32> -> vector<16x32xf32>
    %62 = tpu.reciprocal %61 {approx = true} : vector<16x32xf32> -> vector<16x32xf32>
    %63 = arith.mulf %60, %62 : vector<16x32xf32>
    %64 = arith.truncf %63 : vector<16x32xf32> to vector<16x32xbf16>
    %cst_46 = arith.constant dense<0.000000e+00> : vector<16x128xf32>
    %65 = tpu.matmul %64, %50, %cst_46 {dimension_numbers = #tpu.dot_dimension_numbers<[1], [0], [0], [1], [0, 0, 1, 1], [], []>} : vector<16x32xbf16>, vector<32x128xbf16>, vector<16x128xf32> -> vector<16x128xf32>
    %66 = arith.truncf %65 : vector<16x128xf32> to vector<16x128xbf16>
    %67 = vector.extract_strided_slice %66 {offsets = [0, 0], sizes = [4, 128], strides = [1, 1]} : vector<16x128xbf16> to vector<4x128xbf16>
    %c0_47 = arith.constant 0 : index
    %c0_48 = arith.constant 0 : index
    %68 = vector.load %arg16[%c0_47, %c0_48] : memref<512x128xbf16, #tpu.memory_space<vmem>>, vector<128x128xbf16>
    %cst_49 = arith.constant dense<0.000000e+00> : vector<4x128xf32>
    %69 = tpu.matmul %67, %68, %cst_49 {dimension_numbers = #tpu.dot_dimension_numbers<[1], [0], [0], [1], [0, 0, 1, 1], [], []>} : vector<4x128xbf16>, vector<128x128xbf16>, vector<4x128xf32> -> vector<4x128xf32>
    %70 = vector.broadcast %52 : vector<1x128xf32> to vector<4x128xf32>
    %71 = arith.addf %70, %69 : vector<4x128xf32>
    %72 = vector.extract_strided_slice %66 {offsets = [4, 0], sizes = [4, 128], strides = [1, 1]} : vector<16x128xbf16> to vector<4x128xbf16>
    %c128_50 = arith.constant 128 : index
    %c0_51 = arith.constant 0 : index
    %73 = vector.load %arg16[%c128_50, %c0_51] : memref<512x128xbf16, #tpu.memory_space<vmem>>, vector<128x128xbf16>
    %cst_52 = arith.constant dense<0.000000e+00> : vector<4x128xf32>
    %74 = tpu.matmul %72, %73, %cst_52 {dimension_numbers = #tpu.dot_dimension_numbers<[1], [0], [0], [1], [0, 0, 1, 1], [], []>} : vector<4x128xbf16>, vector<128x128xbf16>, vector<4x128xf32> -> vector<4x128xf32>
    %75 = arith.addf %71, %74 : vector<4x128xf32>
    %76 = vector.extract_strided_slice %66 {offsets = [8, 0], sizes = [4, 128], strides = [1, 1]} : vector<16x128xbf16> to vector<4x128xbf16>
    %c256_53 = arith.constant 256 : index
    %c0_54 = arith.constant 0 : index
    %77 = vector.load %arg16[%c256_53, %c0_54] : memref<512x128xbf16, #tpu.memory_space<vmem>>, vector<128x128xbf16>
    %cst_55 = arith.constant dense<0.000000e+00> : vector<4x128xf32>
    %78 = tpu.matmul %76, %77, %cst_55 {dimension_numbers = #tpu.dot_dimension_numbers<[1], [0], [0], [1], [0, 0, 1, 1], [], []>} : vector<4x128xbf16>, vector<128x128xbf16>, vector<4x128xf32> -> vector<4x128xf32>
    %79 = arith.addf %75, %78 : vector<4x128xf32>
    %80 = vector.extract_strided_slice %66 {offsets = [12, 0], sizes = [4, 128], strides = [1, 1]} : vector<16x128xbf16> to vector<4x128xbf16>
    %c384_56 = arith.constant 384 : index
    %c0_57 = arith.constant 0 : index
    %81 = vector.load %arg16[%c384_56, %c0_57] : memref<512x128xbf16, #tpu.memory_space<vmem>>, vector<128x128xbf16>
    %cst_58 = arith.constant dense<0.000000e+00> : vector<4x128xf32>
    %82 = tpu.matmul %80, %81, %cst_58 {dimension_numbers = #tpu.dot_dimension_numbers<[1], [0], [0], [1], [0, 0, 1, 1], [], []>} : vector<4x128xbf16>, vector<128x128xbf16>, vector<4x128xf32> -> vector<4x128xf32>
    %83 = arith.addf %79, %82 : vector<4x128xf32>
    %c0_59 = arith.constant 0 : index
    %c0_60 = arith.constant 0 : index
    %c0_61 = arith.constant 0 : index
    %84 = vector.load %arg19[%c0_59, %c0_60, %c0_61] : memref<1x4x128xf32, #tpu.memory_space<vmem>>, vector<1x4x128xf32>
    %85 = vector.shape_cast %84 : vector<1x4x128xf32> to vector<4x128xf32>
    %86 = vector.shape_cast %83 : vector<4x128xf32> to vector<1x4x128xf32>
    tpu.vector_store %arg19[%c0_59, %c0_60, %c0_61], %86 {strides = array<i32>} : memref<1x4x128xf32, #tpu.memory_space<vmem>>, vector<1x4x128xf32>,
    %87 = arith.truncf %83 : vector<4x128xf32> to vector<4x128xbf16>
    %c0_62 = arith.constant 0 : index
    %c0_63 = arith.constant 0 : index
    %c0_64 = arith.constant 0 : index
    %88 = vector.load %arg12[%c0_62, %c0_63, %c0_64] : memref<1x128x16xbf16, #tpu.memory_space<vmem>>, vector<1x128x16xbf16>
    %89 = vector.shape_cast %88 : vector<1x128x16xbf16> to vector<128x16xbf16>
    %c0_65 = arith.constant 0 : index
    %c0_66 = arith.constant 0 : index
    %c0_67 = arith.constant 0 : index
    %90 = vector.load %arg13[%c0_65, %c0_66, %c0_67] : memref<1x1x16xf32, #tpu.memory_space<vmem>>, vector<1x1x16xf32>
    %91 = vector.shape_cast %90 : vector<1x1x16xf32> to vector<1x16xf32>
    %c0_68 = arith.constant 0 : index
    %c0_69 = arith.constant 0 : index
    %c0_70 = arith.constant 0 : index
    %92 = vector.load %arg14[%c0_68, %c0_69, %c0_70] : memref<1x16x128xbf16, #tpu.memory_space<vmem>>, vector<1x16x128xbf16>
    %93 = vector.shape_cast %92 : vector<1x16x128xbf16> to vector<16x128xbf16>
    %c0_71 = arith.constant 0 : index
    %c0_72 = arith.constant 0 : index
    %94 = vector.load %arg15[%c0_71, %c0_72] : memref<16x16xf32, #tpu.memory_space<vmem>>, vector<16x16xf32>
    %c0_73 = arith.constant 0 : index
    %c0_74 = arith.constant 0 : index
    %95 = vector.load %arg17[%c0_73, %c0_74] : memref<1x128xf32, #tpu.memory_space<vmem>>, vector<1x128xf32>
    %cst_75 = arith.constant dense<0.000000e+00> : vector<4x16xf32>
    %96 = tpu.matmul %87, %89, %cst_75 {dimension_numbers = #tpu.dot_dimension_numbers<[1], [0], [0], [1], [0, 0, 1, 1], [], []>} : vector<4x128xbf16>, vector<128x16xbf16>, vector<4x16xf32> -> vector<4x16xf32>
    %97 = vector.broadcast %91 : vector<1x16xf32> to vector<4x16xf32>
    %98 = arith.addf %96, %97 : vector<4x16xf32>
    %cst_76 = arith.constant dense<0xFF800000> : vector<4xf32>
    %99 = vector.multi_reduction <maximumf>, %98, %cst_76 [1] : vector<4x16xf32> to vector<4xf32>
    %100 = vector.shape_cast %99 : vector<4xf32> to vector<4x1xf32>
    %101 = vector.broadcast %100 : vector<4x1xf32> to vector<4x16xf32>
    %102 = arith.subf %98, %101 : vector<4x16xf32>
    %103 = math.exp %102 : vector<4x16xf32>
    %cst_77 = arith.constant dense<0.000000e+00> : vector<4x16xf32>
    %104 = tpu.matmul %103, %94, %cst_77 {dimension_numbers = #tpu.dot_dimension_numbers<[1], [0], [0], [1], [0, 0, 1, 1], [], []>} : vector<4x16xf32>, vector<16x16xf32>, vector<4x16xf32> -> vector<4x16xf32>
    %105 = tpu.reciprocal %104 {approx = true} : vector<4x16xf32> -> vector<4x16xf32>
    %106 = arith.mulf %103, %105 : vector<4x16xf32>
    %107 = arith.truncf %106 : vector<4x16xf32> to vector<4x16xbf16>
    %cst_78 = arith.constant dense<0.000000e+00> : vector<4x128xf32>
    %108 = tpu.matmul %107, %93, %cst_78 {dimension_numbers = #tpu.dot_dimension_numbers<[1], [0], [0], [1], [0, 0, 1, 1], [], []>} : vector<4x16xbf16>, vector<16x128xbf16>, vector<4x128xf32> -> vector<4x128xf32>
    %109 = arith.truncf %108 : vector<4x128xf32> to vector<4x128xbf16>
    %110 = vector.extract_strided_slice %109 {offsets = [0, 0], sizes = [1, 128], strides = [1, 1]} : vector<4x128xbf16> to vector<1x128xbf16>
    %c0_79 = arith.constant 0 : index
    %c0_80 = arith.constant 0 : index
    %111 = vector.load %arg16[%c0_79, %c0_80] : memref<512x128xbf16, #tpu.memory_space<vmem>>, vector<128x128xbf16>
    %cst_81 = arith.constant dense<0.000000e+00> : vector<1x128xf32>
    %112 = tpu.matmul %110, %111, %cst_81 {dimension_numbers = #tpu.dot_dimension_numbers<[1], [0], [0], [1], [0, 0, 1, 1], [], []>} : vector<1x128xbf16>, vector<128x128xbf16>, vector<1x128xf32> -> vector<1x128xf32>
    %113 = arith.addf %95, %112 : vector<1x128xf32>
    %114 = vector.extract_strided_slice %109 {offsets = [1, 0], sizes = [1, 128], strides = [1, 1]} : vector<4x128xbf16> to vector<1x128xbf16>
    %c128_82 = arith.constant 128 : index
    %c0_83 = arith.constant 0 : index
    %115 = vector.load %arg16[%c128_82, %c0_83] : memref<512x128xbf16, #tpu.memory_space<vmem>>, vector<128x128xbf16>
    %cst_84 = arith.constant dense<0.000000e+00> : vector<1x128xf32>
    %116 = tpu.matmul %114, %115, %cst_84 {dimension_numbers = #tpu.dot_dimension_numbers<[1], [0], [0], [1], [0, 0, 1, 1], [], []>} : vector<1x128xbf16>, vector<128x128xbf16>, vector<1x128xf32> -> vector<1x128xf32>
    %117 = arith.addf %113, %116 : vector<1x128xf32>
    %118 = vector.extract_strided_slice %109 {offsets = [2, 0], sizes = [1, 128], strides = [1, 1]} : vector<4x128xbf16> to vector<1x128xbf16>
    %c256_85 = arith.constant 256 : index
    %c0_86 = arith.constant 0 : index
    %119 = vector.load %arg16[%c256_85, %c0_86] : memref<512x128xbf16, #tpu.memory_space<vmem>>, vector<128x128xbf16>
    %cst_87 = arith.constant dense<0.000000e+00> : vector<1x128xf32>
    %120 = tpu.matmul %118, %119, %cst_87 {dimension_numbers = #tpu.dot_dimension_numbers<[1], [0], [0], [1], [0, 0, 1, 1], [], []>} : vector<1x128xbf16>, vector<128x128xbf16>, vector<1x128xf32> -> vector<1x128xf32>
    %121 = arith.addf %117, %120 : vector<1x128xf32>
    %122 = vector.extract_strided_slice %109 {offsets = [3, 0], sizes = [1, 128], strides = [1, 1]} : vector<4x128xbf16> to vector<1x128xbf16>
    %c384_88 = arith.constant 384 : index
    %c0_89 = arith.constant 0 : index
    %123 = vector.load %arg16[%c384_88, %c0_89] : memref<512x128xbf16, #tpu.memory_space<vmem>>, vector<128x128xbf16>
    %cst_90 = arith.constant dense<0.000000e+00> : vector<1x128xf32>
    %124 = tpu.matmul %122, %123, %cst_90 {dimension_numbers = #tpu.dot_dimension_numbers<[1], [0], [0], [1], [0, 0, 1, 1], [], []>} : vector<1x128xbf16>, vector<128x128xbf16>, vector<1x128xf32> -> vector<1x128xf32>
    %125 = arith.addf %121, %124 : vector<1x128xf32>
    %c0_91 = arith.constant 0 : index
    %c0_92 = arith.constant 0 : index
    %c0_93 = arith.constant 0 : index
    %126 = vector.load %arg20[%c0_91, %c0_92, %c0_93] : memref<1x1x128xf32, #tpu.memory_space<vmem>>, vector<1x1x128xf32>
    %127 = vector.shape_cast %126 : vector<1x1x128xf32> to vector<1x128xf32>
    %128 = vector.shape_cast %125 : vector<1x128xf32> to vector<1x1x128xf32>
    tpu.vector_store %arg20[%c0_91, %c0_92, %c0_93], %128 {strides = array<i32>} : memref<1x1x128xf32, #tpu.memory_space<vmem>>, vector<1x1x128xf32>,
    return
  }
  func.func @transform_0(%arg0: i32) -> (i32, i32, i32) {
    %c0_i32 = arith.constant 0 : i32
    %c0_i32_0 = arith.constant 0 : i32
    %c0_i32_1 = arith.constant 0 : i32
    return %arg0, %c0_i32, %c0_i32_0 : i32, i32, i32
  }
  func.func @transform_1(%arg0: i32) -> (i32, i32, i32) {
    %c0_i32 = arith.constant 0 : i32
    %c0_i32_0 = arith.constant 0 : i32
    %c0_i32_1 = arith.constant 0 : i32
    return %arg0, %c0_i32, %c0_i32_0 : i32, i32, i32
  }
  func.func @transform_2(%arg0: i32) -> (i32, i32, i32) {
    %c0_i32 = arith.constant 0 : i32
    %c0_i32_0 = arith.constant 0 : i32
    %c0_i32_1 = arith.constant 0 : i32
    return %arg0, %c0_i32, %c0_i32_0 : i32, i32, i32
  }
  func.func @transform_3(%arg0: i32) -> (i32, i32, i32) {
    %c0_i32 = arith.constant 0 : i32
    %c0_i32_0 = arith.constant 0 : i32
    %c0_i32_1 = arith.constant 0 : i32
    return %arg0, %c0_i32, %c0_i32_0 : i32, i32, i32
  }
  func.func @transform_4(%arg0: i32) -> (i32, i32) {
    %c0_i32 = arith.constant 0 : i32
    %c0_i32_0 = arith.constant 0 : i32
    %c0_i32_1 = arith.constant 0 : i32
    return %c0_i32, %c0_i32_0 : i32, i32
  }
  func.func @transform_5(%arg0: i32) -> (i32, i32) {
    %c0_i32 = arith.constant 0 : i32
    %c0_i32_0 = arith.constant 0 : i32
    %c0_i32_1 = arith.constant 0 : i32
    return %c0_i32, %c0_i32_0 : i32, i32
  }
  func.func @transform_6(%arg0: i32) -> (i32, i32) {
    %c0_i32 = arith.constant 0 : i32
    %c0_i32_0 = arith.constant 0 : i32
    %c0_i32_1 = arith.constant 0 : i32
    return %c0_i32, %c0_i32_0 : i32, i32
  }
  func.func @transform_7(%arg0: i32) -> (i32, i32, i32) {
    %c0_i32 = arith.constant 0 : i32
    %c0_i32_0 = arith.constant 0 : i32
    %c0_i32_1 = arith.constant 0 : i32
    return %arg0, %c0_i32, %c0_i32_0 : i32, i32, i32
  }
  func.func @transform_8(%arg0: i32) -> (i32, i32, i32) {
    %c0_i32 = arith.constant 0 : i32
    %c0_i32_0 = arith.constant 0 : i32
    %c0_i32_1 = arith.constant 0 : i32
    return %arg0, %c0_i32, %c0_i32_0 : i32, i32, i32
  }
  func.func @transform_9(%arg0: i32) -> (i32, i32, i32) {
    %c0_i32 = arith.constant 0 : i32
    %c0_i32_0 = arith.constant 0 : i32
    %c0_i32_1 = arith.constant 0 : i32
    return %arg0, %c0_i32, %c0_i32_0 : i32, i32, i32
  }
  func.func @transform_10(%arg0: i32) -> (i32, i32) {
    %c0_i32 = arith.constant 0 : i32
    %c0_i32_0 = arith.constant 0 : i32
    %c0_i32_1 = arith.constant 0 : i32
    return %c0_i32, %c0_i32_0 : i32, i32
  }
  func.func @transform_11(%arg0: i32) -> (i32, i32, i32) {
    %c0_i32 = arith.constant 0 : i32
    %c0_i32_0 = arith.constant 0 : i32
    %c0_i32_1 = arith.constant 0 : i32
    return %arg0, %c0_i32, %c0_i32_0 : i32, i32, i32
  }
  func.func @transform_12(%arg0: i32) -> (i32, i32, i32) {
    %c0_i32 = arith.constant 0 : i32
    %c0_i32_0 = arith.constant 0 : i32
    %c0_i32_1 = arith.constant 0 : i32
    return %arg0, %c0_i32, %c0_i32_0 : i32, i32, i32
  }
  func.func @transform_13(%arg0: i32) -> (i32, i32, i32) {
    %c0_i32 = arith.constant 0 : i32
    %c0_i32_0 = arith.constant 0 : i32
    %c0_i32_1 = arith.constant 0 : i32
    return %arg0, %c0_i32, %c0_i32_0 : i32, i32, i32
  }
  func.func @transform_14(%arg0: i32) -> (i32, i32) {
    %c0_i32 = arith.constant 0 : i32
    %c0_i32_0 = arith.constant 0 : i32
    %c0_i32_1 = arith.constant 0 : i32
    return %c0_i32, %c0_i32_0 : i32, i32
  }
  func.func @transform_15(%arg0: i32) -> (i32, i32) {
    %c0_i32 = arith.constant 0 : i32
    %c0_i32_0 = arith.constant 0 : i32
    %c0_i32_1 = arith.constant 0 : i32
    return %c0_i32, %c0_i32_0 : i32, i32
  }
  func.func @transform_16(%arg0: i32) -> (i32, i32) {
    %c0_i32 = arith.constant 0 : i32
    %c0_i32_0 = arith.constant 0 : i32
    %c0_i32_1 = arith.constant 0 : i32
    return %c0_i32, %c0_i32_0 : i32, i32
  }
  func.func @transform_17(%arg0: i32) -> (i32, i32, i32) {
    %c0_i32 = arith.constant 0 : i32
    %c0_i32_0 = arith.constant 0 : i32
    %c0_i32_1 = arith.constant 0 : i32
    return %arg0, %c0_i32, %c0_i32_0 : i32, i32, i32
  }
  func.func @transform_18(%arg0: i32) -> (i32, i32, i32) {
    %c0_i32 = arith.constant 0 : i32
    %c0_i32_0 = arith.constant 0 : i32
    %c0_i32_1 = arith.constant 0 : i32
    return %arg0, %c0_i32, %c0_i32_0 : i32, i32, i32
  }
  func.func @transform_19(%arg0: i32) -> (i32, i32, i32) {
    %c0_i32 = arith.constant 0 : i32
    %c0_i32_0 = arith.constant 0 : i32
    %c0_i32_1 = arith.constant 0 : i32
    return %arg0, %c0_i32, %c0_i32_0 : i32, i32, i32
  }
}

</mosaic_0001>

<bundles_post_ra>
// kernel: vsg_forward.2
= control target key start
LH: loop header
LB: loop body
LE: loop exit
PB: predicated region body
PF: predicated region fallthrough
CT: control target
= control target key end

     0   :  { %s3825_s0 = inlined_call_operand.hbm [shape: f32[128,4096], index: 0, kind: input, shape index: {}]   ;;  %s3826_s1 = inlined_call_operand.hbm [shape: bf16[4096,128], index: 1, kind: input, shape index: {}]   ;;  %s3827_s2 = inlined_call_operand.hbm [shape: f32[1,128], index: 2, kind: input, shape index: {}]   ;;  %s3828_s3 = inlined_call_operand.vmem [shape: bf16[128,128], index: 3, kind: output, shape index: {}]  }
   0x1   :  { %3841 = sst [smem:[#allocation33_spill]] %s3825_s0 }
   0x2   :  { %3842 = sst [smem:[#allocation34_spill]] %s3827_s2 }
   0x3   :  { %3843 = sst [smem:[#allocation35_spill]] %s3828_s3 }
   0x4   :  { %8 = vsyncpa [#allocation4], 0 }
   0x5   :  { %10 = vsyncpa [#allocation4 + $0x1], 0 }
   0x6   :  { %11 = vsyncpa [#allocation6], 0 }
   0x7   :  { %13 = vsyncpa [#allocation6 + $0x1], 0  ;;  %s3187_s12 = smov 0   ;;  %s3189_s13 = smov 0  }
   0x8   :  { %s3191_s14 = smov 0   ;;  %s3193_s15 = smov 0  }
   0x9   :  { %s3195_s16 = smov 0   ;;  %s3197_s17 = smov 0  }
   0xa   :  { %s3199_s18 = smov 0   ;;  %s3201_s19 = smov 0  }
   0xb   :  { %s3203_s20 = smov 0   ;;  %s3205_s21 = smov 0  }
   0xc   :  { %s3207_s22 = smov 0  }
   0xd LB: > { %3844 = sst [smem:[#allocation11_spill]] %s3120_s13  ;;  %s3834_s23 = sadd.s32 4294967295, %s3156_s22   ;;  %s3156_s22 = sphi %s3207_s22, %s19_s22   ;;  %s3152_s21 = sphi %s3205_s21, %s3917_s21   ;;  %s3148_s20 = sphi %s3203_s20, %s3916_s20   ;;  %s3144_s19 = sphi %s3201_s19, %s3915_s19   ;;  %s3140_s18 = sphi %s3199_s18, %s3914_s18   ;;  %s3136_s17 = sphi %s3197_s17, %s3913_s17   ;;  %s3132_s16 = sphi %s3195_s16, %s3912_s16   ;;  %s3128_s15 = sphi %s3193_s15, %s3911_s15   ;;  %s3124_s14 = sphi %s3191_s14, %s3910_s14   ;;  %s3120_s13 = sphi %s3189_s13, %s3909_s13   ;;  %s3116_s12 = sphi %s3187_s12, %s3905_s12  }
   0xe   : > { %3845 = sst [smem:[#allocation12_spill]] %s3140_s18  ;;  %p47_p0 = scmp.ne.s32.totalorder %s3136_s17, %s3132_s16 }
   0xf   : > { %3846 = sst [smem:[#allocation13_spill]] %s3144_s19  ;;  %p48_p1 = scmp.eq.s32.totalorder %s3156_s22, 0 }
  0x10   : > { %p53_p2 = scmp.ne.s32.totalorder %s3132_s16, %s3128_s15  ;;  %p3246_p3 = scmp.eq.s32.totalorder %s3834_s23, 0 }
  0x11   : > { %p3250_p4 = por %p48_p1, %p47_p0  ;;  %s66_s27 = sadd.s32 1, %s3124_s14 }
  0x12   : > { %s3847_s25 = scalar_select %p3246_p3, 1, 0 }
  0x13   : > { %p3257_p5 = por %p3246_p3, %p53_p2  ;;  %p73_p6 = scmp.ne.s32.totalorder %s3124_s14, %s3120_s13 }
  0x14   : > { %3848 = sst [smem:[#allocation14_spill]] %s3847_s25  ;;  %p79_p7 = scmp.ne.s32.totalorder %s3120_s13, %s3116_s12 }
  0x15   : > { %s3850_s28 = scalar_select %p3257_p5, 1, 0 }
  0x16   : > { %p2220_p8 = scmp.ge.s32.totalorder %s3156_s22, 1  ;;  %p75_p9 = por %p73_p6, %p48_p1 }
  0x17   : > { %p137_p10 = scmp.lt.s32.totalorder %s3156_s22, 5  ;;  %p3268_p11 = por %p79_p7, %p3246_p3 }
  0x18   : > { %s3158_s4 = smov [#allocation7]   ;;  %p2751_p0 = scmp.lt.s32.totalorder %s3156_s22, 4 }
  0x19   : > { %s3851_s29 = scalar_select %p3268_p11, 1, 0 }
  0x1a   : > { %p3272_p12 = pnand %p2220_p8, %p137_p10  ;;  %s150_s5 = sshll.u32 %s3158_s4, 4  ;;  %s151_s5 = int_to_ptr.vmem [resolvable:$true] %s150_s5 }
  0x1b   : > { %3852 = sst [smem:[#allocation15_spill]] %s3851_s29  ;;  %p3287_p1 = pnand %p2751_p0, %p3250_p4 }
  0x1c   : > { %s3853_s30 = scalar_select %p3272_p12, 1, 0 }
  0x1d   : > { %p2739_p13 = pneg %p3272_p12  ;;  %p3291_p6 = pnand %p2751_p0, %p75_p9 }
  0x1e   : > { %s2987_s9 = scalar_lea.vmem %s151_s5, 16  ;;  %s2994_s10 = scalar_lea.vmem %s151_s5, 32 }
  0x1f   : > { %p3281_p2 = pnand %p2739_p13, %p3246_p3  ;;  %p2988_p8 = scmp.ne.s32.totalorder %s151_s5, %s2987_s9 }
  0x20   : > { %p2995_p13 = scmp.lt.s32.totalorder %s151_s5, %s151_s5  ;;  %p2996_p3 = scmp.lt.s32.totalorder %s2994_s10, %s2987_s9 }
  0x21   : > { %p2978_p7 = pneg %p3281_p2 }
  0x22   : > { %p2997_p5 = por %p2996_p3, %p2995_p13 }
  0x23   : > { %p2990_p10 = pnand %p2988_p8, %p2978_p7 }
  0x25   : > { %p2991_p11 = pneg %p2990_p10 }
  0x27   : > { %p2998_p12 = pnand %p2997_p5, %p2991_p11 }
  0x29   : > { %3001 = shalt.err (!%p2998_p12)
}
  0x2a   : > { %s3857_s2 = sld [smem:[#allocation34_spill]]  ;;  %s31_s15 = sadd.s32 1, %s3152_s21 }
  0x2b   : > { %s28_s26 = sadd.s32 1, %s3148_s20  ;;  %s161_s4 = sand.u32 1, %s3136_s17  }
  0x2c   : > { %p29_p3 = scmp.ge.s32.totalorder %s28_s26, 2  ;;  %s2223_s9 = sshll.u32 %s161_s4, 10 }
  0x2d   : > { %s2225_s6 = sshll.u32 %s3148_s20, 4  ;;  %s165_s11 = scalar_lea.vmem [#allocation3], %s2223_s9 }
  0x2e   : > { %s3919_s26 = smov (%p29_p3, %s28_s26), 0  ;;  %s3921_s15 = smov (!%p29_p3, %s31_s15), %s3152_s21 }
  0x2f   : > { %3858 = sst [smem:[#allocation16_spill]] %s3919_s26  ;;  %s36_s10 = ssub.s32 %s3148_s20, %s3919_s26 }
  0x30   : > { %2742 = dma.hbm_to_vmem [thread:$0]  (!%p3281_p2), %s3857_s2, 16, %s151_s5, [#allocation6]  }
  0x31   : > { %p33_p4 = scmp.ge.s32.totalorder %s3921_s15, 2  ;;  %p64_p5 = scmp.eq.s32.totalorder %s36_s10, 0 }
  0x32   : > { %s2378_s5 = sshll.u32 %s3152_s21, 8  ;;  %s175_s12 = sshll.u32 %s165_s11, 4  ;;  %s176_s12 = int_to_ptr.vmem [resolvable:$true] %s175_s12 }
  0x33   : > { %s3923_s15 = smov (%p33_p4, %s3921_s15), 0  ;;  %s172_s2 = sadd.s32 %s2378_s5, %s2225_s6 }
  0x34   : > { %s3317_s23 = scalar_select %p64_p5, %s3124_s14, %s66_s27  }
  0x35   : > { %s35_s24 = ssub.s32 %s3152_s21, %s3923_s15  ;;  %s2227_s3 = sshll.u32 %s172_s2, 7 }
  0x36   : > { %s37_s18 = sor.u32 %s36_s10, %s35_s24  ;;  %s3859_s0 = sld [smem:[#allocation33_spill]] }
  0x37   : > { %p38_p9 = scmp.eq.s32.totalorder %s37_s18, 0  ;;  %s3860_s29 = sadd.s32 1, %s3136_s17 }
  0x38   : > { %s162_s9 = scalar_lea.sflag [#allocation4], %s161_s4  ;;  %p3004_p11 = pneg %p3287_p1 }
  0x39   : > { %s3327_s13 = scalar_select %p38_p9, %s3136_s17, %s3860_s29  }
  0x3a   : > { %s3015_s11 = scalar_lea.vmem %s176_s12, 16384  ;;  %s3159_s27 = smov [#allocation3]  }
  0x3b   : > { %p3016_p12 = scmp.ne.s32.totalorder %s176_s12, %s3015_s11  ;;  %s3020_s6 = sshll.u32 %s3159_s27, 4  ;;  %s3021_s6 = int_to_ptr.vmem [resolvable:$false] %s3020_s6 }
  0x3c   : > { %s174_s26 = scalar_lea.hbm %s3859_s0, %s2227_s3  ;;  %s3022_s2 = scalar_lea.vmem %s3021_s6, 32768 }
  0x3d   : > { %p3018_p0 = pnand %p3016_p12, %p3004_p11  ;;  %p3023_p7 = scmp.lt.s32.totalorder %s176_s12, %s3021_s6 }
  0x3e   : > { %p3024_p8 = scmp.lt.s32.totalorder %s3022_s2, %s3015_s11 }
  0x3f   : > { %p3019_p2 = pneg %p3018_p0 }
  0x40   : > { %p3025_p10 = por %p3024_p8, %p3023_p7 }
  0x42   : > { %p3026_p13 = pnand %p3025_p10, %p3019_p2 }
  0x44   : > { %3029 = shalt.err (!%p3026_p13)
}
  0x45   : > { %s3160_s3 = smov 4096   ;;  %s3161_s18 = smov 2048  }
  0x46   : > { %s3162_s19 = smov 128   ;;  %s185_s24 = sand.u32 1, %s3156_s22  }
  0x47   : > { %2746 = dma.hbm_to_vmem [thread:$0]  (!%p3287_p1), %s174_s26, 16384, %s176_s12, %s162_s9, %s3160_s3, %s3161_s18, %s3162_s19  }
  0x48   : > { %s187_s25 = sand.u32 1, %s3124_s14   ;;  %s2379_s4 = sshll.u32 %s3148_s20, 14 }
  0x49   : > { %s2228_s29 = sshll.u32 %s187_s25, 10  ;;  %s195_s11 = scalar_lea.hbm %s3826_s1, %s2379_s4 }
  0x4a   : > { %s189_s27 = scalar_lea.vmem [#allocation5], %s2228_s29  ;;  %s186_s2 = scalar_lea.sflag [#allocation6], %s185_s24 }
  0x4b   : > { %s196_s6 = sshll.u32 %s189_s27, 4  ;;  %p3032_p3 = pneg %p3291_p6  ;;  %s197_s6 = int_to_ptr.vmem [resolvable:$true] %s196_s6 }
  0x4c   : > { %s3043_s0 = scalar_lea.vmem %s197_s6, 16384  ;;  %s3163_s7 = smov [#allocation5]  }
  0x4d   : > { %p3044_p4 = scmp.ne.s32.totalorder %s197_s6, %s3043_s0  ;;  %s3048_s26 = sshll.u32 %s3163_s7, 4  ;;  %s3049_s26 = int_to_ptr.vmem [resolvable:$false] %s3048_s26 }
  0x4e   : > { %s3050_s12 = scalar_lea.vmem %s3049_s26, 32768  ;;  %p3051_p1 = scmp.lt.s32.totalorder %s197_s6, %s3049_s26 }
  0x4f   : > { %p3046_p5 = pnand %p3044_p4, %p3032_p3  ;;  %p3052_p11 = scmp.lt.s32.totalorder %s3050_s12, %s3043_s0 }
  0x51   : > { %p3047_p9 = pneg %p3046_p5  ;;  %p3053_p12 = por %p3052_p11, %p3051_p1 }
  0x53   : > { %p3054_p0 = pnand %p3053_p12, %p3047_p9 }
  0x55   : > { %3057 = shalt.err (!%p3054_p0)
}
  0x56   : > { %s3164_s9 = smov 64   ;;  %s3165_s3 = smov 4  }
  0x57   : > { %2749 = dma.hbm_to_vmem [thread:$0]  (!%p3291_p6), %s195_s11, 16384, %s197_s6, %s186_s2, %s3164_s9, %s3164_s9, %s3165_s3  }
  0x58   : > { %p3861_p2 = scmp.ne.s32.totalorder %s3853_s30, 0 }
  0x5a   : > { %208 = sbr.rel (%p3861_p2) target bundleno = 512 (0x200), region = 32 }
  0x5f   : > { %s210_s18 = sand.u32 1, %s3132_s16   ;;  %p3862_p7 = scmp.ne.s32.totalorder %s3850_s28, 0 }
  0x60   : > { %s2232_s19 = sshll.u32 %s210_s18, 10  ;;  %s211_s24 = scalar_lea.sflag [#allocation4], %s210_s18 }
  0x61   : > { %s3346_s25 = scalar_lea.vmem [#allocation3], %s2232_s19 }
  0x62   : > { %3103 = dma.done.wait (%p3862_p7), %s211_s24, 16384  }
  0x63   : > { %3105 = vsyncadd (%p3862_p7), %s211_s24, 4294950912  ;;  %s3863_s0 = sadd.s32 4294967295, %s3156_s22   ;;  %s3864_s29 = sld [smem:[#allocation11_spill]] }
  0x64   : > { %s3865_s8 = sld [smem:[#allocation15_spill]]  ;;  %s219_s4 = sand.u32 1, %s3863_s0  }
  0x65   : > { %s220_s5 = scalar_lea.sflag [#allocation6], %s219_s4 }
  0x69   : > { %s221_s10 = sand.u32 1, %s3864_s29  }
  0x6a   : > { %s2233_s30 = sshll.u32 %s221_s10, 10  ;;  %p3866_p6 = scmp.ne.s32.totalorder %s3865_s8, 0 }
  0x6b   : > { %s3355_s11 = scalar_lea.vmem [#allocation5], %s2233_s30 }
  0x6c   : > { %3107 = dma.done.wait (%p3866_p6), %s220_s5, 16384  }
  0x6d   : > { %3109 = vsyncadd (%p3866_p6), %s220_s5, 4294950912  ;;  %s3867_s27 = sld [smem:[#allocation14_spill]] }
  0x73   : > { %p3868_p8 = scmp.ne.s32.totalorder %s3867_s27, 0 }
  0x75   : > { %3111 = dma.done.wait (%p3868_p8), [#allocation6], 16  }
  0x76   : > { %3113 = vsyncadd (%p3868_p8), [#allocation6], 4294967280  ;;  %s3869_s28 = sld [smem:[#allocation13_spill]] }
  0x77   : > { %s3870_s12 = sld [smem:[#allocation35_spill]] }
  0x78   : > { %s3871_s3 = sld [smem:[#allocation12_spill]] }
  0x7c   : > { %s2235_s6 = sshll.u32 %s3869_s28, 3 }
  0x7d   : > { %p259_p10 = scmp.lt.s32.totalorder %s2235_s6, 15 }
  0x7e   : > { %p2237_p13 = scmp.ne.s32.totalorder %s3871_s3, 0 }
  0x7f   : > { %s3925_s6 = smov (!%p259_p10, %s2235_s6), 15 }
  0x80   : > { %s2236_s2 = sshll.u32 %s3925_s6, 2  ;;  %268 = sbr.rel (%p2237_p13) target bundleno = 138 (0x8a), region = 48 }
  0x81   : > { %s3369_s9 = scalar_lea.vmem %s3870_s12, %s2236_s2 }
  0x85   : > { %v3166_v0 = vmov 0.0  }
  0x86   : > { %269 = vst [vmem:[#allocation2 + $0x30] sm:$0xff] %v3166_v0  ;;  %270 = vst [vmem:[#allocation2] sm:$0xff] %v3166_v0 }
  0x87   : > { %271 = vst [vmem:[#allocation2 + $0x18] sm:$0xff] %v3166_v0  ;;  %272 = vst [vmem:[#allocation2 + $0x10] sm:$0xff] %v3166_v0 }
  0x88   : > { %273 = vst [vmem:[#allocation2 + $0x8] sm:$0xff] %v3166_v0  ;;  %274 = vst [vmem:[#allocation2 + $0x20] sm:$0xff] %v3166_v0 }
  0x89   : > { %275 = vst [vmem:[#allocation2 + $0x28] sm:$0xff] %v3166_v0  ;;  %276 = vst [vmem:[#allocation2 + $0x38] sm:$0xff] %v3166_v0 }
  0x8a PF: > { %v2848_v1 = vld [vmem:[%s3355_s11 + $0x78] sm:$0xff]   ;;  %v2852_v5 = vld [vmem:[%s3355_s11 + $0x70] sm:$0xff]   ;;  %v2856_v9 = vld [vmem:[%s3355_s11 + $0x68] sm:$0xff]   ;;  %s3904_s18 = sld [smem:[#allocation12_spill]] }
  0x8b   : > { %v2849_v2 = vld [vmem:[%s3355_s11 + $0xf8] sm:$0xff]   ;;  %2411 = vmatprep.subr.bf16.mxu0 %v2848_v1  ;;  %v2853_v6 = vld [vmem:[%s3355_s11 + $0xf0] sm:$0xff]   ;;  %v2857_v10 = vld [vmem:[%s3355_s11 + $0xe8] sm:$0xff]  }
  0x8c   : > { %v2850_v3 = vld [vmem:[%s3355_s11 + $0x38] sm:$0xff]   ;;  %2451 = vmatprep.subr.bf16.mxu1 %v2849_v2  ;;  %v2854_v7 = vld [vmem:[%s3355_s11 + $0x30] sm:$0xff]   ;;  %v2858_v11 = vld [vmem:[%s3355_s11 + $0x28] sm:$0xff]  }
  0x8d   : > { %v2851_v4 = vld [vmem:[%s3355_s11 + $0xb8] sm:$0xff]   ;;  %2412 = vmatpush3.bf16.msra.mxu0 %v2850_v3  ;;  %v2855_v8 = vld [vmem:[%s3355_s11 + $0xb0] sm:$0xff]   ;;  %v2859_v12 = vld [vmem:[%s3355_s11 + $0xa8] sm:$0xff]  }
  0x8e   : > { %2452 = vmatpush3.bf16.msra.mxu1 %v2851_v4  ;;  %2413 = vmatprep.subr.bf16.mxu0 %v2852_v5  ;;  %v2860_v13 = vld [vmem:[%s3355_s11 + $0x60] sm:$0xff]   ;;  %v2864_v17 = vld [vmem:[%s3355_s11 + $0x58] sm:$0xff]   ;;  %v2868_v21 = vld [vmem:[%s3355_s11 + $0x50] sm:$0xff]  }
  0x8f   : > { %2453 = vmatprep.subr.bf16.mxu1 %v2853_v6  ;;  %v2861_v14 = vld [vmem:[%s3355_s11 + $0xe0] sm:$0xff]   ;;  %v2865_v18 = vld [vmem:[%s3355_s11 + $0xd8] sm:$0xff]   ;;  %v2869_v22 = vld [vmem:[%s3355_s11 + $0xd0] sm:$0xff]  }
  0x90   : > { %v2862_v15 = vld [vmem:[%s3355_s11 + $0x20] sm:$0xff]   ;;  %v2866_v19 = vld [vmem:[%s3355_s11 + $0x18] sm:$0xff]   ;;  %v2870_v23 = vld [vmem:[%s3355_s11 + $0x10] sm:$0xff]   ;;  %p2366_p3 = scmp.ne.s32.totalorder %s3904_s18, 1 }
  0x91   : > { %2414 = vmatpush3.bf16.msra.mxu0 %v2854_v7  ;;  %v2863_v16 = vld [vmem:[%s3355_s11 + $0xa0] sm:$0xff]   ;;  %v2867_v20 = vld [vmem:[%s3355_s11 + $0x98] sm:$0xff]   ;;  %v2871_v24 = vld [vmem:[%s3355_s11 + $0x90] sm:$0xff]  }
  0x92   : > { %2454 = vmatpush3.bf16.msra.mxu1 %v2855_v8  ;;  %2415 = vmatprep.subr.bf16.mxu0 %v2856_v9  ;;  %v2872_v25 = vld [vmem:[%s3355_s11 + $0x48] sm:$0xff]   ;;  %v2876_v29 = vld [vmem:[%s3355_s11 + $0x40] sm:$0xff]   ;;  %v288_v35 = vld [vmem:[%s3346_s25 + $0x18] sm:$0xff] }
  0x93   : > { %2455 = vmatprep.subr.bf16.mxu1 %v2857_v10  ;;  %v2873_v26 = vld [vmem:[%s3355_s11 + $0xc8] sm:$0xff]   ;;  %v2877_v30 = vld [vmem:[%s3355_s11 + $0xc0] sm:$0xff]   ;;  %v304_v37 = vld [vmem:[%s3346_s25 + $0x98] sm:$0xff] }
  0x94   : > { %v2874_v27 = vld [vmem:[%s3355_s11 + $0x8] sm:$0xff]   ;;  %v2878_v31 = vld [vmem:[%s3355_s11] sm:$0xff]   ;;  %v416_v40 = vpack.c.bf16 %v304_v37, %v288_v35  ;;  %v287_v42 = vld [vmem:[%s3346_s25 + $0x10] sm:$0xff] }
  0x95   : > { %2416 = vmatpush3.bf16.msra.mxu0 %v2858_v11  ;;  %v2875_v28 = vld [vmem:[%s3355_s11 + $0x88] sm:$0xff]   ;;  %v2879_v32 = vld [vmem:[%s3355_s11 + $0x80] sm:$0xff]   ;;  %v303_v43 = vld [vmem:[%s3346_s25 + $0x90] sm:$0xff] }
  0x96   : > { %2456 = vmatpush3.bf16.msra.mxu1 %v2859_v12  ;;  %2417 = vmatprep.subr.bf16.mxu0 %v2860_v13  ;;  %v286_v33 = vld [vmem:[%s3346_s25 + $0x8] sm:$0xff]  ;;  %v285_v38 = vld [vmem:[%s3346_s25] sm:$0xff]  ;;  %v415_v44 = vpack.c.bf16 %v303_v43, %v287_v42  ;;  %v2880_v45 = vld [vmem:[%s3355_s11 + $0x178] sm:$0xff]  }
  0x97   : > { %2457 = vmatprep.subr.bf16.mxu1 %v2861_v14  ;;  %v302_v34 = vld [vmem:[%s3346_s25 + $0x88] sm:$0xff]  ;;  %v301_v39 = vld [vmem:[%s3346_s25 + $0x80] sm:$0xff]  ;;  %1598 = vmatprep.mubr.bf16.mxu1 %v416_v40  ;;  %v2881_v46 = vld [vmem:[%s3355_s11 + $0x1f8] sm:$0xff]  }
  0x98   : > { %v414_v36 = vpack.c.bf16 %v302_v34, %v286_v33  ;;  %v413_v41 = vpack.c.bf16 %v301_v39, %v285_v38  ;;  %v2882_v47 = vld [vmem:[%s3355_s11 + $0x138] sm:$0xff]   ;;  %v2884_v49 = vld [vmem:[%s3355_s11 + $0x170] sm:$0xff]   ;;  %v318_v53 = vld [vmem:[%s3346_s25 + $0x108] sm:$0xff] }
  0x99   : > { %2418 = vmatpush3.bf16.msra.mxu0 %v2862_v15  ;;  %v2883_v48 = vld [vmem:[%s3355_s11 + $0x1b8] sm:$0xff]   ;;  %v2885_v50 = vld [vmem:[%s3355_s11 + $0x1f0] sm:$0xff]   ;;  %v334_v54 = vld [vmem:[%s3346_s25 + $0x188] sm:$0xff] }
  0x9a   : > { %2458 = vmatpush3.bf16.msra.mxu1 %v2863_v16  ;;  %2419 = vmatprep.subr.bf16.mxu0 %v2864_v17  ;;  %v2886_v51 = vld [vmem:[%s3355_s11 + $0x130] sm:$0xff]   ;;  %v320_v55 = vld [vmem:[%s3346_s25 + $0x118] sm:$0xff]  ;;  %v430_v57 = vpack.c.bf16 %v334_v54, %v318_v53  ;;  %v317_v59 = vld [vmem:[%s3346_s25 + $0x100] sm:$0xff] }
  0x9b   : > { %2459 = vmatprep.subr.bf16.mxu1 %v2865_v18  ;;  %1533 = vmatprep.mubr.bf16.mxu0 %v414_v36  ;;  %v2887_v52 = vld [vmem:[%s3355_s11 + $0x1b0] sm:$0xff]   ;;  %v336_v56 = vld [vmem:[%s3346_s25 + $0x198] sm:$0xff]  ;;  %v333_v60 = vld [vmem:[%s3346_s25 + $0x180] sm:$0xff] }
  0x9c   : > { %v432_v58 = vpack.c.bf16 %v336_v56, %v320_v55  ;;  %v319_v61 = vld [vmem:[%s3346_s25 + $0x110] sm:$0xff]  ;;  %v429_v62 = vpack.c.bf16 %v333_v60, %v317_v59  ;;  %v2888_v1 = vld [vmem:[%s3355_s11 + $0x168] sm:$0xff]   ;;  %v2892_v5 = vld [vmem:[%s3355_s11 + $0x160] sm:$0xff]  }
  0x9d   : > { %2420 = vmatpush3.bf16.msra.mxu0 %v2866_v19  ;;  %v335_v63 = vld [vmem:[%s3346_s25 + $0x190] sm:$0xff]  ;;  %v2889_v2 = vld [vmem:[%s3355_s11 + $0x1e8] sm:$0xff]   ;;  %v2893_v6 = vld [vmem:[%s3355_s11 + $0x1e0] sm:$0xff]  }
  0x9e   : > { %2460 = vmatpush3.bf16.msra.mxu1 %v2867_v20  ;;  %2421 = vmatprep.subr.bf16.mxu0 %v2868_v21  ;;  %v431_v0 = vpack.c.bf16 %v335_v63, %v319_v61  ;;  %v2890_v3 = vld [vmem:[%s3355_s11 + $0x128] sm:$0xff]   ;;  %v2894_v7 = vld [vmem:[%s3355_s11 + $0x120] sm:$0xff]   ;;  %v352_v12 = vld [vmem:[%s3346_s25 + $0x218] sm:$0xff] }
  0x9f   : > { %2461 = vmatprep.subr.bf16.mxu1 %v2869_v22  ;;  %v2891_v4 = vld [vmem:[%s3355_s11 + $0x1a8] sm:$0xff]   ;;  %v2895_v8 = vld [vmem:[%s3355_s11 + $0x1a0] sm:$0xff]   ;;  %v368_v13 = vld [vmem:[%s3346_s25 + $0x298] sm:$0xff] }
  0xa0   : > { %v350_v9 = vld [vmem:[%s3346_s25 + $0x208] sm:$0xff]  ;;  %v349_v14 = vld [vmem:[%s3346_s25 + $0x200] sm:$0xff]  ;;  %v448_v15 = vpack.c.bf16 %v368_v13, %v352_v12  ;;  %v351_v17 = vld [vmem:[%s3346_s25 + $0x210] sm:$0xff] }
  0xa1   : > { %2422 = vmatpush3.bf16.msra.mxu0 %v2870_v23  ;;  %v366_v10 = vld [vmem:[%s3346_s25 + $0x288] sm:$0xff]  ;;  %v365_v16 = vld [vmem:[%s3346_s25 + $0x280] sm:$0xff]  ;;  %v367_v18 = vld [vmem:[%s3346_s25 + $0x290] sm:$0xff] }
  0xa2   : > { %2462 = vmatpush3.bf16.msra.mxu1 %v2871_v24  ;;  %2423 = vmatprep.subr.bf16.mxu0 %v2872_v25  ;;  %v446_v11 = vpack.c.bf16 %v366_v10, %v350_v9  ;;  %v445_v19 = vpack.c.bf16 %v365_v16, %v349_v14  ;;  %v447_v20 = vpack.c.bf16 %v367_v18, %v351_v17  ;;  %v2896_v21 = vld [vmem:[%s3355_s11 + $0x158] sm:$0xff]   ;;  %v2900_v25 = vld [vmem:[%s3355_s11 + $0x150] sm:$0xff]   ;;  %v381_v34 = vld [vmem:[%s3346_s25 + $0x300] sm:$0xff] }
  0xa3   : > { %2463 = vmatprep.subr.bf16.mxu1 %v2873_v26  ;;  %v2897_v22 = vld [vmem:[%s3355_s11 + $0x1d8] sm:$0xff]   ;;  %v2901_v26 = vld [vmem:[%s3355_s11 + $0x1d0] sm:$0xff]   ;;  %v397_v35 = vld [vmem:[%s3346_s25 + $0x380] sm:$0xff] }
  0xa4   : > { %v2898_v23 = vld [vmem:[%s3355_s11 + $0x118] sm:$0xff]   ;;  %v461_v37 = vpack.c.bf16 %v397_v35, %v381_v34  ;;  %v383_v38 = vld [vmem:[%s3346_s25 + $0x310] sm:$0xff]  ;;  %v2905_v42 = vld [vmem:[%s3355_s11 + $0x1c8] sm:$0xff]  }
  0xa5   : > { %2424 = vmatpush3.bf16.msra.mxu0 %v2874_v27  ;;  %v2899_v24 = vld [vmem:[%s3355_s11 + $0x198] sm:$0xff]   ;;  %v2902_v27 = vld [vmem:[%s3355_s11 + $0x110] sm:$0xff]   ;;  %v2906_v43 = vld [vmem:[%s3355_s11 + $0x108] sm:$0xff]  }
  0xa6   : > { %2464 = vmatpush3.bf16.msra.mxu1 %v2875_v28  ;;  %2425 = vmatprep.subr.bf16.mxu0 %v2876_v29  ;;  %v2903_v28 = vld [vmem:[%s3355_s11 + $0x190] sm:$0xff]   ;;  %v382_v29 = vld [vmem:[%s3346_s25 + $0x308] sm:$0xff]  ;;  %v400_v33 = vld [vmem:[%s3346_s25 + $0x398] sm:$0xff] }
  0xa7   : > { %2465 = vmatprep.subr.bf16.mxu1 %v2877_v30  ;;  %v398_v30 = vld [vmem:[%s3346_s25 + $0x388] sm:$0xff]  ;;  %v399_v39 = vld [vmem:[%s3346_s25 + $0x390] sm:$0xff]  ;;  %v289_v55 = vld [vmem:[%s3346_s25 + $0x20] sm:$0xff] }
  0xa8   : > { %v463_v40 = vpack.c.bf16 %v399_v39, %v383_v38  ;;  %v305_v56 = vld [vmem:[%s3346_s25 + $0xa0] sm:$0xff]  ;;  %v307_v59 = vld [vmem:[%s3346_s25 + $0xb0] sm:$0xff]  ;;  %v2912_v61 = vld [vmem:[%s3355_s11 + $0x278] sm:$0xff]  }
  0xa9   : > { %2426 = vmatpush3.bf16.msra.mxu0 %v2878_v31  ;;  %v384_v31 = vld [vmem:[%s3346_s25 + $0x318] sm:$0xff]  ;;  %v321_v10 = vld [vmem:[%s3346_s25 + $0x120] sm:$0xff]  ;;  %v323_v13 = vld [vmem:[%s3346_s25 + $0x130] sm:$0xff] }
  0xaa   : > { %2466 = vmatpush3.bf16.msra.mxu1 %v2879_v32  ;;  %2491 = vmatprep.subr.bf16.mxu0 %v2880_v45  ;;  %v462_v32 = vpack.c.bf16 %v398_v30, %v382_v29  ;;  %v464_v36 = vpack.c.bf16 %v400_v33, %v384_v31  ;;  %v2908_v45 = vld [vmem:[%s3355_s11 + $0x140] sm:$0xff]   ;;  %v2914_v63 = vld [vmem:[%s3355_s11 + $0x238] sm:$0xff]   ;;  %v339_v14 = vld [vmem:[%s3346_s25 + $0x1b0] sm:$0xff] }
  0xab   : > { %2531 = vmatprep.subr.bf16.mxu1 %v2881_v46  ;;  %v2909_v46 = vld [vmem:[%s3355_s11 + $0x1c0] sm:$0xff]   ;;  %v340_v9 = vld [vmem:[%s3346_s25 + $0x1b8] sm:$0xff]  ;;  %v435_v16 = vpack.c.bf16 %v339_v14, %v323_v13  ;;  %v2920_v17 = vld [vmem:[%s3355_s11 + $0x268] sm:$0xff]  }
  0xac   : > { %1534 = vmatmul.mubr.bf16.vlgmr.msra.gmra.mxu0 %v413_v41  ;;  %v2904_v41 = vld [vmem:[%s3355_s11 + $0x148] sm:$0xff]   ;;  %v337_v12 = vld [vmem:[%s3346_s25 + $0x1a0] sm:$0xff]  ;;  %v372_v29 = vld [vmem:[%s3346_s25 + $0x2b8] sm:$0xff] }
  0xad   : > { %1599 = vmatmul.mubr.bf16.vlgmr.msra.gmra.mxu1 %v415_v44  ;;  %2492 = vmatpush3.bf16.msra.mxu0 %v2882_v47  ;;  %v2907_v44 = vld [vmem:[%s3355_s11 + $0x188] sm:$0xff]   ;;  %v2910_v47 = vld [vmem:[%s3355_s11 + $0x100] sm:$0xff]   ;;  %v355_v34 = vld [vmem:[%s3346_s25 + $0x230] sm:$0xff] }
  0xae   : > { %2532 = vmatpush3.bf16.msra.mxu1 %v2883_v48  ;;  %2493 = vmatprep.subr.bf16.mxu0 %v2884_v49  ;;  %v2911_v48 = vld [vmem:[%s3355_s11 + $0x180] sm:$0xff]   ;;  %v290_v49 = vld [vmem:[%s3346_s25 + $0x28] sm:$0xff]  ;;  %v371_v35 = vld [vmem:[%s3346_s25 + $0x2b0] sm:$0xff] }
  0xaf   : > { %2533 = vmatprep.subr.bf16.mxu1 %v2885_v50  ;;  %1541 = vmatprep.mubr.bf16.mxu0 %v430_v57  ;;  %v306_v50 = vld [vmem:[%s3346_s25 + $0xa8] sm:$0xff]  ;;  %v291_v57 = vld [vmem:[%s3346_s25 + $0x30] sm:$0xff]  ;;  %v353_v30 = vld [vmem:[%s3346_s25 + $0x220] sm:$0xff] }
  0xb0   : > { %1606 = vmatprep.mubr.bf16.mxu1 %v432_v58  ;;  %v418_v53 = vpack.c.bf16 %v306_v50, %v290_v49  ;;  %v417_v58 = vpack.c.bf16 %v305_v56, %v289_v55  ;;  %v419_v60 = vpack.c.bf16 %v307_v59, %v291_v57  ;;  %v2921_v18 = vld [vmem:[%s3355_s11 + $0x2e8] sm:$0xff]   ;;  %v369_v31 = vld [vmem:[%s3346_s25 + $0x2a0] sm:$0xff]  ;;  %v2929_v38 = vld [vmem:[%s3355_s11 + $0x2d8] sm:$0xff]  }
  0xb1   : > { %2494 = vmatpush3.bf16.msra.mxu0 %v2886_v51  ;;  %v292_v51 = vld [vmem:[%s3346_s25 + $0x38] sm:$0xff]  ;;  %v449_v33 = vpack.c.bf16 %v369_v31, %v353_v30  ;;  %v403_v55 = vld [vmem:[%s3346_s25 + $0x3b0] sm:$0xff]  ;;  %v2936_v57 = vld [vmem:[%s3355_s11 + $0x248] sm:$0xff]  }
  0xb2   : > { %2534 = vmatpush3.bf16.msra.mxu1 %v2887_v52  ;;  %2495 = vmatprep.subr.bf16.mxu0 %v2888_v1  ;;  %v308_v52 = vld [vmem:[%s3346_s25 + $0xb8] sm:$0xff]  ;;  %v2916_v1 = vld [vmem:[%s3355_s11 + $0x270] sm:$0xff]   ;;  %v2938_v59 = vld [vmem:[%s3355_s11 + $0x208] sm:$0xff]  }
  0xb3   : > { %2535 = vmatprep.subr.bf16.mxu1 %v2889_v2  ;;  %v420_v54 = vpack.c.bf16 %v308_v52, %v292_v51  ;;  %v2917_v2 = vld [vmem:[%s3355_s11 + $0x2f0] sm:$0xff]   ;;  %v2930_v39 = vld [vmem:[%s3355_s11 + $0x218] sm:$0xff]   ;;  %v385_v51 = vld [vmem:[%s3346_s25 + $0x320] sm:$0xff] }
  0xb4   : > { %1542 = vmatmul.mubr.bf16.gmra.mxu0 %v429_v62  ;;  %v2913_v62 = vld [vmem:[%s3355_s11 + $0x2f8] sm:$0xff]   ;;  %v401_v52 = vld [vmem:[%s3346_s25 + $0x3a0] sm:$0xff]  ;;  %v327_v30 = vld [vmem:[%s3346_s25 + $0x150] sm:$0xff] }
  0xb5   : > { %1607 = vmatmul.mubr.bf16.gmra.mxu1 %v431_v0  ;;  %2496 = vmatpush3.bf16.msra.mxu0 %v2890_v3  ;;  %v2915_v0 = vld [vmem:[%s3355_s11 + $0x2b8] sm:$0xff]   ;;  %v2918_v3 = vld [vmem:[%s3355_s11 + $0x230] sm:$0xff]  }
  0xb6   : > { %2536 = vmatpush3.bf16.msra.mxu1 %v2891_v4  ;;  %2497 = vmatprep.subr.bf16.mxu0 %v2892_v5  ;;  %v2919_v4 = vld [vmem:[%s3355_s11 + $0x2b0] sm:$0xff]   ;;  %v322_v5 = vld [vmem:[%s3346_s25 + $0x128] sm:$0xff]  ;;  %v2944_v13 = vld [vmem:[%s3355_s11 + $0x378] sm:$0xff]  }
  0xb7   : > { %2537 = vmatprep.subr.bf16.mxu1 %v2893_v6  ;;  %1549 = vmatprep.mubr.bf16.mxu0 %v446_v11  ;;  %v338_v6 = vld [vmem:[%s3346_s25 + $0x1a8] sm:$0xff]  ;;  %v2945_v14 = vld [vmem:[%s3355_s11 + $0x3f8] sm:$0xff]   ;;  %v343_v31 = vld [vmem:[%s3346_s25 + $0x1d0] sm:$0xff] }
  0xb8   : > { %1614 = vmatprep.mubr.bf16.mxu1 %v448_v15  ;;  %v433_v15 = vpack.c.bf16 %v337_v12, %v321_v10  ;;  %v311_v10 = vld [vmem:[%s3346_s25 + $0xd0] sm:$0xff] }
  0xb9   : > { %2498 = vmatpush3.bf16.msra.mxu0 %v2894_v7  ;;  %v434_v7 = vpack.c.bf16 %v338_v6, %v322_v5  ;;  %v312_v5 = vld [vmem:[%s3346_s25 + $0xd8] sm:$0xff]  ;;  %v293_v6 = vld [vmem:[%s3346_s25 + $0x40] sm:$0xff] }
  0xba   : > { %2538 = vmatpush3.bf16.msra.mxu1 %v2895_v8  ;;  %2499 = vmatprep.subr.bf16.mxu0 %v2896_v21  ;;  %v324_v8 = vld [vmem:[%s3346_s25 + $0x138] sm:$0xff]  ;;  %v2924_v21 = vld [vmem:[%s3355_s11 + $0x260] sm:$0xff]  }
  0xbb   : > { %2539 = vmatprep.subr.bf16.mxu1 %v2897_v22  ;;  %v436_v11 = vpack.c.bf16 %v340_v9, %v324_v8  ;;  %v2925_v22 = vld [vmem:[%s3355_s11 + $0x2e0] sm:$0xff]   ;;  %v295_v9 = vld [vmem:[%s3346_s25 + $0x50] sm:$0xff] }
  0xbc   : > { %1550 = vmatmul.mubr.bf16.gmra.mxu0 %v445_v19  ;;  %v2922_v19 = vld [vmem:[%s3355_s11 + $0x228] sm:$0xff]   ;;  %v309_v8 = vld [vmem:[%s3346_s25 + $0xc0] sm:$0xff]  ;;  %v423_v12 = vpack.c.bf16 %v311_v10, %v295_v9 }
  0xbd   : > { %1615 = vmatmul.mubr.bf16.gmra.mxu1 %v447_v20  ;;  %2500 = vmatpush3.bf16.msra.mxu0 %v2898_v23  ;;  %v2923_v20 = vld [vmem:[%s3355_s11 + $0x2a8] sm:$0xff]   ;;  %v2926_v23 = vld [vmem:[%s3355_s11 + $0x220] sm:$0xff]  }
  0xbe   : > { %2540 = vmatpush3.bf16.msra.mxu1 %v2899_v24  ;;  %2501 = vmatprep.subr.bf16.mxu0 %v2900_v25  ;;  %v2927_v24 = vld [vmem:[%s3355_s11 + $0x2a0] sm:$0xff]   ;;  %v354_v25 = vld [vmem:[%s3346_s25 + $0x228] sm:$0xff] }
  0xbf   : > { %2541 = vmatprep.subr.bf16.mxu1 %v2901_v26  ;;  %1557 = vmatprep.mubr.bf16.mxu0 %v462_v32  ;;  %v370_v26 = vld [vmem:[%s3346_s25 + $0x2a8] sm:$0xff] }
  0xc0   : > { %1622 = vmatprep.mubr.bf16.mxu1 %v464_v36  ;;  %v451_v36 = vpack.c.bf16 %v371_v35, %v355_v34  ;;  %v2953_v34 = vld [vmem:[%s3355_s11 + $0x3e8] sm:$0xff]  }
  0xc1   : > { %2502 = vmatpush3.bf16.msra.mxu0 %v2902_v27  ;;  %v356_v27 = vld [vmem:[%s3346_s25 + $0x238] sm:$0xff]  ;;  %v2954_v35 = vld [vmem:[%s3355_s11 + $0x328] sm:$0xff]  }
  0xc2   : > { %2542 = vmatpush3.bf16.msra.mxu1 %v2903_v28  ;;  %2503 = vmatprep.subr.bf16.mxu0 %v2904_v41  ;;  %v450_v28 = vpack.c.bf16 %v370_v26, %v354_v25  ;;  %v452_v32 = vpack.c.bf16 %v372_v29, %v356_v27  ;;  %v2932_v41 = vld [vmem:[%s3355_s11 + $0x250] sm:$0xff]   ;;  %v344_v25 = vld [vmem:[%s3346_s25 + $0x1d8] sm:$0xff]  ;;  %v325_v26 = vld [vmem:[%s3346_s25 + $0x140] sm:$0xff] }
  0xc3   : > { %2543 = vmatprep.subr.bf16.mxu1 %v2905_v42  ;;  %v2933_v42 = vld [vmem:[%s3355_s11 + $0x2d0] sm:$0xff]   ;;  %v341_v27 = vld [vmem:[%s3346_s25 + $0x1c0] sm:$0xff]  ;;  %v2968_v9 = vld [vmem:[%s3355_s11 + $0x348] sm:$0xff]  }
  0xc4   : > { %1558 = vmatmul.mubr.bf16.gmra.mxu0 %v461_v37  ;;  %v2928_v37 = vld [vmem:[%s3355_s11 + $0x258] sm:$0xff]   ;;  %v437_v29 = vpack.c.bf16 %v341_v27, %v325_v26  ;;  %v2969_v10 = vld [vmem:[%s3355_s11 + $0x3c8] sm:$0xff]   ;;  %v299_v26 = vld [vmem:[%s3346_s25 + $0x70] sm:$0xff] }
  0xc5   : > { %1623 = vmatmul.mubr.bf16.gmra.mxu1 %v463_v40  ;;  %2504 = vmatpush3.bf16.msra.mxu0 %v2906_v43  ;;  %v2931_v40 = vld [vmem:[%s3355_s11 + $0x298] sm:$0xff]   ;;  %v2934_v43 = vld [vmem:[%s3355_s11 + $0x210] sm:$0xff]  }
  0xc6   : > { %2544 = vmatpush3.bf16.msra.mxu1 %v2907_v44  ;;  %2505 = vmatprep.subr.bf16.mxu0 %v2908_v45  ;;  %v2935_v44 = vld [vmem:[%s3355_s11 + $0x290] sm:$0xff]   ;;  %v386_v45 = vld [vmem:[%s3346_s25 + $0x328] sm:$0xff] }
  0xc7   : > { %2545 = vmatprep.subr.bf16.mxu1 %v2909_v46  ;;  %1663 = vmatprep.mubr.bf16.mxu0 %v418_v53  ;;  %v402_v46 = vld [vmem:[%s3346_s25 + $0x3a8] sm:$0xff]  ;;  %v387_v53 = vld [vmem:[%s3346_s25 + $0x330] sm:$0xff] }
  0xc8   : > { %1728 = vmatprep.mubr.bf16.mxu1 %v420_v54  ;;  %v466_v49 = vpack.c.bf16 %v402_v46, %v386_v45  ;;  %v465_v54 = vpack.c.bf16 %v401_v52, %v385_v51  ;;  %v467_v56 = vpack.c.bf16 %v403_v55, %v387_v53  ;;  %v375_v51 = vld [vmem:[%s3346_s25 + $0x2d0] sm:$0xff]  ;;  %v2960_v53 = vld [vmem:[%s3355_s11 + $0x358] sm:$0xff]  }
  0xc9   : > { %2506 = vmatpush3.bf16.msra.mxu0 %v2910_v47  ;;  %v388_v47 = vld [vmem:[%s3346_s25 + $0x338] sm:$0xff]  ;;  %v315_v27 = vld [vmem:[%s3346_s25 + $0xf0] sm:$0xff] }
  0xca   : > { %2546 = vmatpush3.bf16.msra.mxu1 %v2911_v48  ;;  %2571 = vmatprep.subr.bf16.mxu0 %v2912_v61  ;;  %v404_v48 = vld [vmem:[%s3346_s25 + $0x3b8] sm:$0xff]  ;;  %v2940_v61 = vld [vmem:[%s3355_s11 + $0x240] sm:$0xff]  }
  0xcb   : > { %2611 = vmatprep.subr.bf16.mxu1 %v2913_v62  ;;  %v468_v50 = vpack.c.bf16 %v404_v48, %v388_v47  ;;  %v2941_v62 = vld [vmem:[%s3355_s11 + $0x2c0] sm:$0xff]   ;;  %v2962_v55 = vld [vmem:[%s3355_s11 + $0x318] sm:$0xff]  }
  0xcc   : > { %1664 = vmatmul.mubr.bf16.vlgmr.msra.gmra.mxu0 %v417_v58  ;;  %v2937_v58 = vld [vmem:[%s3355_s11 + $0x2c8] sm:$0xff]   ;;  %v357_v47 = vld [vmem:[%s3346_s25 + $0x240] sm:$0xff] }
  0xcd   : > { %1729 = vmatmul.mubr.bf16.vlgmr.msra.gmra.mxu1 %v419_v60  ;;  %2572 = vmatpush3.bf16.msra.mxu0 %v2914_v63  ;;  %v2939_v60 = vld [vmem:[%s3355_s11 + $0x288] sm:$0xff]   ;;  %v2942_v63 = vld [vmem:[%s3355_s11 + $0x200] sm:$0xff]  }
  0xce   : > { %2612 = vmatpush3.bf16.msra.mxu1 %v2915_v0  ;;  %2573 = vmatprep.subr.bf16.mxu0 %v2916_v1  ;;  %v2943_v0 = vld [vmem:[%s3355_s11 + $0x280] sm:$0xff]   ;;  %v294_v1 = vld [vmem:[%s3346_s25 + $0x48] sm:$0xff] }
  0xcf   : > { %2613 = vmatprep.subr.bf16.mxu1 %v2917_v2  ;;  %1671 = vmatprep.mubr.bf16.mxu0 %v434_v7  ;;  %v310_v2 = vld [vmem:[%s3346_s25 + $0xc8] sm:$0xff]  ;;  %v373_v48 = vld [vmem:[%s3346_s25 + $0x2c0] sm:$0xff] }
  0xd0   : > { %1736 = vmatprep.mubr.bf16.mxu1 %v436_v11  ;;  %v421_v11 = vpack.c.bf16 %v309_v8, %v293_v6  ;;  %v407_v6 = vld [vmem:[%s3346_s25 + $0x3d0] sm:$0xff] }
  0xd1   : > { %2574 = vmatpush3.bf16.msra.mxu0 %v2918_v3  ;;  %v422_v3 = vpack.c.bf16 %v310_v2, %v294_v1  ;;  %v408_v1 = vld [vmem:[%s3346_s25 + $0x3d8] sm:$0xff]  ;;  %v389_v2 = vld [vmem:[%s3346_s25 + $0x340] sm:$0xff] }
  0xd2   : > { %2614 = vmatpush3.bf16.msra.mxu1 %v2919_v4  ;;  %2575 = vmatprep.subr.bf16.mxu0 %v2920_v17  ;;  %v296_v4 = vld [vmem:[%s3346_s25 + $0x58] sm:$0xff]  ;;  %v2948_v17 = vld [vmem:[%s3355_s11 + $0x370] sm:$0xff]  }
  0xd3   : > { %2615 = vmatprep.subr.bf16.mxu1 %v2921_v18  ;;  %v424_v7 = vpack.c.bf16 %v312_v5, %v296_v4  ;;  %v2949_v18 = vld [vmem:[%s3355_s11 + $0x3f0] sm:$0xff]   ;;  %v405_v4 = vld [vmem:[%s3346_s25 + $0x3c0] sm:$0xff] }
  0xd4   : > { %1672 = vmatmul.mubr.bf16.gmra.mxu0 %v433_v15  ;;  %v2946_v15 = vld [vmem:[%s3355_s11 + $0x338] sm:$0xff]   ;;  %v391_v5 = vld [vmem:[%s3346_s25 + $0x350] sm:$0xff] }
  0xd5   : > { %1737 = vmatmul.mubr.bf16.gmra.mxu1 %v435_v16  ;;  %2576 = vmatpush3.bf16.msra.mxu0 %v2922_v19  ;;  %v2947_v16 = vld [vmem:[%s3355_s11 + $0x3b8] sm:$0xff]   ;;  %v2950_v19 = vld [vmem:[%s3355_s11 + $0x330] sm:$0xff]   ;;  %v471_v8 = vpack.c.bf16 %v407_v6, %v391_v5 }
  0xd6   : > { %2616 = vmatpush3.bf16.msra.mxu1 %v2923_v20  ;;  %2577 = vmatprep.subr.bf16.mxu0 %v2924_v21  ;;  %v2951_v20 = vld [vmem:[%s3355_s11 + $0x3b0] sm:$0xff]   ;;  %v326_v21 = vld [vmem:[%s3346_s25 + $0x148] sm:$0xff] }
  0xd7   : > { %2617 = vmatprep.subr.bf16.mxu1 %v2925_v22  ;;  %1679 = vmatprep.mubr.bf16.mxu0 %v450_v28  ;;  %v342_v22 = vld [vmem:[%s3346_s25 + $0x1c8] sm:$0xff] }
  0xd8   : > { %1744 = vmatprep.mubr.bf16.mxu1 %v452_v32  ;;  %v439_v32 = vpack.c.bf16 %v343_v31, %v327_v30  ;;  %v346_v30 = vld [vmem:[%s3346_s25 + $0x1e8] sm:$0xff]  ;;  %v332_v31 = vld [vmem:[%s3346_s25 + $0x178] sm:$0xff] }
  0xd9   : > { %2578 = vmatpush3.bf16.msra.mxu0 %v2926_v23  ;;  %v328_v23 = vld [vmem:[%s3346_s25 + $0x158] sm:$0xff] }
  0xda   : > { %2618 = vmatpush3.bf16.msra.mxu1 %v2927_v24  ;;  %2579 = vmatprep.subr.bf16.mxu0 %v2928_v37  ;;  %v438_v24 = vpack.c.bf16 %v342_v22, %v326_v21  ;;  %v440_v28 = vpack.c.bf16 %v344_v25, %v328_v23  ;;  %v2956_v37 = vld [vmem:[%s3355_s11 + $0x360] sm:$0xff]   ;;  %v316_v21 = vld [vmem:[%s3346_s25 + $0xf8] sm:$0xff] }
  0xdb   : > { %2619 = vmatprep.subr.bf16.mxu1 %v2929_v38  ;;  %v2957_v38 = vld [vmem:[%s3355_s11 + $0x3e0] sm:$0xff]  }
  0xdc   : > { %1680 = vmatmul.mubr.bf16.gmra.mxu0 %v449_v33  ;;  %v2952_v33 = vld [vmem:[%s3355_s11 + $0x368] sm:$0xff]   ;;  %v297_v22 = vld [vmem:[%s3346_s25 + $0x60] sm:$0xff] }
  0xdd   : > { %1745 = vmatmul.mubr.bf16.gmra.mxu1 %v451_v36  ;;  %2580 = vmatpush3.bf16.msra.mxu0 %v2930_v39  ;;  %v2955_v36 = vld [vmem:[%s3355_s11 + $0x3a8] sm:$0xff]   ;;  %v2958_v39 = vld [vmem:[%s3355_s11 + $0x320] sm:$0xff]  }
  0xde   : > { %2620 = vmatpush3.bf16.msra.mxu1 %v2931_v40  ;;  %2581 = vmatprep.subr.bf16.mxu0 %v2932_v41  ;;  %v2959_v40 = vld [vmem:[%s3355_s11 + $0x3a0] sm:$0xff]   ;;  %v358_v41 = vld [vmem:[%s3346_s25 + $0x248] sm:$0xff] }
  0xdf   : > { %2621 = vmatprep.subr.bf16.mxu1 %v2933_v42  ;;  %1687 = vmatprep.mubr.bf16.mxu0 %v466_v49  ;;  %v374_v42 = vld [vmem:[%s3346_s25 + $0x2c8] sm:$0xff]  ;;  %v359_v49 = vld [vmem:[%s3346_s25 + $0x250] sm:$0xff]  ;;  %v313_v23 = vld [vmem:[%s3346_s25 + $0xe0] sm:$0xff] }
  0xe0   : > { %1752 = vmatprep.mubr.bf16.mxu1 %v468_v50  ;;  %v454_v45 = vpack.c.bf16 %v374_v42, %v358_v41  ;;  %v453_v50 = vpack.c.bf16 %v373_v48, %v357_v47  ;;  %v455_v52 = vpack.c.bf16 %v375_v51, %v359_v49  ;;  %v425_v25 = vpack.c.bf16 %v313_v23, %v297_v22  ;;  %v364_v41 = vld [vmem:[%s3346_s25 + $0x278] sm:$0xff]  ;;  %v361_v47 = vld [vmem:[%s3346_s25 + $0x260] sm:$0xff]  ;;  %v363_v49 = vld [vmem:[%s3346_s25 + $0x270] sm:$0xff] }
  0xe1   : > { %2582 = vmatpush3.bf16.msra.mxu0 %v2934_v43  ;;  %v360_v43 = vld [vmem:[%s3346_s25 + $0x258] sm:$0xff]  ;;  %v377_v48 = vld [vmem:[%s3346_s25 + $0x2e0] sm:$0xff]  ;;  %v394_v51 = vld [vmem:[%s3346_s25 + $0x368] sm:$0xff] }
  0xe2   : > { %2622 = vmatpush3.bf16.msra.mxu1 %v2935_v44  ;;  %2583 = vmatprep.subr.bf16.mxu0 %v2936_v57  ;;  %v376_v44 = vld [vmem:[%s3346_s25 + $0x2d8] sm:$0xff]  ;;  %v2964_v57 = vld [vmem:[%s3355_s11 + $0x350] sm:$0xff]  }
  0xe3   : > { %2623 = vmatprep.subr.bf16.mxu1 %v2937_v58  ;;  %v456_v46 = vpack.c.bf16 %v376_v44, %v360_v43  ;;  %v2965_v58 = vld [vmem:[%s3355_s11 + $0x3d0] sm:$0xff]   ;;  %v380_v42 = vld [vmem:[%s3346_s25 + $0x2f8] sm:$0xff] }
  0xe4   : > { %1688 = vmatmul.mubr.bf16.gmra.mxu0 %v465_v54  ;;  %v2961_v54 = vld [vmem:[%s3355_s11 + $0x3d8] sm:$0xff]  }
  0xe5   : > { %1753 = vmatmul.mubr.bf16.gmra.mxu1 %v467_v56  ;;  %2584 = vmatpush3.bf16.msra.mxu0 %v2938_v59  ;;  %v2963_v56 = vld [vmem:[%s3355_s11 + $0x398] sm:$0xff]   ;;  %v2966_v59 = vld [vmem:[%s3355_s11 + $0x310] sm:$0xff]  }
  0xe6   : > { %2624 = vmatpush3.bf16.msra.mxu1 %v2939_v60  ;;  %2585 = vmatprep.subr.bf16.mxu0 %v2940_v61  ;;  %v2967_v60 = vld [vmem:[%s3355_s11 + $0x390] sm:$0xff]   ;;  %v390_v61 = vld [vmem:[%s3346_s25 + $0x348] sm:$0xff] }
  0xe7   : > { %2625 = vmatprep.subr.bf16.mxu1 %v2941_v62  ;;  %1793 = vmatprep.mubr.bf16.mxu0 %v422_v3  ;;  %v406_v62 = vld [vmem:[%s3346_s25 + $0x3c8] sm:$0xff] }
  0xe8   : > { %1858 = vmatprep.mubr.bf16.mxu1 %v424_v7  ;;  %v469_v7 = vpack.c.bf16 %v405_v4, %v389_v2 }
  0xe9   : > { %2586 = vmatpush3.bf16.msra.mxu0 %v2942_v63  ;;  %v470_v63 = vpack.c.bf16 %v406_v62, %v390_v61  ;;  %v395_v61 = vld [vmem:[%s3346_s25 + $0x370] sm:$0xff] }
  0xea   : > { %2626 = vmatpush3.bf16.msra.mxu1 %v2943_v0  ;;  %2651 = vmatprep.subr.bf16.mxu0 %v2944_v13  ;;  %v392_v0 = vld [vmem:[%s3346_s25 + $0x358] sm:$0xff]  ;;  %v2972_v13 = vld [vmem:[%s3355_s11 + $0x340] sm:$0xff]   ;;  %v411_v62 = vld [vmem:[%s3346_s25 + $0x3f0] sm:$0xff] }
  0xeb   : > { %2691 = vmatprep.subr.bf16.mxu1 %v2945_v14  ;;  %v472_v3 = vpack.c.bf16 %v408_v1, %v392_v0  ;;  %v2973_v14 = vld [vmem:[%s3355_s11 + $0x3c0] sm:$0xff]   ;;  %v475_v0 = vpack.c.bf16 %v411_v62, %v395_v61 }
  0xec   : > { %1794 = vmatmul.mubr.bf16.vlgmr.msra.gmra.mxu0 %v421_v11  ;;  %v2970_v11 = vld [vmem:[%s3355_s11 + $0x308] sm:$0xff]  }
  0xed   : > { %1859 = vmatmul.mubr.bf16.vlgmr.msra.gmra.mxu1 %v423_v12  ;;  %2652 = vmatpush3.bf16.msra.mxu0 %v2946_v15  ;;  %v2971_v12 = vld [vmem:[%s3355_s11 + $0x388] sm:$0xff]   ;;  %v2974_v15 = vld [vmem:[%s3355_s11 + $0x300] sm:$0xff]  }
  0xee   : > { %2692 = vmatpush3.bf16.msra.mxu1 %v2947_v16  ;;  %2653 = vmatprep.subr.bf16.mxu0 %v2948_v17  ;;  %v2975_v16 = vld [vmem:[%s3355_s11 + $0x380] sm:$0xff]   ;;  %v298_v17 = vld [vmem:[%s3346_s25 + $0x68] sm:$0xff] }
  0xef   : > { %2693 = vmatprep.subr.bf16.mxu1 %v2949_v18  ;;  %1801 = vmatprep.mubr.bf16.mxu0 %v438_v24  ;;  %v314_v18 = vld [vmem:[%s3346_s25 + $0xe8] sm:$0xff] }
  0xf0   : > { %1866 = vmatprep.mubr.bf16.mxu1 %v440_v28  ;;  %v330_v28 = vld [vmem:[%s3346_s25 + $0x168] sm:$0xff] }
  0xf1   : > { %2654 = vmatpush3.bf16.msra.mxu0 %v2950_v19  ;;  %v300_v19 = vld [vmem:[%s3346_s25 + $0x78] sm:$0xff] }
  0xf2   : > { %2694 = vmatpush3.bf16.msra.mxu1 %v2951_v20  ;;  %2655 = vmatprep.subr.bf16.mxu0 %v2952_v33  ;;  %v426_v20 = vpack.c.bf16 %v314_v18, %v298_v17  ;;  %v428_v24 = vpack.c.bf16 %v316_v21, %v300_v19  ;;  %v442_v33 = vpack.c.bf16 %v346_v30, %v330_v28 }
  0xf3   : > { %2695 = vmatprep.subr.bf16.mxu1 %v2953_v34 }
  0xf4   : > { %1802 = vmatmul.mubr.bf16.gmra.mxu0 %v437_v29  ;;  %v427_v29 = vpack.c.bf16 %v315_v27, %v299_v26 }
  0xf5   : > { %1867 = vmatmul.mubr.bf16.gmra.mxu1 %v439_v32  ;;  %2656 = vmatpush3.bf16.msra.mxu0 %v2954_v35  ;;  %v348_v32 = vld [vmem:[%s3346_s25 + $0x1f8] sm:$0xff]  ;;  %v329_v35 = vld [vmem:[%s3346_s25 + $0x160] sm:$0xff] }
  0xf6   : > { %2696 = vmatpush3.bf16.msra.mxu1 %v2955_v36  ;;  %2657 = vmatprep.subr.bf16.mxu0 %v2956_v37  ;;  %v444_v34 = vpack.c.bf16 %v348_v32, %v332_v31  ;;  %v345_v36 = vld [vmem:[%s3346_s25 + $0x1e0] sm:$0xff]  ;;  %v331_v37 = vld [vmem:[%s3346_s25 + $0x170] sm:$0xff] }
  0xf7   : > { %2697 = vmatprep.subr.bf16.mxu1 %v2957_v38  ;;  %1809 = vmatprep.mubr.bf16.mxu0 %v454_v45  ;;  %v347_v38 = vld [vmem:[%s3346_s25 + $0x1f0] sm:$0xff]  ;;  %v441_v43 = vpack.c.bf16 %v345_v36, %v329_v35 }
  0xf8   : > { %1874 = vmatprep.mubr.bf16.mxu1 %v456_v46  ;;  %v443_v44 = vpack.c.bf16 %v347_v38, %v331_v37  ;;  %v460_v46 = vpack.c.bf16 %v380_v42, %v364_v41 }
  0xf9   : > { %2658 = vmatpush3.bf16.msra.mxu0 %v2958_v39  ;;  %v362_v39 = vld [vmem:[%s3346_s25 + $0x268] sm:$0xff] }
  0xfa   : > { %2698 = vmatpush3.bf16.msra.mxu1 %v2959_v40  ;;  %2659 = vmatprep.subr.bf16.mxu0 %v2960_v53  ;;  %v378_v40 = vld [vmem:[%s3346_s25 + $0x2e8] sm:$0xff]  ;;  %v396_v53 = vld [vmem:[%s3346_s25 + $0x378] sm:$0xff] }
  0xfb   : > { %2699 = vmatprep.subr.bf16.mxu1 %v2961_v54  ;;  %v458_v45 = vpack.c.bf16 %v378_v40, %v362_v39  ;;  %v412_v54 = vld [vmem:[%s3346_s25 + $0x3f8] sm:$0xff] }
  0xfc   : > { %1810 = vmatmul.mubr.bf16.gmra.mxu0 %v453_v50  ;;  %v379_v50 = vld [vmem:[%s3346_s25 + $0x2f0] sm:$0xff] }
  0xfd   : > { %1875 = vmatmul.mubr.bf16.gmra.mxu1 %v455_v52  ;;  %2660 = vmatpush3.bf16.msra.mxu0 %v2962_v55  ;;  %v410_v52 = vld [vmem:[%s3346_s25 + $0x3e8] sm:$0xff]  ;;  %v457_v55 = vpack.c.bf16 %v377_v48, %v361_v47 }
  0xfe   : > { %2700 = vmatpush3.bf16.msra.mxu1 %v2963_v56  ;;  %2661 = vmatprep.subr.bf16.mxu0 %v2964_v57  ;;  %v459_v56 = vpack.c.bf16 %v379_v50, %v363_v49  ;;  %v474_v57 = vpack.c.bf16 %v410_v52, %v394_v51 }
  0xff   : > { %2701 = vmatprep.subr.bf16.mxu1 %v2965_v58  ;;  %1817 = vmatprep.mubr.bf16.mxu0 %v470_v63  ;;  %v476_v58 = vpack.c.bf16 %v412_v54, %v396_v53 }
 0x100   : > { %1882 = vmatprep.mubr.bf16.mxu1 %v472_v3 }
 0x101   : > { %2662 = vmatpush3.bf16.msra.mxu0 %v2966_v59  ;;  %v393_v59 = vld [vmem:[%s3346_s25 + $0x360] sm:$0xff] }
 0x102   : > { %2702 = vmatpush3.bf16.msra.mxu1 %v2967_v60  ;;  %2663 = vmatprep.subr.bf16.mxu0 %v2968_v9  ;;  %v409_v60 = vld [vmem:[%s3346_s25 + $0x3e0] sm:$0xff] }
 0x103   : > { %2703 = vmatprep.subr.bf16.mxu1 %v2969_v10  ;;  %v473_v63 = vpack.c.bf16 %v409_v60, %v393_v59 }
 0x104   : > { %1818 = vmatmul.mubr.bf16.gmra.mxu0 %v469_v7 }
 0x105   : > { %1883 = vmatmul.mubr.bf16.gmra.mxu1 %v471_v8  ;;  %2664 = vmatpush3.bf16.msra.mxu0 %v2970_v11 }
 0x106   : > { %2704 = vmatpush3.bf16.msra.mxu1 %v2971_v12  ;;  %2665 = vmatprep.subr.bf16.mxu0 %v2972_v13 }
 0x107   : > { %2705 = vmatprep.subr.bf16.mxu1 %v2973_v14  ;;  %1923 = vmatprep.mubr.bf16.mxu0 %v426_v20 }
 0x108   : > { %1988 = vmatprep.mubr.bf16.mxu1 %v428_v24 }
 0x109   : > { %2666 = vmatpush3.bf16.msra.mxu0 %v2974_v15 }
 0x10a   : > { %2706 = vmatpush3.bf16.msra.mxu1 %v2975_v16 }
 0x10c   : > { %1924 = vmatmul.mubr.bf16.vlgmr.msra.gmra.mxu0 %v425_v25 }
 0x10d   : > { %1989 = vmatmul.mubr.bf16.vlgmr.msra.gmra.mxu1 %v427_v29  ;;  %1931 = vmatprep.mubr.bf16.mxu0 %v442_v33 }
 0x10e   : > { %1996 = vmatprep.mubr.bf16.mxu1 %v444_v34 }
 0x114   : > { %1932 = vmatmul.mubr.bf16.gmra.mxu0 %v441_v43 }
 0x115   : > { %1997 = vmatmul.mubr.bf16.gmra.mxu1 %v443_v44  ;;  %1939 = vmatprep.mubr.bf16.mxu0 %v458_v45 }
 0x116   : > { %2004 = vmatprep.mubr.bf16.mxu1 %v460_v46 }
 0x11c   : > { %1940 = vmatmul.mubr.bf16.gmra.mxu0 %v457_v55 }
 0x11d   : > { %2005 = vmatmul.mubr.bf16.gmra.mxu1 %v459_v56  ;;  %1947 = vmatprep.mubr.bf16.mxu0 %v474_v57 }
 0x11e   : > { %2012 = vmatprep.mubr.bf16.mxu1 %v476_v58 }
 0x124   : > { %1948 = vmatmul.mubr.bf16.gmra.mxu0 %v473_v63 }
 0x125   : > { %2013 = vmatmul.mubr.bf16.gmra.mxu1 %v475_v0 }
 0x16c   : > { %v2427_v1 = vpop.f32.mrf.mxu0 }
 0x16d   : > { %v2467_v2 = vpop.f32.mrf.mxu1 }
 0x16e   : > { %v2428_v3 = vpop.f32.mrf.mxu0 }
 0x16f   : > { %v2429_v4 = vadd.f32 %v2428_v3, %v2427_v1  ;;  %v2468_v5 = vpop.f32.mrf.mxu1 }
 0x170   : > { %v2469_v6 = vadd.f32 %v2468_v5, %v2467_v2  ;;  %v2430_v7 = vpop.f32.mrf.mxu0 }
 0x171   : > { %v2470_v8 = vpop.f32.mrf.mxu1 }
 0x172   : > { %v3628_v9 = vadd.f32 %v2469_v6, %v2429_v4  ;;  %v2431_v10 = vpop.f32.mrf.mxu0 }
 0x173   : > { %v2432_v11 = vadd.f32 %v2431_v10, %v2430_v7  ;;  %v2471_v12 = vpop.f32.mrf.mxu1 }
 0x174   : > { %v2472_v13 = vadd.f32 %v2471_v12, %v2470_v8  ;;  %v2433_v15 = vpop.f32.mrf.mxu0 }
 0x175   : > { %v2473_v16 = vpop.f32.mrf.mxu1 }
 0x176   : > { %v3630_v14 = vadd.f32 %v2472_v13, %v2432_v11  ;;  %v2434_v17 = vpop.f32.mrf.mxu0 }
 0x177   : > { %v2435_v18 = vadd.f32 %v2434_v17, %v2433_v15  ;;  %v2474_v19 = vpop.f32.mrf.mxu1 }
 0x178   : > { %v2475_v20 = vadd.f32 %v2474_v19, %v2473_v16  ;;  %v2436_v21 = vpop.f32.mrf.mxu0 }
 0x179   : > { %v2476_v22 = vpop.f32.mrf.mxu1 }
 0x17a   : > { %v3632_v23 = vadd.f32 %v2475_v20, %v2435_v18  ;;  %v2437_v24 = vpop.f32.mrf.mxu0 }
 0x17b   : > { %v2438_v25 = vadd.f32 %v2437_v24, %v2436_v21  ;;  %v2477_v26 = vpop.f32.mrf.mxu1 }
 0x17c   : > { %v2478_v27 = vadd.f32 %v2477_v26, %v2476_v22  ;;  %v2439_v29 = vpop.f32.mrf.mxu0 }
 0x17d   : > { %v2479_v30 = vpop.f32.mrf.mxu1 }
 0x17e   : > { %v3634_v28 = vadd.f32 %v2478_v27, %v2438_v25  ;;  %v2440_v31 = vpop.f32.mrf.mxu0 }
 0x17f   : > { %v2480_v32 = vpop.f32.mrf.mxu1  ;;  %v2441_v33 = vadd.f32 %v2440_v31, %v2439_v29 }
 0x180   : > { %v2481_v34 = vadd.f32 %v2480_v32, %v2479_v30  ;;  %v2442_v35 = vpop.f32.mrf.mxu0 }
 0x181   : > { %v2482_v36 = vpop.f32.mrf.mxu1 }
 0x182   : > { %v3636_v37 = vadd.f32 %v2481_v34, %v2441_v33  ;;  %v2443_v38 = vpop.f32.mrf.mxu0 }
 0x183   : > { %v2483_v39 = vpop.f32.mrf.mxu1  ;;  %v2444_v40 = vadd.f32 %v2443_v38, %v2442_v35 }
 0x184   : > { %v2484_v41 = vadd.f32 %v2483_v39, %v2482_v36  ;;  %v2445_v43 = vpop.f32.mrf.mxu0 }
 0x185   : > { %v2485_v44 = vpop.f32.mrf.mxu1 }
 0x186   : > { %v3638_v42 = vadd.f32 %v2484_v41, %v2444_v40  ;;  %v2446_v45 = vpop.f32.mrf.mxu0 }
 0x187   : > { %v2447_v46 = vadd.f32 %v2446_v45, %v2445_v43  ;;  %v2486_v47 = vpop.f32.mrf.mxu1 }
 0x188   : > { %v2487_v48 = vadd.f32 %v2486_v47, %v2485_v44  ;;  %v2448_v49 = vpop.f32.mrf.mxu0 }
 0x189   : > { %v2488_v50 = vpop.f32.mrf.mxu1 }
 0x18a   : > { %v3640_v51 = vadd.f32 %v2487_v48, %v2447_v46  ;;  %v2449_v52 = vpop.f32.mrf.mxu0 }
 0x18b   : > { %v2450_v53 = vadd.f32 %v2449_v52, %v2448_v49  ;;  %v2489_v54 = vpop.f32.mrf.mxu1 }
 0x18c   : > { %3872 = vst [vmem:[#allocation17_spill] sm:$0xff] %v3640_v51  ;;  %v2490_v55 = vadd.f32 %v2489_v54, %v2488_v50  ;;  %v2507_v57 = vpop.f32.mrf.mxu0 }
 0x18d   : > { %v3644_v58 = vpop.f32.mrf.mxu1 }
 0x18e   : > { %v3642_v56 = vadd.f32 %v2490_v55, %v2450_v53  ;;  %v2508_v59 = vpop.f32.mrf.mxu0 }
 0x18f   : > { %v2548_v60 = vpop.f32.mrf.mxu1 }
 0x190   : > { %3873 = vst [vmem:[#allocation18_spill] sm:$0xff] %v3642_v56  ;;  %v2510_v61 = vpop.f32.mrf.mxu0 }
 0x191   : > { %v3646_v62 = vpop.f32.mrf.mxu1 }
 0x192   : > { %v2511_v63 = vpop.f32.mrf.mxu0 }
 0x193   : > { %v3648_v0 = vpop.f32.mrf.mxu1 }
 0x194   : > { %v2513_v1 = vpop.f32.mrf.mxu0 }
 0x195   : > { %v3650_v2 = vpop.f32.mrf.mxu1 }
 0x196   : > { %v2514_v3 = vpop.f32.mrf.mxu0 }
 0x197   : > { %v3652_v4 = vpop.f32.mrf.mxu1 }
 0x198   : > { %v3654_v5 = vpop.f32.mrf.mxu0 }
 0x199   : > { %v3656_v6 = vpop.f32.mrf.mxu1 }
 0x19a   : > { %v3658_v7 = vpop.f32.mrf.mxu0 }
 0x19b   : > { %v3660_v8 = vpop.f32.mrf.mxu1 }
 0x19c   : > { %v3662_v10 = vpop.f32.mrf.mxu0 }
 0x19d   : > { %v3664_v11 = vpop.f32.mrf.mxu1 }
 0x19e   : > { %v3666_v12 = vpop.f32.mrf.mxu0 }
 0x19f   : > { %v3668_v13 = vpop.f32.mrf.mxu1 }
 0x1a0   : > { %v3670_v15 = vpop.f32.mrf.mxu0 }
 0x1a1   : > { %v3672_v16 = vpop.f32.mrf.mxu1 }
 0x1a2   : > { %v3674_v17 = vpop.f32.mrf.mxu0 }
 0x1a3   : > { %v3676_v18 = vpop.f32.mrf.mxu1 }
 0x1a4   : > { %v3678_v19 = vpop.f32.mrf.mxu0 }
 0x1a5   : > { %v3680_v20 = vpop.f32.mrf.mxu1 }
 0x1a6   : > { %3874 = vst [vmem:[#allocation19_spill] sm:$0xff] %v3680_v20  ;;  %v3682_v21 = vpop.f32.mrf.mxu0 }
 0x1a7   : > { %v3684_v22 = vpop.f32.mrf.mxu1 }
 0x1a8   : > { %3875 = vst [vmem:[#allocation20_spill] sm:$0xff] %v3684_v22  ;;  %v3686_v24 = vpop.f32.mrf.mxu0 }
 0x1a9   : > { %3876 = vst [vmem:[#allocation21_spill] sm:$0xff] %v3686_v24  ;;  %v3688_v25 = vpop.f32.mrf.mxu1 }
 0x1aa   : > { %3877 = vst [vmem:[#allocation22_spill] sm:$0xff] %v3688_v25  ;;  %v3690_v26 = vpop.f32.mrf.mxu0 }
 0x1ab   : > { %3878 = vst [vmem:[#allocation23_spill] sm:$0xff] %v3690_v26  ;;  %v3692_v27 = vpop.f32.mrf.mxu1 }
 0x1ac   : > { %3879 = vst [vmem:[#allocation24_spill] sm:$0xff] %v3692_v27  ;;  %v2587_v29 = vpop.f32.mrf.mxu0  ;;  %v2509_v27 = vadd.f32 %v2508_v59, %v2507_v57 }
 0x1ad   : > { %v2627_v30 = vpop.f32.mrf.mxu1 }
 0x1ae   : > { %v2588_v31 = vpop.f32.mrf.mxu0 }
 0x1af   : > { %v2628_v32 = vpop.f32.mrf.mxu1  ;;  %v2589_v51 = vadd.f32 %v2588_v31, %v2587_v29 }
 0x1b0   : > { %v2590_v33 = vpop.f32.mrf.mxu0 }
 0x1b1   : > { %v2630_v34 = vpop.f32.mrf.mxu1 }
 0x1b2   : > { %v2591_v35 = vpop.f32.mrf.mxu0 }
 0x1b3   : > { %v2631_v36 = vpop.f32.mrf.mxu1 }
 0x1b4   : > { %v2593_v38 = vpop.f32.mrf.mxu0 }
 0x1b5   : > { %v3694_v39 = vpop.f32.mrf.mxu1 }
 0x1b6   : > { %v2594_v40 = vpop.f32.mrf.mxu0 }
 0x1b7   : > { %v3696_v41 = vpop.f32.mrf.mxu1 }
 0x1b8   : > { %v2596_v43 = vpop.f32.mrf.mxu0 }
 0x1b9   : > { %v3698_v44 = vpop.f32.mrf.mxu1 }
 0x1ba   : > { %v2597_v45 = vpop.f32.mrf.mxu0 }
 0x1bb   : > { %v3700_v46 = vpop.f32.mrf.mxu1 }
 0x1bc   : > { %v3702_v47 = vpop.f32.mrf.mxu0 }
 0x1bd   : > { %v3704_v48 = vpop.f32.mrf.mxu1 }
 0x1be   : > { %3880 = vst [vmem:[#allocation25_spill] sm:$0xff] %v3704_v48  ;;  %v3706_v49 = vpop.f32.mrf.mxu0  ;;  %v1666_v48 = vadd.f32 %v2509_v27, %v3628_v9 }
 0x1bf   : > { %v3708_v50 = vpop.f32.mrf.mxu1 }
 0x1c0   : > { %3881 = vst [vmem:[#allocation26_spill] sm:$0xff] %v3708_v50  ;;  %v3710_v52 = vpop.f32.mrf.mxu0  ;;  %v2512_v50 = vadd.f32 %v2511_v63, %v2510_v61  ;;  %v2592_v61 = vadd.f32 %v2591_v35, %v2590_v33  ;;  %v2598_v35 = vadd.f32 %v2597_v45, %v2596_v43  ;;  %v2561_v43 = vadd.f32 %v3668_v13, %v3664_v11 }
 0x1c1   : > { %v3712_v53 = vpop.f32.mrf.mxu1  ;;  %v2638_v11 = vadd.f32 %v3700_v46, %v3698_v44  ;;  %v3888_v44 = vld [vmem:[#allocation17_spill] sm:$0xff] }
 0x1c2   : > { %3882 = vst [vmem:[#allocation27_spill] sm:$0xff] %v3712_v53  ;;  %v3714_v54 = vpop.f32.mrf.mxu0  ;;  %v2549_v53 = vadd.f32 %v2548_v60, %v3644_v58  ;;  %v2518_v58 = vadd.f32 %v3658_v7, %v3654_v5  ;;  %v2629_v60 = vadd.f32 %v2628_v32, %v2627_v30  ;;  %v277_v32 = vld [vmem:[#allocation2 + $0x30] sm:$0xff] }
 0x1c3   : > { %v3716_v55 = vpop.f32.mrf.mxu1 }
 0x1c4   : > { %3883 = vst [vmem:[#allocation28_spill] sm:$0xff] %v3716_v55  ;;  %v3718_v25 = vpop.f32.mrf.mxu0  ;;  %v2515_v55 = vadd.f32 %v2514_v3, %v2513_v1  ;;  %v1731_v59 = vadd.f32 %v2549_v53, %v1666_v48  ;;  %v2555_v3 = vadd.f32 %v3652_v4, %v3650_v2  ;;  %v2558_v2 = vadd.f32 %v3660_v8, %v3656_v6 }
 0x1c5   : > { %3884 = vst [vmem:[#allocation29_spill] sm:$0xff] %v3718_v25  ;;  %v3720_v56 = vpop.f32.mrf.mxu1 }
 0x1c6   : > { %3885 = vst [vmem:[#allocation30_spill] sm:$0xff] %v3720_v56  ;;  %v3722_v22 = vpop.f32.mrf.mxu0  ;;  %v1669_v56 = vadd.f32 %v2512_v50, %v3630_v14  ;;  %v1796_v9 = vadd.f32 %v2589_v51, %v1731_v59  ;;  %v1674_v63 = vadd.f32 %v2515_v55, %v3632_v23  ;;  %v2595_v14 = vadd.f32 %v2594_v40, %v2593_v38 }
 0x1c7   : > { %v3724_v20 = vpop.f32.mrf.mxu1  ;;  %v2521_v23 = vadd.f32 %v3666_v12, %v3662_v10  ;;  %v2635_v12 = vadd.f32 %v3696_v41, %v3694_v39 }
 0x1c8   : > { %3886 = vst [vmem:[#allocation31_spill] sm:$0xff] %v3724_v20  ;;  %v3727_v26 = vpop.f32.mrf.mxu0  ;;  %v2552_v20 = vadd.f32 %v3648_v0, %v3646_v62  ;;  %v1861_v31 = vadd.f32 %v2629_v60, %v1796_v9  ;;  %v1739_v51 = vadd.f32 %v2555_v3, %v1674_v63  ;;  %v278_v9 = vld [vmem:[#allocation2] sm:$0xff] }
 0x1c9   : > { %v3729_v24 = vpop.f32.mrf.mxu1  ;;  %v1682_v10 = vadd.f32 %v2521_v23, %v3636_v37  ;;  %v2601_v37 = vadd.f32 %v3706_v49, %v3702_v47  ;;  %v2564_v47 = vadd.f32 %v3676_v18, %v3672_v16  ;;  %v2604_v49 = vadd.f32 %v3714_v54, %v3710_v52  ;;  %v3890_v23 = vld [vmem:[#allocation23_spill] sm:$0xff]  ;;  %v3892_v16 = vld [vmem:[#allocation26_spill] sm:$0xff] }
 0x1ca   : > { %3887 = vst [vmem:[#allocation32_spill] sm:$0xff] %v3729_v24  ;;  %v3732_v57 = vpop.f32.mrf.mxu0  ;;  %v1734_v24 = vadd.f32 %v2552_v20, %v1669_v56  ;;  %v1677_v56 = vadd.f32 %v2518_v58, %v3634_v28  ;;  %v2632_v20 = vadd.f32 %v2631_v36, %v2630_v34  ;;  %v1804_v4 = vadd.f32 %v2595_v14, %v1739_v51  ;;  %v3889_v51 = vld [vmem:[#allocation21_spill] sm:$0xff] }
 0x1cb   : > { %v3735_v25 = vpop.f32.mrf.mxu1  ;;  %v2524_v28 = vadd.f32 %v3674_v17, %v3670_v15  ;;  %v1747_v41 = vadd.f32 %v2561_v43, %v1682_v10  ;;  %v2527_v58 = vadd.f32 %v3682_v21, %v3678_v19 }
 0x1cc   : > { %v2667_v27 = vpop.f32.mrf.mxu0  ;;  %v1799_v48 = vadd.f32 %v2592_v61, %v1734_v24  ;;  %v1742_v36 = vadd.f32 %v2558_v2, %v1677_v56  ;;  %v1869_v45 = vadd.f32 %v2635_v12, %v1804_v4  ;;  %v3894_v2 = vld [vmem:[#allocation20_spill] sm:$0xff]  ;;  %v3896_v12 = vld [vmem:[#allocation18_spill] sm:$0xff] }
 0x1cd   : > { %v2707_v1 = vpop.f32.mrf.mxu1  ;;  %v1690_v46 = vadd.f32 %v2527_v58, %v3888_v44 }
 0x1ce   : > { %v2668_v29 = vpop.f32.mrf.mxu0  ;;  %v1864_v24 = vadd.f32 %v2632_v20, %v1799_v48  ;;  %v1807_v63 = vadd.f32 %v2598_v35, %v1742_v36  ;;  %v1812_v48 = vadd.f32 %v2601_v37, %v1747_v41  ;;  %v3891_v20 = vld [vmem:[#allocation25_spill] sm:$0xff]  ;;  %v3897_v36 = vld [vmem:[#allocation27_spill] sm:$0xff]  ;;  %v3900_v37 = vld [vmem:[#allocation24_spill] sm:$0xff] }
 0x1cf   : > { %v2669_v50 = vadd.f32 %v2668_v29, %v2667_v27  ;;  %v2708_v62 = vpop.f32.mrf.mxu1  ;;  %v1685_v27 = vadd.f32 %v2524_v28, %v3638_v42  ;;  %v279_v29 = vld [vmem:[#allocation2 + $0x18] sm:$0xff]  ;;  %v2641_v18 = vadd.f32 %v3892_v16, %v3891_v20  ;;  %v283_v16 = vld [vmem:[#allocation2 + $0x28] sm:$0xff] }
 0x1d0   : > { %v2670_v0 = vpop.f32.mrf.mxu0  ;;  %v2709_v7 = vadd.f32 %v2708_v62, %v2707_v1  ;;  %v1872_v42 = vadd.f32 %v2638_v11, %v1807_v63  ;;  %v3899_v63 = vld [vmem:[#allocation22_spill] sm:$0xff] }
 0x1d1   : > { %v1926_v5 = vadd.f32 %v2669_v50, %v1861_v31  ;;  %v2710_v30 = vpop.f32.mrf.mxu1  ;;  %v1750_v62 = vadd.f32 %v2564_v47, %v1685_v27  ;;  %v1877_v35 = vadd.f32 %v2641_v18, %v1812_v48  ;;  %v2610_v27 = vadd.f32 %v3732_v57, %v3727_v26  ;;  %v282_v48 = vld [vmem:[#allocation2 + $0x20] sm:$0xff] }
 0x1d2   : > { %v2671_v33 = vpop.f32.mrf.mxu0 }
 0x1d3   : > { %v1991_v38 = vadd.f32 %v2709_v7, %v1926_v5  ;;  %v2672_v40 = vadd.f32 %v2671_v33, %v2670_v0  ;;  %v2711_v53 = vpop.f32.mrf.mxu1  ;;  %v2530_v0 = vadd.f32 %v3890_v23, %v3889_v51  ;;  %v280_v33 = vld [vmem:[#allocation2 + $0x10] sm:$0xff] }
 0x1d4   : > { %v2673_v34 = vpop.f32.mrf.mxu0  ;;  %v2712_v8 = vadd.f32 %v2711_v53, %v2710_v30  ;;  %v3893_v30 = vld [vmem:[#allocation19_spill] sm:$0xff] }
 0x1d5   : > { %v2021_v55 = vadd.f32 %v1991_v38, %v277_v32  ;;  %v1929_v6 = vadd.f32 %v2672_v40, %v1864_v24  ;;  %v2713_v59 = vpop.f32.mrf.mxu1  ;;  %v2567_v4 = vadd.f32 %v3894_v2, %v3893_v30  ;;  %v1815_v32 = vadd.f32 %v2604_v49, %v1750_v62  ;;  %v3895_v38 = vld [vmem:[#allocation29_spill] sm:$0xff] }
 0x1d6   : > { %v2674_v61 = vpop.f32.mrf.mxu0  ;;  %v2607_v40 = vadd.f32 %v3722_v22, %v3895_v38  ;;  %v281_v22 = vld [vmem:[#allocation2 + $0x8] sm:$0xff] }
 0x1d7   : > { %2029 = vst [vmem:[#allocation2 + $0x30] sm:$0xff] %v2021_v55  ;;  %v1994_v15 = vadd.f32 %v2712_v8, %v1929_v6  ;;  %v2675_v17 = vadd.f32 %v2674_v61, %v2673_v34  ;;  %v2714_v39 = vpop.f32.mrf.mxu1  ;;  %v1693_v34 = vadd.f32 %v2530_v0, %v3896_v12  ;;  %v3898_v55 = vld [vmem:[#allocation28_spill] sm:$0xff] }
 0x1d8   : > { %v2676_v60 = vpop.f32.mrf.mxu0  ;;  %v2715_v3 = vadd.f32 %v2714_v39, %v2713_v59  ;;  %v2644_v6 = vadd.f32 %v3898_v55, %v3897_v36  ;;  %v1755_v59 = vadd.f32 %v2567_v4, %v1690_v46  ;;  %v3903_v46 = vld [vmem:[#allocation32_spill] sm:$0xff] }
 0x1d9   : > { %v2022_v13 = vadd.f32 %v1994_v15, %v278_v9  ;;  %v1934_v1 = vadd.f32 %v2675_v17, %v1869_v45  ;;  %v2716_v14 = vpop.f32.mrf.mxu1  ;;  %v2570_v15 = vadd.f32 %v3900_v37, %v3899_v63  ;;  %v2650_v51 = vadd.f32 %v3735_v25, %v3903_v46 }
 0x1da   : > { %v2677_v31 = vpop.f32.mrf.mxu0  ;;  %v1880_v17 = vadd.f32 %v2644_v6, %v1815_v32  ;;  %v1820_v41 = vadd.f32 %v2607_v40, %v1755_v59  ;;  %v284_v32 = vld [vmem:[#allocation2 + $0x38] sm:$0xff] }
 0x1db   : > { %2030 = vst [vmem:[#allocation2] sm:$0xff] %v2022_v13  ;;  %v1999_v19 = vadd.f32 %v2715_v3, %v1934_v1  ;;  %v2678_v21 = vadd.f32 %v2677_v31, %v2676_v60  ;;  %v2717_v50 = vpop.f32.mrf.mxu1  ;;  %v1758_v13 = vadd.f32 %v2570_v15, %v1693_v34  ;;  %v3901_v3 = vld [vmem:[#allocation30_spill] sm:$0xff] }
 0x1dc   : > { %v2679_v56 = vpop.f32.mrf.mxu0  ;;  %v2718_v54 = vadd.f32 %v2717_v50, %v2716_v14  ;;  %v3902_v14 = vld [vmem:[#allocation31_spill] sm:$0xff] }
 0x1dd   : > { %v2023_v5 = vadd.f32 %v1999_v19, %v279_v29  ;;  %v1937_v52 = vadd.f32 %v2678_v21, %v1872_v42  ;;  %v2719_v7 = vpop.f32.mrf.mxu1  ;;  %v2647_v47 = vadd.f32 %v3902_v14, %v3901_v3  ;;  %v1823_v50 = vadd.f32 %v2610_v27, %v1758_v13 }
 0x1de   : > { %v2680_v24 = vpop.f32.mrf.mxu0 }
 0x1df   : > { %2031 = vst [vmem:[#allocation2 + $0x18] sm:$0xff] %v2023_v5  ;;  %v2002_v53 = vadd.f32 %v2718_v54, %v1937_v52  ;;  %v2681_v10 = vadd.f32 %v2680_v24, %v2679_v56  ;;  %v2720_v28 = vpop.f32.mrf.mxu1  ;;  %v1885_v21 = vadd.f32 %v2647_v47, %v1820_v41  ;;  %v1888_v5 = vadd.f32 %v2650_v51, %v1823_v50 }
 0x1e0   : > { %v2682_v8 = vpop.f32.mrf.mxu0  ;;  %v2721_v9 = vadd.f32 %v2720_v28, %v2719_v7 }
 0x1e1   : > { %v2024_v43 = vadd.f32 %v2002_v53, %v280_v33  ;;  %v1942_v45 = vadd.f32 %v2681_v10, %v1877_v35  ;;  %v2722_v61 = vpop.f32.mrf.mxu1 }
 0x1e2   : > { %v2683_v39 = vpop.f32.mrf.mxu0 }
 0x1e3   : > { %2032 = vst [vmem:[#allocation2 + $0x10] sm:$0xff] %v2024_v43  ;;  %v2007_v58 = vadd.f32 %v2721_v9, %v1942_v45  ;;  %v2684_v60 = vadd.f32 %v2683_v39, %v2682_v8  ;;  %v2723_v11 = vpop.f32.mrf.mxu1 }
 0x1e4   : > { %v2685_v1 = vpop.f32.mrf.mxu0  ;;  %v2724_v31 = vadd.f32 %v2723_v11, %v2722_v61 }
 0x1e5   : > { %v2025_v49 = vadd.f32 %v2007_v58, %v281_v22  ;;  %v1945_v29 = vadd.f32 %v2684_v60, %v1880_v17  ;;  %v2725_v42 = vpop.f32.mrf.mxu1 }
 0x1e6   : > { %v2686_v19 = vpop.f32.mrf.mxu0 }
 0x1e7   : > { %2033 = vst [vmem:[#allocation2 + $0x8] sm:$0xff] %v2025_v49  ;;  %v2010_v62 = vadd.f32 %v2724_v31, %v1945_v29  ;;  %v2687_v26 = vadd.f32 %v2686_v19, %v2685_v1  ;;  %v2726_v57 = vpop.f32.mrf.mxu1 }
 0x1e8   : > { %v2688_v44 = vpop.f32.mrf.mxu0  ;;  %v2727_v56 = vadd.f32 %v2726_v57, %v2725_v42 }
 0x1e9   : > { %v2026_v23 = vadd.f32 %v2010_v62, %v282_v48  ;;  %v1950_v0 = vadd.f32 %v2687_v26, %v1885_v21  ;;  %v2728_v20 = vpop.f32.mrf.mxu1 }
 0x1ea   : > { %v2689_v18 = vpop.f32.mrf.mxu0 }
 0x1eb   : > { %2034 = vst [vmem:[#allocation2 + $0x20] sm:$0xff] %v2026_v23  ;;  %v2015_v52 = vadd.f32 %v2727_v56, %v1950_v0  ;;  %v2690_v54 = vadd.f32 %v2689_v18, %v2688_v44  ;;  %v2729_v7 = vpop.f32.mrf.mxu1 }
 0x1ec   : > { %v2730_v4 = vadd.f32 %v2729_v7, %v2728_v20 }
 0x1ed   : > { %v2027_v30 = vadd.f32 %v2015_v52, %v283_v16  ;;  %v1953_v2 = vadd.f32 %v2690_v54, %v1888_v5 }
 0x1ef   : > { %2035 = vst [vmem:[#allocation2 + $0x28] sm:$0xff] %v2027_v30  ;;  %v2018_v33 = vadd.f32 %v2730_v4, %v1953_v2  ;;  %2040 = sbr.rel (%p2366_p3) target bundleno = 512 (0x200), region = 52 }
 0x1f1   : > { %v2028_v24 = vadd.f32 %v2018_v33, %v284_v32 }
 0x1f3   : > { %2036 = vst [vmem:[#allocation2 + $0x38] sm:$0xff] %v2028_v24 }
 0x1f4   : > { %v2041_v25 = vld [vmem:[#allocation2 + $0x30] sm:$0xff]  ;;  %v2042_v35 = vld [vmem:[#allocation2] sm:$0xff]  ;;  %v2043_v10 = vld [vmem:[#allocation2 + $0x18] sm:$0xff] }
 0x1f5   : > { %v2367_v38 = vld [vmem:[#allocation7] ss:$0 sm:$0xff]  ;;  %v2044_v28 = vld [vmem:[#allocation2 + $0x10] sm:$0xff]  ;;  %v2045_v12 = vld [vmem:[#allocation2 + $0x8] sm:$0xff] }
 0x1f6   : > { %v2056_v40 = vadd.f32 %v2367_v38, %v2041_v25  ;;  %v2057_v53 = vadd.f32 %v2367_v38, %v2042_v35  ;;  %v2058_v34 = vadd.f32 %v2367_v38, %v2043_v10  ;;  %v2059_v36 = vadd.f32 %v2367_v38, %v2044_v28  ;;  %v2046_v55 = vld [vmem:[#allocation2 + $0x20] sm:$0xff]  ;;  %v2047_v8 = vld [vmem:[#allocation2 + $0x28] sm:$0xff] }
 0x1f7   : > { %v2060_v6 = vadd.f32 %v2367_v38, %v2045_v12  ;;  %v2061_v45 = vadd.f32 %v2367_v38, %v2046_v55  ;;  %v2062_v9 = vadd.f32 %v2367_v38, %v2047_v8 }
 0x1f8   : > { %v2391_v43 = vpack.c.bf16 %v2057_v53, %v2056_v40  ;;  %v2396_v63 = vpack.c.bf16 %v2059_v36, %v2058_v34 }
 0x1f9   : > { %v2401_v37 = vpack.c.bf16 %v2061_v45, %v2060_v6 }
 0x1fa   : > { %v2048_v59 = vld [vmem:[#allocation2 + $0x38] sm:$0xff]  ;;  %2392 = vst [vmem:[%s3369_s9] sm:$0xff] %v2391_v43   ;;  %2408 = vst [vmem:[%s3369_s9 + $0x8] sm:$0xff] %v2396_v63  }
 0x1fb   : > { %v2063_v61 = vadd.f32 %v2367_v38, %v2048_v59  ;;  %2409 = vst [vmem:[%s3369_s9 + $0x10] sm:$0xff] %v2401_v37  }
 0x1fd   : > { %v2406_v15 = vpack.c.bf16 %v2063_v61, %v2062_v9 }
 0x1ff   : > { %2410 = vst [vmem:[%s3369_s9 + $0x18] sm:$0xff] %v2406_v15  }
 0x200 PF: > { %s19_s22 = sadd.s32 1, %s3156_s22   ;;  %s3905_s12 = sld [smem:[#allocation11_spill]] }
 0x201   : > { %p16_p4 = scmp.ge.s32.totalorder %s19_s22, 6   ;;  %s3906_s19 = smov %s3327_s13 }
 0x202   : > { %s3907_s24 = sld [smem:[#allocation16_spill]]  ;;  %s3908_s25 = smov %s3923_s15 }
 0x203   : > { %s3909_s13 = smov %s3124_s14  ;;  %s3910_s14 = smov %s3317_s23 }
 0x204   : > { %s3911_s15 = smov %s3132_s16  ;;  %s3912_s16 = smov %s3136_s17 }
 0x205   : > { %s3913_s17 = smov %s3906_s19  ;;  %s3914_s18 = smov %s3148_s20 }
 0x206   : > { %s3915_s19 = smov %s3152_s21  ;;  %s3917_s21 = smov %s3908_s25 }
 0x207   :  { %18 = sbr.rel (!%p16_p4) target bundleno = 13 (0xd), region = 97 }
 0x208   : > { %s3916_s20 = smov %s3907_s24 }
 0x20c   :  { %2126 = vsyncpa [#allocation4], 1 }
 0x20d   :  { %2128 = vsyncpa [#allocation4 + $0x1], 1 }
 0x20e   :  { %2129 = vsyncpa [#allocation6], 1 }
 0x20f   :  { %2131 = vsyncpa [#allocation6 + $0x1], 1 }

// kernel: vsg_forward.3
= control target key start
LH: loop header
LB: loop body
LE: loop exit
PB: predicated region body
PF: predicated region fallthrough
CT: control target
= control target key end

     0   :  { %s5005_s0 = inlined_call_operand.vmem [shape: bf16[2,64,128], index: 0, kind: input, shape index: {}]   ;;  %s5006_s1 = inlined_call_operand.vmem [shape: bf16[2,128,64], index: 1, kind: input, shape index: {}]   ;;  %s5007_s2 = inlined_call_operand.vmem [shape: f32[2,1,64], index: 2, kind: input, shape index: {}]   ;;  %s5008_s3 = inlined_call_operand.vmem [shape: bf16[2,64,128], index: 3, kind: input, shape index: {}]   ;;  %s5009_s4 = inlined_call_operand.vmem [shape: f32[64,64], index: 4, kind: input, shape index: {}]   ;;  %s5010_s5 = inlined_call_operand.vmem [shape: bf16[512,128], index: 5, kind: input, shape index: {}]   ;;  %s5011_s6 = inlined_call_operand.vmem [shape: f32[1,128], index: 6, kind: input, shape index: {}]   ;;  %s5012_s7 = inlined_call_operand.vmem [shape: bf16[2,128,32], index: 7, kind: input, shape index: {}]   ;;  %s5013_s8 = inlined_call_operand.vmem [shape: f32[2,1,32], index: 8, kind: input, shape index: {}]   ;;  %s5014_s9 = inlined_call_operand.vmem [shape: bf16[2,32,128], index: 9, kind: input, shape index: {}]   ;;  %s5015_s10 = inlined_call_operand.vmem [shape: f32[32,32], index: 10, kind: input, shape index: {}]   ;;  %s5016_s11 = inlined_call_operand.vmem [shape: bf16[2,128,16], index: 11, kind: input, shape index: {}]   ;;  %s5017_s12 = inlined_call_operand.vmem [shape: f32[2,1,16], index: 12, kind: input, shape index: {}]   ;;  %s5018_s13 = inlined_call_operand.vmem [shape: bf16[2,16,128], index: 13, kind: input, shape index: {}]   ;;  %s5019_s14 = inlined_call_operand.vmem [shape: f32[16,16], index: 14, kind: input, shape index: {}]   ;;  %s5020_s15 = inlined_call_operand.vmem [shape: bf16[512,128], index: 15, kind: input, shape index: {}]   ;;  %s5021_s16 = inlined_call_operand.vmem [shape: f32[1,128], index: 16, kind: input, shape index: {}]   ;;  %s5022_s17 = inlined_call_operand.vmem [shape: f32[2,16,128], index: 17, kind: output, shape index: {0}]   ;;  %s5023_s18 = inlined_call_operand.vmem [shape: f32[2,4,128], index: 18, kind: output, shape index: {1}]   ;;  %s5024_s19 = inlined_call_operand.vmem [shape: f32[2,1,128], index: 19, kind: output, shape index: {2}]  }
   0x1   :  { %5025 = sst [smem:[#allocation2_spill]] %s5005_s0  ;;  %s4348_s0 = smov 0  }
   0x2   :  { %5026 = sst [smem:[#allocation3_spill]] %s5006_s1 }
   0x3   :  { %5027 = sst [smem:[#allocation4_spill]] %s5007_s2 }
   0x4   :  { %5028 = sst [smem:[#allocation5_spill]] %s5008_s3 }
   0x5 LB: > { %s3312_s30 = sadd.s32 4294967295, %s4244_s0   ;;  %p3316_p0 = scmp.ge.s32.totalorder %s4244_s0, 1  ;;  %s4244_s0 = sphi %s4348_s0, %s30_s0  }
   0x6   : > { %p626_p1 = scmp.lt.s32.totalorder %s4244_s0, 3 }
   0x8   : > { %p627_p2 = pnand %p3316_p0, %p626_p1 }
   0x9   : > { %p728_p3 = scmp.lt.s32.totalorder (!%p627_p2), %s3312_s30, 1  ;;  %s5029_s22 = sld [smem:[#allocation3_spill]] (!%p627_p2) }
   0xa   : > { %630 = sbr.rel (%p627_p2) target bundleno = 3052 (0xbec), region = 88  ;;  %s5030_s3 = sld [smem:[#allocation2_spill]] (!%p627_p2) }
   0xb   : > { %s5031_s29 = sld [smem:[#allocation5_spill]] (!%p627_p2) }
   0xc   : > { %s5032_s28 = sld [smem:[#allocation4_spill]] (!%p627_p2) }
   0xf   : > { %s5034_s30 = smov (!%p728_p3, %s3312_s30), 1  ;;  %vm970_vm0 = vcmask 523264   ;;  %v825_v37 = vld [vmem:[%s5009_s4 + $0x38] sm:$0xff]  ;;  %v824_v38 = vld [vmem:[%s5009_s4 + $0x30] sm:$0xff]  ;;  %v823_v39 = vld [vmem:[%s5009_s4 + $0x28] sm:$0xff]  ;;  %vm4247_vm1 = vmmov 0  }
  0x10   : > { %s4359_s20 = sshll.u32 %s5034_s30, 6  ;;  %s3489_s23 = sshll.u32 %s5034_s30, 5  ;;  %3697 = vmatprep.subr.mxu1 %v825_v37  ;;  %v822_v40 = vld [vmem:[%s5009_s4 + $0x20] sm:$0xff]  ;;  %v821_v41 = vld [vmem:[%s5009_s4 + $0x18] sm:$0xff]  ;;  %v820_v42 = vld [vmem:[%s5009_s4 + $0x10] sm:$0xff]  ;;  %vm1831_vm2 = vcmask 261120  }
  0x11   : > { %s737_s2 = scalar_lea.vmem %s5029_s22, %s4359_s20  ;;  %s732_s26 = scalar_lea.vmem %s5030_s3, %s3489_s23  ;;  %3698 = vmatpush3.msra.mxu1 %v825_v37  ;;  %v819_v43 = vld [vmem:[%s5009_s4 + $0x8] sm:$0xff]  ;;  %v818_v44 = vld [vmem:[%s5009_s4] sm:$0xff]  ;;  %vm2538_vm3 = vcmask 125952   ;;  %vm2545_vm4 = vcmask 130048  }
  0x12   : > { %v4063_v0 = vld [vmem:[%s737_s2 + $0x38] sm:$0xff]   ;;  %v4064_v1 = vld [vmem:[%s737_s2 + $0x30] sm:$0xff]   ;;  %v4065_v2 = vld [vmem:[%s737_s2 + $0x28] sm:$0xff]   ;;  %s4372_s21 = scalar_lea.vmem %s5031_s29, %s3489_s23  ;;  %s4378_s23 = scalar_lea.vmem %s5012_s7, %s4359_s20  ;;  %3699 = vmatprep.subr.mxu1 %v824_v38 }
  0x13   : > { %3673 = vmatprep.subr.bf16.mxu0 %v4063_v0  ;;  %v4066_v3 = vld [vmem:[%s737_s2 + $0x20] sm:$0xff]   ;;  %v4067_v5 = vld [vmem:[%s737_s2 + $0x18] sm:$0xff]   ;;  %v4068_v6 = vld [vmem:[%s737_s2 + $0x10] sm:$0xff]   ;;  %s740_s29 = scalar_lea.vmem %s5032_s28, %s5034_s30  ;;  %3700 = vmatpush3.msra.mxu1 %v824_v38  ;;  %s3493_s24 = sshll.u32 %s5034_s30, 4 }
  0x14   : > { %3674 = vmatpush3.bf16.msra.mxu0 %v4063_v0  ;;  %v4071_v4 = vld [vmem:[%s732_s26] sm:$0xff]   ;;  %v4069_v7 = vld [vmem:[%s737_s2 + $0x8] sm:$0xff]   ;;  %v4073_v10 = vld [vmem:[%s732_s26 + $0x10] sm:$0xff]   ;;  %3701 = vmatprep.subr.mxu1 %v823_v39  ;;  %s4636_s27 = scalar_lea.vmem %s5014_s9, %s3493_s24  ;;  %s753_s22 = scalar_lea.vmem %s5013_s8, %s5034_s30 }
  0x15   : > { %3675 = vmatprep.subr.bf16.mxu0 %v4064_v1  ;;  %3689 = vmatprep.mubr.bf16.mxu0 %v4071_v4  ;;  %v4070_v8 = vld [vmem:[%s737_s2] sm:$0xff]   ;;  %v4072_v9 = vld [vmem:[%s732_s26 + $0x8] sm:$0xff]   ;;  %v4074_v11 = vld [vmem:[%s732_s26 + $0x18] sm:$0xff]   ;;  %s4384_s2 = scalar_lea.vmem %s5016_s11, %s4359_s20  ;;  %s776_s20 = scalar_lea.vmem %s5022_s17, %s3493_s24 }
  0x16   : > { %v3334_v12 = vld [vmem:[%s740_s29] ss:$0 sm:$0xff]  ;;  %3702 = vmatpush3.msra.mxu1 %v823_v39  ;;  %s3333_s3 = sshll.u32 %s5034_s30, 2 }
  0x17   : > { %3703 = vmatprep.subr.mxu1 %v822_v40  ;;  %s780_s29 = scalar_lea.vmem %s5023_s18, %s3333_s3 }
  0x18   : > { %3676 = vmatpush3.bf16.msra.mxu0 %v4064_v1  ;;  %3704 = vmatpush3.msra.mxu1 %v822_v40 }
  0x19   : > { %3677 = vmatprep.subr.bf16.mxu0 %v4065_v2  ;;  %3705 = vmatprep.subr.mxu1 %v821_v41 }
  0x1a   : > { %3706 = vmatpush3.msra.mxu1 %v821_v41 }
  0x1b   : > { %3707 = vmatprep.subr.mxu1 %v820_v42 }
  0x1c   : > { %3678 = vmatpush3.bf16.msra.mxu0 %v4065_v2  ;;  %3708 = vmatpush3.msra.mxu1 %v820_v42  ;;  %v4079_v42 = vld [vmem:[%s5010_s5 + $0x78] sm:$0xff]  }
  0x1d   : > { %3679 = vmatprep.subr.bf16.mxu0 %v4066_v3  ;;  %3709 = vmatprep.subr.mxu1 %v819_v43 }
  0x1e   : > { %3710 = vmatpush3.msra.mxu1 %v819_v43 }
  0x1f   : > { %3711 = vmatprep.subr.mxu1 %v818_v44 }
  0x20   : > { %3680 = vmatpush3.bf16.msra.mxu0 %v4066_v3  ;;  %3712 = vmatpush3.msra.mxu1 %v818_v44 }
  0x21   : > { %3681 = vmatprep.subr.bf16.mxu0 %v4067_v5 }
  0x24   : > { %3682 = vmatpush3.bf16.msra.mxu0 %v4067_v5 }
  0x25   : > { %3683 = vmatprep.subr.bf16.mxu0 %v4068_v6 }
  0x28   : > { %3684 = vmatpush3.bf16.msra.mxu0 %v4068_v6 }
  0x29   : > { %3685 = vmatprep.subr.bf16.mxu0 %v4069_v7 }
  0x2c   : > { %3686 = vmatpush3.bf16.msra.mxu0 %v4069_v7 }
  0x2d   : > { %3687 = vmatprep.subr.bf16.mxu0 %v4070_v8 }
  0x30   : > { %3688 = vmatpush3.bf16.msra.mxu0 %v4070_v8 }
  0x33   : > { %3690 = vmatmul.mubr.bf16.vlgmr.msra.gmra.mxu0 %v4072_v9 }
  0x34   : > { %3693 = vmatprep.mubr.bf16.mxu0 %v4073_v10 }
  0x3b   : > { %3694 = vmatmul.mubr.bf16.gmra.mxu0 %v4074_v11 }
  0xf3   : > { %v3691_v13 = vpop.f32.mrf.mxu0 }
  0xf4   : > { %v4390_v14 = vadd.f32 %v3691_v13, %v3334_v12  ;;  %v4075_v13 = vld [vmem:[%s4372_s21 + $0x18] sm:$0xff]  }
  0xf5   : > { %v939_v15 = vpop.f32.mrf.mxu0  ;;  %3725 = vmatprep.subr.bf16.mxu1 %v4075_v13 }
  0xf6   : > { %v940_v16 = vadd.f32 %v3334_v12, %v939_v15  ;;  %v977_v17 = vsel %vm970_vm0, %v4390_v14, -inf  ;;  %v4077_v15 = vld [vmem:[%s4372_s21 + $0x8] sm:$0xff]  }
  0xf7   : > { %978 = vmax.xlane.f32.xlu1 %v977_v17  ;;  %v3692_v18 = vpop.f32.mrf.mxu0  ;;  %v4080_v17 = vld [vmem:[%s5010_s5 + $0x38] sm:$0xff]  }
  0xf8   : > { %v951_v19 = vadd.f32 %v3692_v18, %v3334_v12  ;;  %v971_v20 = vsel %vm970_vm0, %v940_v16, -inf  ;;  %v4246_v18 = vmov 0.0  }
  0xf9   : > { %v942_v21 = vpop.f32.mrf.mxu0  ;;  %972 = vmax.xlane.f32.xlu0 %v971_v20  ;;  %3741 = vmatprep.subr.bf16.mxu0 %v4246_v18  ;;  %v4084_v20 = vld [vmem:[%s5010_s5 + $0x28] sm:$0xff]  }
  0xfa   : > { %v943_v22 = vadd.f32 %v3334_v12, %v942_v21  ;;  %v980_v23 = vsel %vm970_vm0, %v951_v19, -inf  ;;  %3742 = vmatpush3.bf16.msra.mxu0 %v4080_v17  ;;  %v4086_v21 = vld [vmem:[%s5010_s5 + $0x20] sm:$0xff]   ;;  %3757 = vmatprep.mubr.msk.bf16.mxu0 %vm4247_vm1, %v4246_v18 }
  0xfb   : > { %981 = vmax.xlane.f32.xlu1 %v980_v23  ;;  %v3695_v24 = vpop.f32.mrf.mxu0  ;;  %3743 = vmatprep.subr.bf16.mxu0 %v4246_v18  ;;  %v4090_v23 = vld [vmem:[%s5010_s5 + $0x10] sm:$0xff]  }
  0xfc   : > { %v974_v25 = vsel %vm970_vm0, %v943_v22, -inf  ;;  %v4397_v27 = vadd.f32 %v3695_v24, %v3334_v12 }
  0xfd   : > { %v955_v26 = vpop.f32.mrf.mxu0  ;;  %975 = vmax.xlane.f32.xlu0 %v974_v25 }
  0xfe   : > { %v956_v28 = vadd.f32 %v3334_v12, %v955_v26  ;;  %v989_v34 = vsel %vm970_vm0, %v4397_v27, -inf }
  0xff   : > { %v3696_v29 = vpop.f32.mrf.mxu0 }
 0x100   : > { %v983_v30 = vsel %vm970_vm0, %v956_v28, -inf  ;;  %v4400_v32 = vadd.f32 %v3696_v29, %v3334_v12 }
 0x101   : > { %v958_v31 = vpop.f32.mrf.mxu0  ;;  %984 = vmax.xlane.f32.xlu0 %v983_v30 }
 0x102   : > { %v959_v33 = vadd.f32 %v3334_v12, %v958_v31  ;;  %v992_v36 = vsel %vm970_vm0, %v4400_v32, -inf }
 0x104   : > { %v986_v35 = vsel %vm970_vm0, %v959_v33, -inf }
 0x105   : > { %987 = vmax.xlane.f32.xlu1 %v986_v35  ;;  %990 = vmax.xlane.f32.xlu0 %v989_v34 }
 0x109   : > { %993 = vmax.xlane.f32.xlu1 %v992_v36 }
 0x180   : > { %v979_v45 = vpop.xlane.xlu1 %978 }
 0x181   : > { %v997_v48 = vsub.f32 %v4390_v14, %v979_v45  ;;  %v4076_v14 = vld [vmem:[%s4372_s21 + $0x10] sm:$0xff]  }
 0x182   : > { %v973_v46 = vpop.xlane.xlu0 %972 }
 0x183   : > { %v995_v47 = vsub.f32 %v940_v16, %v973_v46  ;;  %v1007_v54 = vmul.f32 1.442695, %v997_v48  ;;  %v4078_v16 = vld [vmem:[%s4372_s21] sm:$0xff]   ;;  %v4081_v48 = vld [vmem:[%s5010_s5 + $0x70] sm:$0xff]   ;;  %s783_s21 = scalar_lea.vmem %s5024_s19, %s5034_s30 }
 0x184   : > { %v982_v49 = vpop.xlane.xlu1 %981 }
 0x185   : > { %v1003_v50 = vmul.f32 1.442695, %v995_v47  ;;  %v998_v51 = vsub.f32 %v951_v19, %v982_v49  ;;  %v4082_v19 = vld [vmem:[%s5010_s5 + $0x30] sm:$0xff]  }
 0x186   : > { %v976_v52 = vpop.xlane.xlu0 %975  ;;  %3744 = vmatpush3.bf16.msra.mxu0 %v4082_v19  ;;  %v4107_v19 = vld [vmem:[%s5010_s5 + $0xc8] sm:$0xff]  }
 0x187   : > { %4194 = vpow2.f32 %v1003_v50  ;;  %v996_v53 = vsub.f32 %v943_v22, %v976_v52  ;;  %v1009_v56 = vmul.f32 1.442695, %v998_v51  ;;  %3745 = vmatprep.subr.bf16.mxu0 %v4246_v18  ;;  %v4088_v22 = vld [vmem:[%s5010_s5 + $0x18] sm:$0xff]  }
 0x189   : > { %v1005_v55 = vmul.f32 1.442695, %v996_v53  ;;  %v4083_v53 = vld [vmem:[%s5010_s5 + $0x68] sm:$0xff]  }
 0x18a   : > { %v985_v57 = vpop.xlane.xlu0 %984  ;;  %3746 = vmatpush3.bf16.msra.mxu0 %v4084_v20  ;;  %v4108_v20 = vld [vmem:[%s5010_s5 + $0x88] sm:$0xff]  }
 0x18b   : > { %4196 = vpow2.f32 %v1005_v55  ;;  %v999_v58 = vsub.f32 %v956_v28, %v985_v57  ;;  %3747 = vmatprep.subr.bf16.mxu0 %v4246_v18  ;;  %v4085_v55 = vld [vmem:[%s5010_s5 + $0x60] sm:$0xff]   ;;  %v4089_v57 = vld [vmem:[%s5010_s5 + $0x50] sm:$0xff]  }
 0x18c   : > { %4198 = vpow2.f32 %v1007_v54 }
 0x18d   : > { %v1011_v59 = vmul.f32 1.442695, %v999_v58  ;;  %4200 = vpow2.f32 %v1009_v56  ;;  %v4087_v56 = vld [vmem:[%s5010_s5 + $0x58] sm:$0xff]   ;;  %v4091_v58 = vld [vmem:[%s5010_s5 + $0x48] sm:$0xff]  }
 0x18e   : > { %v988_v60 = vpop.xlane.xlu1 %987  ;;  %v991_v61 = vpop.xlane.xlu0 %990  ;;  %3748 = vmatpush3.bf16.msra.mxu0 %v4086_v21 }
 0x18f   : > { %4202 = vpow2.f32 %v1011_v59  ;;  %v1000_v62 = vsub.f32 %v959_v33, %v988_v60  ;;  %v1001_v63 = vsub.f32 %v4397_v27, %v991_v61  ;;  %3749 = vmatprep.subr.bf16.mxu0 %v4246_v18  ;;  %v4092_v59 = vld [vmem:[%s5010_s5 + $0x8] sm:$0xff]   ;;  %v4093_v60 = vld [vmem:[%s5010_s5 + $0x40] sm:$0xff]  }
 0x190   : > { %v4094_v61 = vld [vmem:[%s5010_s5] sm:$0xff]  }
 0x191   : > { %v1013_v0 = vmul.f32 1.442695, %v1000_v62  ;;  %v1015_v1 = vmul.f32 1.442695, %v1001_v63 }
 0x192   : > { %v994_v2 = vpop.xlane.xlu1 %993  ;;  %3750 = vmatpush3.bf16.msra.mxu0 %v4088_v22  ;;  %v4109_v22 = vld [vmem:[%s5010_s5 + $0xc0] sm:$0xff]  }
 0x193   : > { %4204 = vpow2.f32 %v1013_v0  ;;  %v1002_v3 = vsub.f32 %v4400_v32, %v994_v2  ;;  %3751 = vmatprep.subr.bf16.mxu0 %v4246_v18 }
 0x194   : > { %v4434_v4 = vpop.eup %4194  ;;  %4206 = vpow2.f32 %v1015_v1  ;;  %v4095_v1 = vld [vmem:[%s5010_s5 + $0xf8] sm:$0xff]  }
 0x195   : > { %v1017_v5 = vmul.f32 1.442695, %v1002_v3  ;;  %3713 = vmatprep.mubr.msk.f32.mxu1 %vm970_vm0, %v4434_v4 }
 0x196   : > { %3752 = vmatpush3.bf16.msra.mxu0 %v4090_v23  ;;  %v4110_v23 = vld [vmem:[%s5010_s5 + $0x80] sm:$0xff]  }
 0x197   : > { %4208 = vpow2.f32 %v1017_v5  ;;  %3753 = vmatprep.subr.bf16.mxu0 %v4246_v18 }
 0x198   : > { %v4438_v6 = vpop.eup %4196 }
 0x199   : > { %v4440_v7 = vpop.eup %4198  ;;  %3714 = vmatmul.mubr.msk.f32.vlgmr.msra.gmra.mxu1 %vm970_vm0, %v4438_v6 }
 0x19a   : > { %3716 = vmatprep.mubr.msk.f32.mxu1 %vm970_vm0, %v4440_v7  ;;  %v4446_v8 = vpop.eup %4200  ;;  %3726 = vmatpush3.bf16.msra.mxu1 %v4075_v13  ;;  %v4104_v13 = vld [vmem:[%s5010_s5 + $0x98] sm:$0xff]  }
 0x19b   : > { %3727 = vmatprep.subr.bf16.mxu1 %v4076_v14  ;;  %3754 = vmatpush3.bf16.msra.mxu0 %v4092_v59 }
 0x19c   : > { %v4448_v9 = vpop.eup %4202  ;;  %3755 = vmatprep.subr.bf16.mxu0 %v4246_v18 }
 0x19d   : > { %3717 = vmatmul.mubr.msk.f32.gmra.mxu1 %vm970_vm0, %v4446_v8 }
 0x19e   : > { %3719 = vmatprep.mubr.msk.f32.mxu1 %vm970_vm0, %v4448_v9  ;;  %3728 = vmatpush3.bf16.msra.mxu1 %v4076_v14 }
 0x19f   : > { %3729 = vmatprep.subr.bf16.mxu1 %v4077_v15  ;;  %3756 = vmatpush3.bf16.msra.mxu0 %v4094_v61  ;;  %v3396_v61 = vld [vmem:[%s753_s22] ss:$0 sm:$0xff] }
 0x1a0   : > { %v4454_v10 = vpop.eup %4204  ;;  %3781 = vmatprep.subr.bf16.mxu0 %v4246_v18 }
 0x1a1   : > { %v4456_v11 = vpop.eup %4206  ;;  %3720 = vmatmul.mubr.msk.f32.gmra.mxu1 %vm970_vm0, %v4454_v10 }
 0x1a2   : > { %3722 = vmatprep.mubr.msk.f32.mxu1 %vm970_vm0, %v4456_v11  ;;  %3730 = vmatpush3.bf16.msra.mxu1 %v4077_v15  ;;  %v4105_v15 = vld [vmem:[%s5010_s5 + $0xd0] sm:$0xff]  }
 0x1a3   : > { %3731 = vmatprep.subr.bf16.mxu1 %v4078_v16 }
 0x1a4   : > { %v4462_v12 = vpop.eup %4208 }
 0x1a5   : > { %3723 = vmatmul.mubr.msk.f32.gmra.mxu1 %vm970_vm0, %v4462_v12 }
 0x1a6   : > { %3732 = vmatpush3.bf16.msra.mxu1 %v4078_v16  ;;  %v4106_v16 = vld [vmem:[%s5010_s5 + $0x90] sm:$0xff]  }
 0x1a7   : > { %3761 = vmatprep.subr.bf16.mxu1 %v4246_v18 }
 0x259   : > { %v3715_v24 = vpop.f32.mrf.mxu1 }
 0x25a   : > { %4210 = vrcp.f32 %v3715_v24 }
 0x25b   : > { %v1109_v25 = vpop.f32.mrf.mxu1 }
 0x25c   : > { %4212 = vrcp.f32 %v1109_v25 }
 0x25d   : > { %v3718_v26 = vpop.f32.mrf.mxu1 }
 0x25e   : > { %4214 = vrcp.f32 %v3718_v26 }
 0x25f   : > { %v1119_v27 = vpop.f32.mrf.mxu1 }
 0x260   : > { %4216 = vrcp.f32 %v1119_v27  ;;  %v4111_v27 = vld [vmem:[%s4378_s23 + $0x38] sm:$0xff]  }
 0x261   : > { %v3721_v28 = vpop.f32.mrf.mxu1 }
 0x262   : > { %4218 = vrcp.f32 %v3721_v28  ;;  %v4112_v28 = vld [vmem:[%s4378_s23 + $0x30] sm:$0xff]  }
 0x263   : > { %v1129_v29 = vpop.f32.mrf.mxu1 }
 0x264   : > { %4220 = vrcp.f32 %v1129_v29  ;;  %v4113_v29 = vld [vmem:[%s4378_s23 + $0x28] sm:$0xff]  }
 0x265   : > { %v3724_v30 = vpop.f32.mrf.mxu1 }
 0x266   : > { %4222 = vrcp.f32 %v3724_v30  ;;  %v4114_v30 = vld [vmem:[%s4378_s23 + $0x20] sm:$0xff]  }
 0x267   : > { %v4211_v31 = vpop.eup %4210  ;;  %v1139_v32 = vpop.f32.mrf.mxu1 }
 0x268   : > { %4224 = vrcp.f32 %v1139_v32  ;;  %v1157_v35 = vmul.f32 %v4211_v31, %v4438_v6  ;;  %v4097_v6 = vld [vmem:[%s5010_s5 + $0xf0] sm:$0xff]   ;;  %v4115_v31 = vld [vmem:[%s4378_s23 + $0x18] sm:$0xff]  }
 0x269   : > { %v4213_v33 = vpop.eup %4212  ;;  %v4116_v32 = vld [vmem:[%s4378_s23 + $0x10] sm:$0xff]  }
 0x26a   : > { %v1156_v34 = vmul.f32 %v4213_v33, %v4434_v4  ;;  %v4096_v4 = vld [vmem:[%s5010_s5 + $0xb8] sm:$0xff]   ;;  %v4117_v33 = vld [vmem:[%s4378_s23 + $0x8] sm:$0xff]  }
 0x26b   : > { %v4215_v36 = vpop.eup %4214 }
 0x26c   : > { %v1164_v37 = vpack.c.bf16 %v1157_v35, %v1156_v34  ;;  %v1159_v39 = vmul.f32 %v4215_v36, %v4446_v8  ;;  %v4099_v8 = vld [vmem:[%s5010_s5 + $0xe8] sm:$0xff]   ;;  %v4118_v34 = vld [vmem:[%s4378_s23] sm:$0xff]  }
 0x26d   : > { %v4217_v38 = vpop.eup %4216 }
 0x26e   : > { %v1158_v40 = vmul.f32 %v4217_v38, %v4440_v7  ;;  %3733 = vmatprep.mubr.msk.bf16.mxu1 %vm970_vm0, %v1164_v37  ;;  %v4098_v7 = vld [vmem:[%s5010_s5 + $0xb0] sm:$0xff]  }
 0x26f   : > { %v4219_v41 = vpop.eup %4218 }
 0x270   : > { %v1165_v43 = vpack.c.bf16 %v1159_v39, %v1158_v40  ;;  %v1161_v46 = vmul.f32 %v4219_v41, %v4454_v10  ;;  %v4101_v10 = vld [vmem:[%s5010_s5 + $0xe0] sm:$0xff]  }
 0x271   : > { %v4221_v44 = vpop.eup %4220 }
 0x272   : > { %3734 = vmatmul.mubr.msk.bf16.vlgmr.msra.gmra.mxu1 %vm970_vm0, %v1165_v43  ;;  %v1160_v45 = vmul.f32 %v4221_v44, %v4448_v9  ;;  %v4100_v9 = vld [vmem:[%s5010_s5 + $0xa8] sm:$0xff]   ;;  %v3371_v43 = vld [vmem:[%s5011_s6] ss:$0 sm:$0xff] }
 0x273   : > { %v4223_v47 = vpop.eup %4222  ;;  %3762 = vmatpush3.bf16.msra.mxu1 %v4079_v42 }
 0x274   : > { %v1166_v49 = vpack.c.bf16 %v1161_v46, %v1160_v45  ;;  %3763 = vmatprep.subr.bf16.mxu1 %v4246_v18  ;;  %v1163_v52 = vmul.f32 %v4223_v47, %v4462_v12  ;;  %v4103_v12 = vld [vmem:[%s5010_s5 + $0xd8] sm:$0xff]  }
 0x275   : > { %v4225_v50 = vpop.eup %4224 }
 0x276   : > { %3737 = vmatprep.mubr.msk.bf16.mxu1 %vm970_vm0, %v1166_v49  ;;  %v1162_v51 = vmul.f32 %v4225_v50, %v4456_v11  ;;  %v4102_v11 = vld [vmem:[%s5010_s5 + $0xa0] sm:$0xff]  }
 0x277   : > { %3764 = vmatpush3.bf16.msra.mxu1 %v4081_v48 }
 0x278   : > { %v1167_v54 = vpack.c.bf16 %v1163_v52, %v1162_v51  ;;  %3765 = vmatprep.subr.bf16.mxu1 %v4246_v18 }
 0x27a   : > { %3738 = vmatmul.mubr.msk.bf16.gmra.mxu1 %vm970_vm0, %v1167_v54 }
 0x27b   : > { %3766 = vmatpush3.bf16.msra.mxu1 %v4083_v53  ;;  %3777 = vmatprep.mubr.msk.bf16.mxu1 %vm4247_vm1, %v4246_v18 }
 0x27c   : > { %3767 = vmatprep.subr.bf16.mxu1 %v4246_v18 }
 0x27f   : > { %3768 = vmatpush3.bf16.msra.mxu1 %v4085_v55 }
 0x280   : > { %3769 = vmatprep.subr.bf16.mxu1 %v4246_v18 }
 0x283   : > { %3770 = vmatpush3.bf16.msra.mxu1 %v4087_v56 }
 0x284   : > { %3771 = vmatprep.subr.bf16.mxu1 %v4246_v18 }
 0x287   : > { %3772 = vmatpush3.bf16.msra.mxu1 %v4089_v57 }
 0x288   : > { %3773 = vmatprep.subr.bf16.mxu1 %v4246_v18 }
 0x28b   : > { %3774 = vmatpush3.bf16.msra.mxu1 %v4091_v58 }
 0x28c   : > { %3775 = vmatprep.subr.bf16.mxu1 %v4246_v18 }
 0x28f   : > { %3776 = vmatpush3.bf16.msra.mxu1 %v4093_v60 }
 0x290   : > { %3801 = vmatprep.subr.bf16.mxu1 %v4246_v18 }
 0x332   : > { %v3735_v62 = vpop.f32.mrf.mxu1 }
 0x334   : > { %v1238_v63 = vpop.f32.mrf.mxu1 }
 0x336   : > { %v3736_v0 = vpop.f32.mrf.mxu1 }
 0x337   : > { %v1270_v2 = vpack.c.bf16 %v3736_v0, %v3735_v62 }
 0x338   : > { %v1241_v3 = vpop.f32.mrf.mxu1 }
 0x339   : > { %v1269_v5 = vpack.c.bf16 %v1241_v3, %v1238_v63  ;;  %3778 = vmatmul.mubr.bf16.vlgmr.msra.gmra.mxu1 %v1270_v2 }
 0x33a   : > { %3802 = vmatpush3.bf16.msra.mxu1 %v4095_v1  ;;  %3817 = vmatprep.mubr.msk.bf16.mxu1 %vm4247_vm1, %v4246_v18  ;;  %v3739_v14 = vpop.f32.mrf.mxu1 }
 0x33b   : > { %3758 = vmatmul.mubr.bf16.vlgmr.msra.gmra.mxu0 %v1269_v5  ;;  %3803 = vmatprep.subr.bf16.mxu1 %v4246_v18 }
 0x33c   : > { %3782 = vmatpush3.bf16.msra.mxu0 %v4096_v4  ;;  %3797 = vmatprep.mubr.msk.bf16.mxu0 %vm4247_vm1, %v4246_v18  ;;  %v1254_v17 = vpop.f32.mrf.mxu1 }
 0x33d   : > { %3783 = vmatprep.subr.bf16.mxu0 %v4246_v18 }
 0x33e   : > { %3804 = vmatpush3.bf16.msra.mxu1 %v4097_v6  ;;  %v3740_v21 = vpop.f32.mrf.mxu1  ;;  %v1734_v6 = vld [vmem:[%s5015_s10 + $0x18] sm:$0xff] }
 0x33f   : > { %3805 = vmatprep.subr.bf16.mxu1 %v4246_v18  ;;  %v1272_v25 = vpack.c.bf16 %v3740_v21, %v3739_v14  ;;  %v4122_v21 = vld [vmem:[%s5020_s15 + $0x78] sm:$0xff]  }
 0x340   : > { %3784 = vmatpush3.bf16.msra.mxu0 %v4098_v7  ;;  %v1257_v24 = vpop.f32.mrf.mxu1  ;;  %v1733_v7 = vld [vmem:[%s5015_s10 + $0x10] sm:$0xff] }
 0x341   : > { %3785 = vmatprep.subr.bf16.mxu0 %v4246_v18  ;;  %v1271_v26 = vpack.c.bf16 %v1257_v24, %v1254_v17  ;;  %v4128_v24 = vld [vmem:[%s5020_s15 + $0x60] sm:$0xff]  }
 0x342   : > { %3806 = vmatpush3.bf16.msra.mxu1 %v4099_v8  ;;  %v1732_v8 = vld [vmem:[%s5015_s10 + $0x8] sm:$0xff] }
 0x343   : > { %3807 = vmatprep.subr.bf16.mxu1 %v4246_v18 }
 0x344   : > { %3786 = vmatpush3.bf16.msra.mxu0 %v4100_v9  ;;  %v1731_v9 = vld [vmem:[%s5015_s10] sm:$0xff] }
 0x345   : > { %3787 = vmatprep.subr.bf16.mxu0 %v4246_v18 }
 0x346   : > { %3808 = vmatpush3.bf16.msra.mxu1 %v4101_v10 }
 0x347   : > { %3809 = vmatprep.subr.bf16.mxu1 %v4246_v18 }
 0x348   : > { %3788 = vmatpush3.bf16.msra.mxu0 %v4102_v11 }
 0x349   : > { %3789 = vmatprep.subr.bf16.mxu0 %v4246_v18 }
 0x34a   : > { %3810 = vmatpush3.bf16.msra.mxu1 %v4103_v12 }
 0x34b   : > { %3811 = vmatprep.subr.bf16.mxu1 %v4246_v18 }
 0x34c   : > { %3790 = vmatpush3.bf16.msra.mxu0 %v4104_v13 }
 0x34d   : > { %3791 = vmatprep.subr.bf16.mxu0 %v4246_v18 }
 0x34e   : > { %3812 = vmatpush3.bf16.msra.mxu1 %v4105_v15 }
 0x34f   : > { %3813 = vmatprep.subr.bf16.mxu1 %v4246_v18 }
 0x350   : > { %3792 = vmatpush3.bf16.msra.mxu0 %v4106_v16 }
 0x351   : > { %3793 = vmatprep.subr.bf16.mxu0 %v4246_v18 }
 0x352   : > { %3814 = vmatpush3.bf16.msra.mxu1 %v4107_v19  ;;  %v4119_v19 = vld [vmem:[%s4636_s27 + $0x8] sm:$0xff]  }
 0x353   : > { %3815 = vmatprep.subr.bf16.mxu1 %v4246_v18 }
 0x354   : > { %3794 = vmatpush3.bf16.msra.mxu0 %v4108_v20  ;;  %v4120_v20 = vld [vmem:[%s4636_s27] sm:$0xff]   ;;  %s3495_s27 = sshll.u32 %s5034_s30, 3 }
 0x355   : > { %3795 = vmatprep.subr.bf16.mxu0 %v4246_v18 }
 0x356   : > { %3816 = vmatpush3.bf16.msra.mxu1 %v4109_v22  ;;  %v4124_v22 = vld [vmem:[%s5020_s15 + $0x70] sm:$0xff]  }
 0x357   : > { %3841 = vmatprep.subr.mxu1 %v1734_v6 }
 0x358   : > { %3796 = vmatpush3.bf16.msra.mxu0 %v4110_v23  ;;  %v4126_v23 = vld [vmem:[%s5020_s15 + $0x68] sm:$0xff]  }
 0x359   : > { %3818 = vmatmul.mubr.bf16.vlgmr.msra.gmra.mxu1 %v1272_v25  ;;  %3821 = vmatprep.subr.bf16.mxu0 %v4246_v18  ;;  %v4130_v25 = vld [vmem:[%s5020_s15 + $0x58] sm:$0xff]  }
 0x35a   : > { %3842 = vmatpush3.msra.mxu1 %v1734_v6  ;;  %v4155_v6 = vld [vmem:[%s4384_s2 + $0x28] sm:$0xff]  }
 0x35b   : > { %3798 = vmatmul.mubr.bf16.vlgmr.msra.gmra.mxu0 %v1271_v26  ;;  %3843 = vmatprep.subr.mxu1 %v1733_v7  ;;  %v4132_v26 = vld [vmem:[%s5020_s15 + $0x50] sm:$0xff]  }
 0x35c   : > { %3837 = vmatprep.mubr.msk.bf16.mxu0 %vm4247_vm1, %v4246_v18  ;;  %3822 = vmatpush3.bf16.msra.mxu0 %v4111_v27 }
 0x35d   : > { %3823 = vmatprep.subr.bf16.mxu0 %v4246_v18  ;;  %3844 = vmatpush3.msra.mxu1 %v1733_v7  ;;  %v4156_v7 = vld [vmem:[%s4384_s2 + $0x20] sm:$0xff]  }
 0x35e   : > { %3845 = vmatprep.subr.mxu1 %v1732_v8 }
 0x35f   : > { %3846 = vmatpush3.msra.mxu1 %v1732_v8  ;;  %v4157_v8 = vld [vmem:[%s4384_s2 + $0x18] sm:$0xff]  }
 0x360   : > { %3824 = vmatpush3.bf16.msra.mxu0 %v4112_v28  ;;  %3847 = vmatprep.subr.mxu1 %v1731_v9 }
 0x361   : > { %3825 = vmatprep.subr.bf16.mxu0 %v4246_v18  ;;  %3848 = vmatpush3.msra.mxu1 %v1731_v9  ;;  %v4158_v9 = vld [vmem:[%s4384_s2 + $0x10] sm:$0xff]  }
 0x362   : > { %3852 = vmatprep.subr.bf16.mxu1 %v4246_v18 }
 0x364   : > { %3826 = vmatpush3.bf16.msra.mxu0 %v4113_v29 }
 0x365   : > { %3827 = vmatprep.subr.bf16.mxu0 %v4246_v18 }
 0x368   : > { %3828 = vmatpush3.bf16.msra.mxu0 %v4114_v30 }
 0x369   : > { %3829 = vmatprep.subr.bf16.mxu0 %v4246_v18 }
 0x36c   : > { %3830 = vmatpush3.bf16.msra.mxu0 %v4115_v31 }
 0x36d   : > { %3831 = vmatprep.subr.bf16.mxu0 %v4246_v18 }
 0x370   : > { %3832 = vmatpush3.bf16.msra.mxu0 %v4116_v32 }
 0x371   : > { %3833 = vmatprep.subr.bf16.mxu0 %v4246_v18 }
 0x374   : > { %3834 = vmatpush3.bf16.msra.mxu0 %v4117_v33  ;;  %v4121_v33 = vld [vmem:[%s5020_s15 + $0x38] sm:$0xff]  }
 0x375   : > { %3835 = vmatprep.subr.bf16.mxu0 %v4246_v18 }
 0x378   : > { %3836 = vmatpush3.bf16.msra.mxu0 %v4118_v34 }
 0x379   : > { %3880 = vmatprep.subr.bf16.mxu0 %v4246_v18 }
 0x3f9   : > { %v1484_v35 = vpop.f32.mrf.mxu1 }
 0x3fb   : > { %v1371_v36 = vpop.f32.mrf.mxu0  ;;  %v3779_v37 = vpop.f32.mrf.mxu1 }
 0x3fc   : > { %v1384_v44 = vadd.f32 %v3371_v43, %v1371_v36  ;;  %v4125_v36 = vld [vmem:[%s5020_s15 + $0x28] sm:$0xff]   ;;  %v4127_v37 = vld [vmem:[%s5020_s15 + $0x20] sm:$0xff]  }
 0x3fd   : > { %v3759_v38 = vpop.f32.mrf.mxu0  ;;  %v1487_v39 = vpop.f32.mrf.mxu1 }
 0x3fe   : > { %v1491_v47 = vadd.f32 %v1484_v35, %v1384_v44  ;;  %v4123_v35 = vld [vmem:[%s5020_s15 + $0x30] sm:$0xff]   ;;  %v4129_v38 = vld [vmem:[%s5020_s15 + $0x18] sm:$0xff]  }
 0x3ff   : > { %v1374_v40 = vpop.f32.mrf.mxu0  ;;  %v3780_v41 = vpop.f32.mrf.mxu1 }
 0x400   : > { %v1385_v46 = vadd.f32 %v3371_v43, %v1374_v40  ;;  %v4133_v40 = vld [vmem:[%s5020_s15 + $0x8] sm:$0xff]   ;;  %v4136_v43 = vld [vmem:[%s5020_s15 + $0x40] sm:$0xff]  }
 0x401   : > { %v3760_v42 = vpop.f32.mrf.mxu0  ;;  %v4134_v41 = vld [vmem:[%s5020_s15 + $0x48] sm:$0xff]  }
 0x402   : > { %v1492_v54 = vadd.f32 %v1487_v39, %v1385_v46  ;;  %v4131_v39 = vld [vmem:[%s5020_s15 + $0x10] sm:$0xff]   ;;  %v4135_v42 = vld [vmem:[%s5020_s15] sm:$0xff]  }
 0x419   : > { %v1698_v45 = vpop.f32.mrf.mxu1 }
 0x41b   : > { %v1591_v48 = vpop.f32.mrf.mxu0  ;;  %v3819_v49 = vpop.f32.mrf.mxu1 }
 0x41c   : > { %v1598_v50 = vadd.f32 %v1591_v48, %v1491_v47  ;;  %v4137_v47 = vld [vmem:[%s5020_s15 + $0xb8] sm:$0xff]  }
 0x41d   : > { %v3799_v51 = vpop.f32.mrf.mxu0  ;;  %v1701_v52 = vpop.f32.mrf.mxu1 }
 0x41e   : > { %v1705_v53 = vadd.f32 %v1698_v45, %v1598_v50  ;;  %v4138_v50 = vld [vmem:[%s5020_s15 + $0xf8] sm:$0xff]  }
 0x41f   : > { %v1594_v55 = vpop.f32.mrf.mxu0  ;;  %v3820_v56 = vpop.f32.mrf.mxu1 }
 0x420   : > { %1707 = vst [vmem:[%s776_s20] sm:$0xff] %v1705_v53  ;;  %v1599_v57 = vadd.f32 %v1594_v55, %v1492_v54  ;;  %v4141_v54 = vld [vmem:[%s5020_s15 + $0xa8] sm:$0xff]   ;;  %v4143_v56 = vld [vmem:[%s5020_s15 + $0xa0] sm:$0xff]  }
 0x421   : > { %v3800_v58 = vpop.f32.mrf.mxu0  ;;  %v4142_v55 = vld [vmem:[%s5020_s15 + $0xe8] sm:$0xff]  }
 0x422   : > { %v1706_v59 = vadd.f32 %v1701_v52, %v1599_v57  ;;  %v4139_v52 = vld [vmem:[%s5020_s15 + $0xb0] sm:$0xff]   ;;  %v4144_v57 = vld [vmem:[%s5020_s15 + $0xe0] sm:$0xff]   ;;  %v4145_v58 = vld [vmem:[%s5020_s15 + $0x98] sm:$0xff]  }
 0x424   : > { %1708 = vst [vmem:[%s776_s20 + $0x8] sm:$0xff] %v1706_v59  ;;  %v1709_v60 = vpack.c.bf16 %v1706_v59, %v1705_v53  ;;  %v4140_v53 = vld [vmem:[%s5020_s15 + $0xf0] sm:$0xff]   ;;  %v4146_v59 = vld [vmem:[%s5020_s15 + $0xd8] sm:$0xff]   ;;  %s766_s20 = scalar_lea.vmem %s5017_s12, %s5034_s30 }
 0x426   : > { %3838 = vmatmul.mubr.bf16.vlgmr.msra.gmra.mxu0 %v1709_v60  ;;  %v4147_v60 = vld [vmem:[%s5020_s15 + $0x90] sm:$0xff]  }
 0x427   : > { %3896 = vmatprep.mubr.msk.bf16.mxu0 %vm4247_vm1, %v4246_v18  ;;  %3881 = vmatpush3.bf16.msra.mxu0 %v4122_v21  ;;  %v3418_v21 = vld [vmem:[%s5021_s16] ss:$0 sm:$0xff] }
 0x428   : > { %3882 = vmatprep.subr.bf16.mxu0 %v4246_v18 }
 0x42b   : > { %3883 = vmatpush3.bf16.msra.mxu0 %v4124_v22 }
 0x42c   : > { %3884 = vmatprep.subr.bf16.mxu0 %v4246_v18 }
 0x42f   : > { %3885 = vmatpush3.bf16.msra.mxu0 %v4126_v23 }
 0x430   : > { %3886 = vmatprep.subr.bf16.mxu0 %v4246_v18 }
 0x433   : > { %3887 = vmatpush3.bf16.msra.mxu0 %v4128_v24 }
 0x434   : > { %3888 = vmatprep.subr.bf16.mxu0 %v4246_v18 }
 0x437   : > { %3889 = vmatpush3.bf16.msra.mxu0 %v4130_v25 }
 0x438   : > { %3890 = vmatprep.subr.bf16.mxu0 %v4246_v18 }
 0x43b   : > { %3891 = vmatpush3.bf16.msra.mxu0 %v4132_v26 }
 0x43c   : > { %3892 = vmatprep.subr.bf16.mxu0 %v4246_v18 }
 0x43f   : > { %3893 = vmatpush3.bf16.msra.mxu0 %v4134_v41 }
 0x440   : > { %3894 = vmatprep.subr.bf16.mxu0 %v4246_v18 }
 0x443   : > { %3895 = vmatpush3.bf16.msra.mxu0 %v4136_v43  ;;  %v2441_v43 = vld [vmem:[%s5019_s14] sm:$0xff] }
 0x444   : > { %3920 = vmatprep.subr.bf16.mxu0 %v4246_v18 }
 0x4e6   : > { %v1824_v62 = vpop.f32.mrf.mxu0 }
 0x4e7   : > { %v1825_v63 = vadd.f32 %v3396_v61, %v1824_v62  ;;  %v4149_v62 = vld [vmem:[%s5020_s15 + $0x88] sm:$0xff]  }
 0x4e8   : > { %v3839_v0 = vpop.f32.mrf.mxu0 }
 0x4e9   : > { %v1832_v1 = vsel %vm1831_vm2, %v1825_v63, -inf  ;;  %v4151_v0 = vld [vmem:[%s5020_s15 + $0x80] sm:$0xff]  }
 0x4ea   : > { %1833 = vmax.xlane.f32.xlu0 %v1832_v1  ;;  %v1827_v2 = vpop.f32.mrf.mxu0  ;;  %v4152_v1 = vld [vmem:[%s5020_s15 + $0xc0] sm:$0xff]  }
 0x4eb   : > { %v1828_v3 = vadd.f32 %v3396_v61, %v1827_v2  ;;  %v4148_v61 = vld [vmem:[%s5020_s15 + $0xd0] sm:$0xff]  }
 0x4ec   : > { %v3840_v4 = vpop.f32.mrf.mxu0 }
 0x4ed   : > { %v1835_v5 = vsel %vm1831_vm2, %v1828_v3, -inf  ;;  %v4153_v4 = vld [vmem:[%s4384_s2 + $0x38] sm:$0xff]  }
 0x4ee   : > { %1836 = vmax.xlane.f32.xlu1 %v1835_v5  ;;  %v4154_v5 = vld [vmem:[%s4384_s2 + $0x30] sm:$0xff]  }
 0x573   : > { %v1834_v10 = vpop.xlane.xlu0 %1833 }
 0x574   : > { %v1838_v11 = vsub.f32 %v1825_v63, %v1834_v10  ;;  %v4150_v63 = vld [vmem:[%s5020_s15 + $0xc8] sm:$0xff]  }
 0x575   : > { %v4159_v10 = vld [vmem:[%s4384_s2 + $0x8] sm:$0xff]  }
 0x576   : > { %v1840_v12 = vmul.f32 1.442695, %v1838_v11  ;;  %v4160_v11 = vld [vmem:[%s4384_s2] sm:$0xff]   ;;  %s771_s2 = scalar_lea.vmem %s5018_s13, %s3495_s27 }
 0x577   : > { %v1837_v13 = vpop.xlane.xlu1 %1836 }
 0x578   : > { %4226 = vpow2.f32 %v1840_v12  ;;  %v1839_v14 = vsub.f32 %v1828_v3, %v1837_v13 }
 0x57a   : > { %v1842_v15 = vmul.f32 1.442695, %v1839_v14 }
 0x57c   : > { %4228 = vpow2.f32 %v1842_v15 }
 0x585   : > { %v4227_v16 = vpop.eup %4226 }
 0x586   : > { %3849 = vmatprep.mubr.msk.f32.mxu1 %vm1831_vm2, %v4227_v16 }
 0x589   : > { %v4229_v17 = vpop.eup %4228 }
 0x58a   : > { %3850 = vmatmul.mubr.msk.f32.vlgmr.msra.gmra.mxu1 %vm1831_vm2, %v4229_v17 }
 0x58b   : > { %3856 = vmatprep.mubr.msk.bf16.mxu1 %vm4247_vm1, %v4246_v18  ;;  %3853 = vmatpush3.bf16.msra.mxu1 %v4119_v19 }
 0x58c   : > { %3854 = vmatprep.subr.bf16.mxu1 %v4246_v18 }
 0x58f   : > { %3855 = vmatpush3.bf16.msra.mxu1 %v4120_v20 }
 0x590   : > { %3860 = vmatprep.subr.bf16.mxu1 %v4246_v18 }
 0x64a   : > { %v3851_v27 = vpop.f32.mrf.mxu1 }
 0x64b   : > { %4230 = vrcp.f32 %v3851_v27 }
 0x64c   : > { %v1916_v28 = vpop.f32.mrf.mxu1 }
 0x64d   : > { %4232 = vrcp.f32 %v1916_v28 }
 0x658   : > { %v4231_v29 = vpop.eup %4230 }
 0x659   : > { %v1928_v32 = vmul.f32 %v4231_v29, %v4229_v17 }
 0x65a   : > { %v4233_v30 = vpop.eup %4232 }
 0x65b   : > { %v1927_v31 = vmul.f32 %v4233_v30, %v4227_v16 }
 0x65d   : > { %v1929_v34 = vpack.c.bf16 %v1928_v32, %v1927_v31 }
 0x65f   : > { %3857 = vmatmul.mubr.msk.bf16.vlgmr.msra.gmra.mxu1 %vm1831_vm2, %v1929_v34 }
 0x660   : > { %3861 = vmatpush3.bf16.msra.mxu1 %v4121_v33  ;;  %3876 = vmatprep.mubr.msk.bf16.mxu1 %vm4247_vm1, %v4246_v18 }
 0x661   : > { %3862 = vmatprep.subr.bf16.mxu1 %v4246_v18 }
 0x664   : > { %3863 = vmatpush3.bf16.msra.mxu1 %v4123_v35  ;;  %v3443_v35 = vld [vmem:[%s766_s20] ss:$0 sm:$0xff] }
 0x665   : > { %3864 = vmatprep.subr.bf16.mxu1 %v4246_v18 }
 0x668   : > { %3865 = vmatpush3.bf16.msra.mxu1 %v4125_v36 }
 0x669   : > { %3866 = vmatprep.subr.bf16.mxu1 %v4246_v18 }
 0x66c   : > { %3867 = vmatpush3.bf16.msra.mxu1 %v4127_v37 }
 0x66d   : > { %3868 = vmatprep.subr.bf16.mxu1 %v4246_v18 }
 0x670   : > { %3869 = vmatpush3.bf16.msra.mxu1 %v4129_v38 }
 0x671   : > { %3870 = vmatprep.subr.bf16.mxu1 %v4246_v18 }
 0x674   : > { %3871 = vmatpush3.bf16.msra.mxu1 %v4131_v39 }
 0x675   : > { %3872 = vmatprep.subr.bf16.mxu1 %v4246_v18 }
 0x678   : > { %3873 = vmatpush3.bf16.msra.mxu1 %v4133_v40 }
 0x679   : > { %3874 = vmatprep.subr.bf16.mxu1 %v4246_v18 }
 0x67c   : > { %3875 = vmatpush3.bf16.msra.mxu1 %v4135_v42  ;;  %v2442_v42 = vld [vmem:[%s5019_s14 + $0x8] sm:$0xff] }
 0x67d   : > { %3900 = vmatprep.subr.bf16.mxu1 %v4246_v18 }
 0x71f   : > { %v1979_v44 = vpop.f32.mrf.mxu1 }
 0x721   : > { %v3858_v45 = vpop.f32.mrf.mxu1 }
 0x723   : > { %v1982_v46 = vpop.f32.mrf.mxu1 }
 0x724   : > { %v1986_v48 = vpack.c.bf16 %v1982_v46, %v1979_v44 }
 0x725   : > { %v3859_v49 = vpop.f32.mrf.mxu1 }
 0x726   : > { %3877 = vmatmul.mubr.bf16.vlgmr.msra.gmra.mxu1 %v1986_v48  ;;  %v2115_v51 = vrot.slane %v1986_v48, 2  ;;  %v2222_v2 = vrot.slane %v1986_v48, 4  ;;  %v2329_v3 = vrot.slane %v1986_v48, 6  ;;  %v4161_v48 = vld [vmem:[%s771_s2] sm:$0xff]   ;;  %v4163_v49 = vld [vmem:[%s5020_s15 + $0x78] sm:$0xff]  }
 0x727   : > { %3901 = vmatpush3.bf16.msra.mxu1 %v4137_v47  ;;  %3916 = vmatprep.mubr.msk.bf16.mxu1 %vm4247_vm1, %v4246_v18 }
 0x728   : > { %3897 = vmatmul.mubr.bf16.vlgmr.msra.gmra.mxu0 %v2115_v51  ;;  %3902 = vmatprep.subr.bf16.mxu1 %v4246_v18  ;;  %v4167_v51 = vld [vmem:[%s5020_s15 + $0x68] sm:$0xff]  }
 0x729   : > { %3921 = vmatpush3.bf16.msra.mxu0 %v4138_v50  ;;  %3936 = vmatprep.mubr.msk.bf16.mxu0 %vm4247_vm1, %v4246_v18  ;;  %v4165_v50 = vld [vmem:[%s5020_s15 + $0x70] sm:$0xff]  }
 0x72a   : > { %3922 = vmatprep.subr.bf16.mxu0 %v4246_v18 }
 0x72b   : > { %3903 = vmatpush3.bf16.msra.mxu1 %v4139_v52  ;;  %v4169_v52 = vld [vmem:[%s5020_s15 + $0x60] sm:$0xff]  }
 0x72c   : > { %3904 = vmatprep.subr.bf16.mxu1 %v4246_v18 }
 0x72d   : > { %3923 = vmatpush3.bf16.msra.mxu0 %v4140_v53  ;;  %v4171_v53 = vld [vmem:[%s5020_s15 + $0x58] sm:$0xff]  }
 0x72e   : > { %3924 = vmatprep.subr.bf16.mxu0 %v4246_v18 }
 0x72f   : > { %3905 = vmatpush3.bf16.msra.mxu1 %v4141_v54  ;;  %v4173_v54 = vld [vmem:[%s5020_s15 + $0x50] sm:$0xff]  }
 0x730   : > { %3906 = vmatprep.subr.bf16.mxu1 %v4246_v18 }
 0x731   : > { %3925 = vmatpush3.bf16.msra.mxu0 %v4142_v55  ;;  %v4175_v55 = vld [vmem:[%s5020_s15 + $0x48] sm:$0xff]  }
 0x732   : > { %3926 = vmatprep.subr.bf16.mxu0 %v4246_v18 }
 0x733   : > { %3907 = vmatpush3.bf16.msra.mxu1 %v4143_v56 }
 0x734   : > { %3908 = vmatprep.subr.bf16.mxu1 %v4246_v18 }
 0x735   : > { %3927 = vmatpush3.bf16.msra.mxu0 %v4144_v57 }
 0x736   : > { %3928 = vmatprep.subr.bf16.mxu0 %v4246_v18 }
 0x737   : > { %3909 = vmatpush3.bf16.msra.mxu1 %v4145_v58 }
 0x738   : > { %3910 = vmatprep.subr.bf16.mxu1 %v4246_v18 }
 0x739   : > { %3929 = vmatpush3.bf16.msra.mxu0 %v4146_v59 }
 0x73a   : > { %3930 = vmatprep.subr.bf16.mxu0 %v4246_v18 }
 0x73b   : > { %3911 = vmatpush3.bf16.msra.mxu1 %v4147_v60  ;;  %v4162_v60 = vld [vmem:[%s5020_s15 + $0x38] sm:$0xff]  }
 0x73c   : > { %3912 = vmatprep.subr.bf16.mxu1 %v4246_v18 }
 0x73d   : > { %3931 = vmatpush3.bf16.msra.mxu0 %v4148_v61 }
 0x73e   : > { %3932 = vmatprep.subr.bf16.mxu0 %v4246_v18 }
 0x73f   : > { %3913 = vmatpush3.bf16.msra.mxu1 %v4149_v62  ;;  %v4164_v62 = vld [vmem:[%s5020_s15 + $0x30] sm:$0xff]  }
 0x740   : > { %3914 = vmatprep.subr.bf16.mxu1 %v4246_v18 }
 0x741   : > { %3933 = vmatpush3.bf16.msra.mxu0 %v4150_v63  ;;  %v4166_v63 = vld [vmem:[%s5020_s15 + $0x28] sm:$0xff]  }
 0x742   : > { %3934 = vmatprep.subr.bf16.mxu0 %v4246_v18 }
 0x743   : > { %3915 = vmatpush3.bf16.msra.mxu1 %v4151_v0  ;;  %v4168_v0 = vld [vmem:[%s5020_s15 + $0x20] sm:$0xff]  }
 0x744   : > { %3940 = vmatprep.subr.bf16.mxu1 %v4246_v18 }
 0x745   : > { %3935 = vmatpush3.bf16.msra.mxu0 %v4152_v1  ;;  %v4170_v1 = vld [vmem:[%s5020_s15 + $0x18] sm:$0xff]  }
 0x746   : > { %3917 = vmatmul.mubr.bf16.vlgmr.msra.gmra.mxu1 %v2222_v2  ;;  %3960 = vmatprep.subr.mxu0 %v4246_v18  ;;  %v4172_v2 = vld [vmem:[%s5020_s15 + $0x10] sm:$0xff]  }
 0x747   : > { %3956 = vmatprep.mubr.msk.bf16.mxu1 %vm4247_vm1, %v4246_v18  ;;  %3941 = vmatpush3.bf16.msra.mxu1 %v4153_v4  ;;  %v4176_v4 = vld [vmem:[%s5020_s15] sm:$0xff]  }
 0x748   : > { %3937 = vmatmul.mubr.bf16.vlgmr.msra.gmra.mxu0 %v2329_v3  ;;  %3942 = vmatprep.subr.bf16.mxu1 %v4246_v18  ;;  %v4174_v3 = vld [vmem:[%s5020_s15 + $0x8] sm:$0xff]  }
 0x749   : > { %3964 = vmatprep.mubr.msk.f32.mxu0 %vm4247_vm1, %v4246_v18  ;;  %3961 = vmatpush3.msra.mxu0 %v2442_v42 }
 0x74a   : > { %3962 = vmatprep.subr.mxu0 %v4246_v18 }
 0x74b   : > { %3943 = vmatpush3.bf16.msra.mxu1 %v4154_v5  ;;  %3963 = vmatpush3.msra.mxu0 %v2441_v43  ;;  %v4177_v5 = vld [vmem:[%s5020_s15 + $0x40] sm:$0xff]  }
 0x74c   : > { %3944 = vmatprep.subr.bf16.mxu1 %v4246_v18  ;;  %3967 = vmatprep.subr.bf16.mxu0 %v4246_v18 }
 0x74f   : > { %3945 = vmatpush3.bf16.msra.mxu1 %v4155_v6 }
 0x750   : > { %3946 = vmatprep.subr.bf16.mxu1 %v4246_v18 }
 0x753   : > { %3947 = vmatpush3.bf16.msra.mxu1 %v4156_v7  ;;  %v4178_v7 = vld [vmem:[%s5020_s15 + $0xb8] sm:$0xff]  }
 0x754   : > { %3948 = vmatprep.subr.bf16.mxu1 %v4246_v18 }
 0x757   : > { %3949 = vmatpush3.bf16.msra.mxu1 %v4157_v8 }
 0x758   : > { %3950 = vmatprep.subr.bf16.mxu1 %v4246_v18 }
 0x75b   : > { %3951 = vmatpush3.bf16.msra.mxu1 %v4158_v9 }
 0x75c   : > { %3952 = vmatprep.subr.bf16.mxu1 %v4246_v18 }
 0x75f   : > { %3953 = vmatpush3.bf16.msra.mxu1 %v4159_v10  ;;  %v4179_v10 = vld [vmem:[%s5020_s15 + $0xf8] sm:$0xff]  }
 0x760   : > { %3954 = vmatprep.subr.bf16.mxu1 %v4246_v18 }
 0x763   : > { %3955 = vmatpush3.bf16.msra.mxu1 %v4160_v11 }
 0x764   : > { %3993 = vmatprep.subr.bf16.mxu1 %v4246_v18 }
 0x7e6   : > { %v2085_v12 = vpop.f32.mrf.mxu1 }
 0x7e7   : > { %v2097_v22 = vadd.f32 %v3418_v21, %v2085_v12  ;;  %v4186_v21 = vld [vmem:[%s5020_s15 + $0x98] sm:$0xff]  }
 0x7e8   : > { %v3878_v13 = vpop.f32.mrf.mxu1  ;;  %v2199_v14 = vpop.f32.mrf.mxu0 }
 0x7e9   : > { %v2205_v23 = vadd.f32 %v2199_v14, %v2097_v22  ;;  %v4180_v13 = vld [vmem:[%s5020_s15 + $0xb0] sm:$0xff]   ;;  %v4187_v22 = vld [vmem:[%s5020_s15 + $0xd8] sm:$0xff]  }
 0x7ea   : > { %v2088_v15 = vpop.f32.mrf.mxu1  ;;  %v3898_v16 = vpop.f32.mrf.mxu0 }
 0x7eb   : > { %v4181_v15 = vld [vmem:[%s5020_s15 + $0xf0] sm:$0xff]   ;;  %v4182_v16 = vld [vmem:[%s5020_s15 + $0xa8] sm:$0xff]  }
 0x7ec   : > { %v3879_v17 = vpop.f32.mrf.mxu1  ;;  %v2202_v19 = vpop.f32.mrf.mxu0 }
 0x7ed   : > { %v4183_v17 = vld [vmem:[%s5020_s15 + $0xe8] sm:$0xff]   ;;  %v4184_v19 = vld [vmem:[%s5020_s15 + $0xa0] sm:$0xff]  }
 0x7ee   : > { %v3899_v20 = vpop.f32.mrf.mxu0 }
 0x7ef   : > { %v4185_v20 = vld [vmem:[%s5020_s15 + $0xe0] sm:$0xff]  }
 0x806   : > { %v2306_v24 = vpop.f32.mrf.mxu1 }
 0x807   : > { %v2312_v25 = vadd.f32 %v2306_v24, %v2205_v23  ;;  %v4188_v23 = vld [vmem:[%s5020_s15 + $0x90] sm:$0xff]  }
 0x808   : > { %v3918_v26 = vpop.f32.mrf.mxu1  ;;  %v2413_v27 = vpop.f32.mrf.mxu0  ;;  %v4189_v24 = vld [vmem:[%s5020_s15 + $0xd0] sm:$0xff]  }
 0x809   : > { %v2419_v28 = vadd.f32 %v2413_v27, %v2312_v25  ;;  %v4190_v25 = vld [vmem:[%s5020_s15 + $0x88] sm:$0xff]   ;;  %v4192_v27 = vld [vmem:[%s5020_s15 + $0x80] sm:$0xff]  }
 0x80a   : > { %v2309_v29 = vpop.f32.mrf.mxu1  ;;  %v3938_v30 = vpop.f32.mrf.mxu0  ;;  %v4191_v26 = vld [vmem:[%s5020_s15 + $0xc8] sm:$0xff]  }
 0x80b   : > { %2420 = vst [vmem:[%s780_s29] sm:$0xf] %v2419_v28  ;;  %v2421_v31 = vpack.c.bf16 %v2419_v28, %v2419_v28  ;;  %v4193_v28 = vld [vmem:[%s5020_s15 + $0xc0] sm:$0xff]  }
 0x80c   : > { %v3919_v32 = vpop.f32.mrf.mxu1  ;;  %v2416_v33 = vpop.f32.mrf.mxu0 }
 0x80d   : > { %3957 = vmatmul.mubr.bf16.vlgmr.msra.gmra.mxu1 %v2421_v31 }
 0x80e   : > { %v3939_v34 = vpop.f32.mrf.mxu0  ;;  %4009 = vmatprep.mubr.msk.bf16.mxu1 %vm4247_vm1, %v4246_v18  ;;  %3994 = vmatpush3.bf16.msra.mxu1 %v4163_v49 }
 0x80f   : > { %3995 = vmatprep.subr.bf16.mxu1 %v4246_v18 }
 0x812   : > { %3996 = vmatpush3.bf16.msra.mxu1 %v4165_v50 }
 0x813   : > { %3997 = vmatprep.subr.bf16.mxu1 %v4246_v18 }
 0x816   : > { %3998 = vmatpush3.bf16.msra.mxu1 %v4167_v51 }
 0x817   : > { %3999 = vmatprep.subr.bf16.mxu1 %v4246_v18 }
 0x81a   : > { %4000 = vmatpush3.bf16.msra.mxu1 %v4169_v52 }
 0x81b   : > { %4001 = vmatprep.subr.bf16.mxu1 %v4246_v18 }
 0x81e   : > { %4002 = vmatpush3.bf16.msra.mxu1 %v4171_v53 }
 0x81f   : > { %4003 = vmatprep.subr.bf16.mxu1 %v4246_v18 }
 0x822   : > { %4004 = vmatpush3.bf16.msra.mxu1 %v4173_v54 }
 0x823   : > { %4005 = vmatprep.subr.bf16.mxu1 %v4246_v18 }
 0x826   : > { %4006 = vmatpush3.bf16.msra.mxu1 %v4175_v55 }
 0x827   : > { %4007 = vmatprep.subr.bf16.mxu1 %v4246_v18 }
 0x82a   : > { %4008 = vmatpush3.bf16.msra.mxu1 %v4177_v5 }
 0x82b   : > { %4033 = vmatprep.subr.bf16.mxu1 %v4246_v18 }
 0x8cd   : > { %v2532_v36 = vpop.f32.mrf.mxu1 }
 0x8ce   : > { %v2533_v37 = vadd.f32 %v3443_v35, %v2532_v36 }
 0x8cf   : > { %v3958_v38 = vpop.f32.mrf.mxu1 }
 0x8d0   : > { %v2539_v39 = vsel %vm2538_vm3, %v2533_v37, -inf }
 0x8d1   : > { %2540 = vmax.xlane.f32.xlu0 %v2539_v39  ;;  %v2535_v40 = vpop.f32.mrf.mxu1  ;;  %v2443_v39 = vld [vmem:[%s5021_s16] sm:$0x1] }
 0x8d3   : > { %v3959_v41 = vpop.f32.mrf.mxu1 }
 0x95a   : > { %v2541_v44 = vpop.xlane.xlu0 %2540 }
 0x95b   : > { %v2542_v45 = vsub.f32 %v2533_v37, %v2541_v44 }
 0x95d   : > { %v2543_v46 = vmul.f32 1.442695, %v2542_v45 }
 0x95f   : > { %4234 = vpow2.f32 %v2543_v46 }
 0x96c   : > { %v4235_v47 = vpop.eup %4234 }
 0x96d   : > { %3965 = vmatmul.mubr.msk.f32.vlgmr.msra.gmra.mxu0 %vm2545_vm4, %v4235_v47 }
 0x96e   : > { %3969 = vmatprep.mubr.msk.bf16.mxu0 %vm4247_vm1, %v4246_v18  ;;  %3968 = vmatpush3.bf16.msra.mxu0 %v4161_v48 }
 0x96f   : > { %3973 = vmatprep.subr.bf16.mxu0 %v4246_v18 }
 0xa2d   : > { %v2615_v56 = vpop.f32.mrf.mxu0 }
 0xa2e   : > { %4236 = vrcp.f32 %v2615_v56 }
 0xa2f   : > { %v3966_v57 = vpop.f32.mrf.mxu0 }
 0xa3b   : > { %v4237_v58 = vpop.eup %4236 }
 0xa3c   : > { %v2620_v59 = vmul.f32 %v4237_v58, %v4235_v47 }
 0xa3e   : > { %v2621_v61 = vpack.c.bf16 %v2620_v59, %v2620_v59 }
 0xa40   : > { %3970 = vmatmul.mubr.msk.bf16.vlgmr.msra.gmra.mxu0 %vm2545_vm4, %v2621_v61 }
 0xa41   : > { %3974 = vmatpush3.bf16.msra.mxu0 %v4162_v60  ;;  %3989 = vmatprep.mubr.msk.bf16.mxu0 %vm4247_vm1, %v4246_v18 }
 0xa42   : > { %3975 = vmatprep.subr.bf16.mxu0 %v4246_v18 }
 0xa45   : > { %3976 = vmatpush3.bf16.msra.mxu0 %v4164_v62 }
 0xa46   : > { %3977 = vmatprep.subr.bf16.mxu0 %v4246_v18 }
 0xa49   : > { %3978 = vmatpush3.bf16.msra.mxu0 %v4166_v63 }
 0xa4a   : > { %3979 = vmatprep.subr.bf16.mxu0 %v4246_v18 }
 0xa4d   : > { %3980 = vmatpush3.bf16.msra.mxu0 %v4168_v0 }
 0xa4e   : > { %3981 = vmatprep.subr.bf16.mxu0 %v4246_v18 }
 0xa51   : > { %3982 = vmatpush3.bf16.msra.mxu0 %v4170_v1 }
 0xa52   : > { %3983 = vmatprep.subr.bf16.mxu0 %v4246_v18 }
 0xa55   : > { %3984 = vmatpush3.bf16.msra.mxu0 %v4172_v2 }
 0xa56   : > { %3985 = vmatprep.subr.bf16.mxu0 %v4246_v18 }
 0xa59   : > { %3986 = vmatpush3.bf16.msra.mxu0 %v4174_v3 }
 0xa5a   : > { %3987 = vmatprep.subr.bf16.mxu0 %v4246_v18 }
 0xa5d   : > { %3988 = vmatpush3.bf16.msra.mxu0 %v4176_v4 }
 0xa5e   : > { %4013 = vmatprep.subr.bf16.mxu0 %v4246_v18 }
 0xb00   : > { %v2665_v6 = vpop.f32.mrf.mxu0 }
 0xb01   : > { %v2671_v8 = vpack.c.bf16 %v2665_v6, %v2665_v6 }
 0xb02   : > { %v3971_v9 = vpop.f32.mrf.mxu0 }
 0xb03   : > { %v2794_v11 = vshrl.u32 %v2671_v8, 16  ;;  %3990 = vmatmul.mubr.bf16.vlgmr.msra.gmra.mxu0 %v2671_v8  ;;  %v2903_v29 = vrot.slane %v2671_v8, 1 }
 0xb04   : > { %4014 = vmatpush3.bf16.msra.mxu0 %v4178_v7  ;;  %v2668_v12 = vpop.f32.mrf.mxu0  ;;  %4029 = vmatprep.mubr.msk.bf16.mxu0 %vm4247_vm1, %v4246_v18 }
 0xb05   : > { %4010 = vmatmul.mubr.bf16.vlgmr.msra.gmra.mxu1 %v2794_v11  ;;  %4015 = vmatprep.subr.bf16.mxu0 %v4246_v18  ;;  %v3010_v30 = vrot.slane %v2794_v11, 1 }
 0xb06   : > { %4034 = vmatpush3.bf16.msra.mxu1 %v4179_v10  ;;  %v3972_v14 = vpop.f32.mrf.mxu0  ;;  %4049 = vmatprep.mubr.msk.bf16.mxu1 %vm4247_vm1, %v4246_v18 }
 0xb07   : > { %4035 = vmatprep.subr.bf16.mxu1 %v4246_v18 }
 0xb08   : > { %4016 = vmatpush3.bf16.msra.mxu0 %v4180_v13 }
 0xb09   : > { %4017 = vmatprep.subr.bf16.mxu0 %v4246_v18 }
 0xb0a   : > { %4036 = vmatpush3.bf16.msra.mxu1 %v4181_v15 }
 0xb0b   : > { %4037 = vmatprep.subr.bf16.mxu1 %v4246_v18 }
 0xb0c   : > { %4018 = vmatpush3.bf16.msra.mxu0 %v4182_v16 }
 0xb0d   : > { %4019 = vmatprep.subr.bf16.mxu0 %v4246_v18 }
 0xb0e   : > { %4038 = vmatpush3.bf16.msra.mxu1 %v4183_v17 }
 0xb0f   : > { %4039 = vmatprep.subr.bf16.mxu1 %v4246_v18 }
 0xb10   : > { %4020 = vmatpush3.bf16.msra.mxu0 %v4184_v19 }
 0xb11   : > { %4021 = vmatprep.subr.bf16.mxu0 %v4246_v18 }
 0xb12   : > { %4040 = vmatpush3.bf16.msra.mxu1 %v4185_v20 }
 0xb13   : > { %4041 = vmatprep.subr.bf16.mxu1 %v4246_v18 }
 0xb14   : > { %4022 = vmatpush3.bf16.msra.mxu0 %v4186_v21 }
 0xb15   : > { %4023 = vmatprep.subr.bf16.mxu0 %v4246_v18 }
 0xb16   : > { %4042 = vmatpush3.bf16.msra.mxu1 %v4187_v22 }
 0xb17   : > { %4043 = vmatprep.subr.bf16.mxu1 %v4246_v18 }
 0xb18   : > { %4024 = vmatpush3.bf16.msra.mxu0 %v4188_v23 }
 0xb19   : > { %4025 = vmatprep.subr.bf16.mxu0 %v4246_v18 }
 0xb1a   : > { %4044 = vmatpush3.bf16.msra.mxu1 %v4189_v24 }
 0xb1b   : > { %4045 = vmatprep.subr.bf16.mxu1 %v4246_v18 }
 0xb1c   : > { %4026 = vmatpush3.bf16.msra.mxu0 %v4190_v25 }
 0xb1d   : > { %4027 = vmatprep.subr.bf16.mxu0 %v4246_v18 }
 0xb1e   : > { %4046 = vmatpush3.bf16.msra.mxu1 %v4191_v26 }
 0xb1f   : > { %4047 = vmatprep.subr.bf16.mxu1 %v4246_v18 }
 0xb20   : > { %4028 = vmatpush3.bf16.msra.mxu0 %v4192_v27 }
 0xb22   : > { %4048 = vmatpush3.bf16.msra.mxu1 %v4193_v28 }
 0xb23   : > { %4030 = vmatmul.mubr.bf16.vlgmr.msra.gmra.mxu0 %v2903_v29 }
 0xb25   : > { %4050 = vmatmul.mubr.bf16.vlgmr.msra.gmra.mxu1 %v3010_v30 }
 0xbc3   : > { %v2770_v31 = vpop.f32.mrf.mxu0 }
 0xbc4   : > { %v2776_v18 = vadd.f32 %v2770_v31, %v2443_v39 }
 0xbc5   : > { %v3991_v32 = vpop.f32.mrf.mxu0  ;;  %v2879_v33 = vpop.f32.mrf.mxu1 }
 0xbc6   : > { %v2885_v40 = vadd.f32 %v2879_v33, %v2776_v18 }
 0xbc7   : > { %v2773_v34 = vpop.f32.mrf.mxu0  ;;  %v4011_v35 = vpop.f32.mrf.mxu1 }
 0xbc9   : > { %v3992_v36 = vpop.f32.mrf.mxu0  ;;  %v2882_v37 = vpop.f32.mrf.mxu1 }
 0xbcb   : > { %v4012_v38 = vpop.f32.mrf.mxu1 }
 0xbe3   : > { %v2987_v41 = vpop.f32.mrf.mxu0 }
 0xbe4   : > { %v2993_v42 = vadd.f32 %v2987_v41, %v2885_v40 }
 0xbe5   : > { %v4031_v43 = vpop.f32.mrf.mxu0  ;;  %v3094_v44 = vpop.f32.mrf.mxu1 }
 0xbe6   : > { %v3100_v45 = vadd.f32 %v3094_v44, %v2993_v42 }
 0xbe7   : > { %v2990_v46 = vpop.f32.mrf.mxu0  ;;  %v4051_v47 = vpop.f32.mrf.mxu1 }
 0xbe8   : > { %3101 = vst [vmem:[%s783_s21] sm:$0x1] %v3100_v45 }
 0xbe9   : > { %v4032_v48 = vpop.f32.mrf.mxu0  ;;  %v3097_v49 = vpop.f32.mrf.mxu1 }
 0xbeb   : > { %v4052_v50 = vpop.f32.mrf.mxu1 }
 0xbec PF: > { %s30_s0 = sadd.s32 1, %s4244_s0  }
 0xbed   : > { %p27_p4 = scmp.ge.s32.totalorder %s30_s0, 4  }
 0xbef   :  { %29 = sbr.rel (!%p27_p4) target bundleno = 5 (0x5), region = 169 }

</bundles_post_ra>
